<compile_context>
chip_gen: v5e
topology: v5e:2x2
jax: 0.10.0
libtpu: 0.0.40
codegen_flags: <defaults>
</compile_context>

<pallas_src>
import jax
import jax.numpy as jnp
from jax import lax
from jax.experimental import pallas as pl
from jax.experimental.pallas import tpu as pltpu

BN_EPS = 1e-5   # PyTorch BatchNorm2d default
LANE = 128      # TPU lane width


def _round_up(x, m):
    return (x + m - 1) // m * m


# ---------------------------------------------------------------------------
# Kernels
# ---------------------------------------------------------------------------
def _make_conv_kernel(H, W, Cin_p, Cout_p, fuse_bn_relu):
    """Per-batch-element kernel:
       [optional folded-BN affine + ReLU on the input] -> 3x3 conv (single
       im2col matmul) -> per-tile centered BN statistics.
       Ref order: x, [scale, shift], w, y_out, stats_out, pad_scratch."""

    def kernel(*refs):
        if fuse_bn_relu:
            x_ref, sc_ref, sh_ref, w_ref, y_ref, st_ref, pad_scr = refs
        else:
            x_ref, w_ref, y_ref, st_ref, pad_scr = refs

        # In-kernel spatial padding: zero ONLY the 1-px halo (not the whole
        # scratch), every step, so there is no cross-iteration scratch state
        # and the batch grid axis can safely be "parallel".
        pad_scr[0:1, :, :] = jnp.zeros((1, W + 2, Cin_p), jnp.float32)
        pad_scr[H + 1:H + 2, :, :] = jnp.zeros((1, W + 2, Cin_p), jnp.float32)
        pad_scr[1:H + 1, 0:1, :] = jnp.zeros((H, 1, Cin_p), jnp.float32)
        pad_scr[1:H + 1, W + 1:W + 2, :] = jnp.zeros((H, 1, Cin_p), jnp.float32)

        x = x_ref[0]                                        # (H, W, Cin_p) f32
        if fuse_bn_relu:
            # Previous BatchNorm folded to per-channel scale/shift, plus ReLU.
            x = jnp.maximum(x * sc_ref[...] + sh_ref[...], 0.0)
        pad_scr[1:H + 1, 1:W + 1, :] = x                    # interior write

        # im2col: build one (H*W, 9*Cin_p) slab -> a single fat MXU matmul.
        xp = pad_scr[...]                                   # (H+2, W+2, Cin_p)
        cols = [xp[dy:dy + H, dx:dx + W, :].reshape(H * W, Cin_p)
                for dy in range(3) for dx in range(3)]
        patches = jnp.concatenate(cols, axis=1)             # (H*W, 9*Cin_p)
        acc = jnp.dot(patches, w_ref[...],
                      preferred_element_type=jnp.float32)   # (H*W, Cout_p) f32

        # Per-tile centered statistics (combined across tiles in the wrapper
        # via Chan's pooled-variance formula; centered form avoids the
        # E[x^2]-E[x]^2 cancellation flagged in review).
        count = float(H * W)
        tsum = jnp.sum(acc, axis=0, keepdims=True)           # (1, Cout_p)
        tmean = tsum * (1.0 / count)
        tcss = jnp.sum((acc - tmean) ** 2, axis=0, keepdims=True)

        y_ref[...] = acc.reshape(1, H, W, Cout_p)            # lane-dense store
        st_ref[...] = jnp.concatenate([tsum, tcss],
                                      axis=0).reshape(1, 2, Cout_p)

    return kernel


def _bn_relu_kernel(x_ref, sc_ref, sh_ref, o_ref):
    """Final BatchNorm (precomputed per-channel scale/shift) + ReLU."""
    o_ref[...] = jnp.maximum(x_ref[...] * sc_ref[...] + sh_ref[...], 0.0)


# ---------------------------------------------------------------------------
# pallas_call wrappers
# ---------------------------------------------------------------------------
def _conv_pass(x, w, scale, shift, grid_n, H, W, Cin_p, Cout_p):
    fuse = scale is not None
    kernel = _make_conv_kernel(H, W, Cin_p, Cout_p, fuse)

    x_spec = pl.BlockSpec((1, H, W, Cin_p), lambda i: (i, 0, 0, 0))
    w_spec = pl.BlockSpec((9 * Cin_p, Cout_p), lambda i: (0, 0))
    ch_spec = pl.BlockSpec((1, Cin_p), lambda i: (0, 0))
    y_spec = pl.BlockSpec((1, H, W, Cout_p), lambda i: (i, 0, 0, 0))
    st_spec = pl.BlockSpec((1, 2, Cout_p), lambda i: (i, 0, 0))

    in_specs = [x_spec] + ([ch_spec, ch_spec] if fuse else []) + [w_spec]
    args = (x,) + ((scale, shift) if fuse else ()) + (w,)

    y, st = pl.pallas_call(
        kernel,
        grid=(grid_n,),
        in_specs=in_specs,
        out_specs=[y_spec, st_spec],
        out_shape=[jax.ShapeDtypeStruct((grid_n, H, W, Cout_p), jnp.float32),
                   jax.ShapeDtypeStruct((grid_n, 2, Cout_p), jnp.float32)],
        scratch_shapes=[pltpu.VMEM((H + 2, W + 2, Cin_p), jnp.float32)],
        compiler_params=pltpu.CompilerParams(
            dimension_semantics=("parallel",)),
    )(*args)
    return y, st


def _fold_bn(stats, gamma_p, beta_p, per_tile_count):
    """Combine per-tile (sum, centered-SS) into global biased mean/var and
    fold gamma/beta so that  BN(y) = y*scale + shift  (tiny per-channel ops)."""
    sums = stats[:, 0, :]                                   # (tiles, C)
    css = stats[:, 1, :]
    n_tiles = stats.shape[0]
    total = n_tiles * per_tile_count
    tile_mean = sums / per_tile_count
    mean = jnp.sum(sums, axis=0) / total
    var = (jnp.sum(css, axis=0)
           + per_tile_count * jnp.sum((tile_mean - mean) ** 2, axis=0)) / total
    inv = lax.rsqrt(var + BN_EPS)
    scale = gamma_p * inv
    shift = beta_p - mean * scale
    return scale.reshape(1, -1), shift.reshape(1, -1)


@jax.jit
def double_conv(x_nchw, w1, g1, b1, w2, g2, b2):
    """x_nchw: (N, Cin, H, W); w1: (3,3,Cin,Cmid); w2: (3,3,Cmid,Cout);
    g*/b*: per-channel BN affine.  Returns (N, Cout, H, W) — the forward pass
    of PyTorch DoubleConv with train-mode (batch-statistics) BatchNorm."""
    N, Cin, H, W = x_nchw.shape
    Cmid, Cout = w1.shape[-1], w2.shape[-1]
    Cin_p = _round_up(Cin, LANE)
    Cmid_p = _round_up(Cmid, LANE)
    Cout_p = _round_up(Cout, LANE)
    f32 = jnp.float32

    # Boundary layout glue only: NCHW -> NHWC (channels on the lane axis) and
    # channel padding to the lane width.  No spatial padding here.
    x = jnp.transpose(x_nchw.astype(f32), (0, 2, 3, 1))
    x = jnp.pad(x, ((0, 0), (0, 0), (0, 0), (0, Cin_p - Cin)))

    def pack_w(w, cin_p, cout_p):          # HWIO -> im2col layout (9*Cin_p, Cout_p)
        kh, kw, cin, cout = w.shape
        w = jnp.pad(w.astype(f32),
                    ((0, 0), (0, 0), (0, cin_p - cin), (0, cout_p - cout)))
        return w.reshape(kh * kw * cin_p, cout_p)

    def pad_vec(v, cp):
        return jnp.pad(v.astype(f32), (0, cp - v.shape[0]))

    w1p, w2p = pack_w(w1, Cin_p, Cmid_p), pack_w(w2, Cmid_p, Cout_p)
    g1p, b1p = pad_vec(g1, Cmid_p), pad_vec(b1, Cmid_p)
    g2p, b2p = pad_vec(g2, Cout_p), pad_vec(b2, Cout_p)

    # Pass 1: conv1 + per-tile BN1 statistics.
    y1, st1 = _conv_pass(x, w1p, None, None, N, H, W, Cin_p, Cmid_p)
    sc1, sh1 = _fold_bn(st1, g1p, b1p, H * W)

    # Pass 2: BN1 + ReLU (folded) -> conv2 + per-tile BN2 statistics.
    y2, st2 = _conv_pass(y1, w2p, sc1, sh1, N, H, W, Cmid_p, Cout_p)
    sc2, sh2 = _fold_bn(st2, g2p, b2p, H * W)

    # Pass 3: BN2 + ReLU, lane-dense output store.
    out = pl.pallas_call(
        _bn_relu_kernel,
        grid=(N,),
        in_specs=[pl.BlockSpec((1, H, W, Cout_p), lambda i: (i, 0, 0, 0)),
                  pl.BlockSpec((1, Cout_p), lambda i: (0, 0)),
                  pl.BlockSpec((1, Cout_p), lambda i: (0, 0))],
        out_specs=pl.BlockSpec((1, H, W, Cout_p), lambda i: (i, 0, 0, 0)),
        out_shape=jax.ShapeDtypeStruct((N, H, W, Cout_p), jnp.float32),
        compiler_params=pltpu.CompilerParams(
            dimension_semantics=("parallel",)),
    )(y2, sc2, sh2)

    # Boundary glue: drop channel padding, back to NCHW.
    return jnp.transpose(out[..., :Cout], (0, 3, 1, 2))


# ---------------------------------------------------------------------------
# Pure-JAX reference matching PyTorch DoubleConv forward (train-mode BN)
# ---------------------------------------------------------------------------
def reference(x, w1, g1, b1, w2, g2, b2):
    def conv(inp, w_hwio):
        w_oihw = jnp.transpose(w_hwio, (3, 2, 0, 1))
        return lax.conv_general_dilated(
            inp, w_oihw, window_strides=(1, 1), padding=((1, 1), (1, 1)),
            dimension_numbers=("NCHW", "OIHW", "NCHW"))

    def bn_relu(inp, g, b):
        mean = jnp.mean(inp, axis=(0, 2, 3), keepdims=True)
        var = jnp.var(inp, axis=(0, 2, 3), keepdims=True)   # biased
        y = (inp - mean) / jnp.sqrt(var + BN_EPS)
        y = y * g.reshape(1, -1, 1, 1) + b.reshape(1, -1, 1, 1)
        return jnp.maximum(y, 0.0)

    h = bn_relu(conv(x, w1), g1, b1)
    return bn_relu(conv(h, w2), g2, b2)


if __name__ == "__main__":
    # Small shapes consistent with DoubleConv(in_channels=4, out_channels=8).
    N, Cin, Cmid, Cout, H, W = 2, 4, 8, 8, 16, 16

    key = jax.random.PRNGKey(0)
    ks = jax.random.split(key, 7)
    x = jax.random.normal(ks[0], (N, Cin, H, W), jnp.float32)
    w1 = 0.2 * jax.random.normal(ks[1], (3, 3, Cin, Cmid), jnp.float32)
    w2 = 0.2 * jax.random.normal(ks[2], (3, 3, Cmid, Cout), jnp.float32)
    g1 = 1.0 + 0.1 * jax.random.normal(ks[3], (Cmid,), jnp.float32)
    b1 = 0.1 * jax.random.normal(ks[4], (Cmid,), jnp.float32)
    g2 = 1.0 + 0.1 * jax.random.normal(ks[5], (Cout,), jnp.float32)
    b2 = 0.1 * jax.random.normal(ks[6], (Cout,), jnp.float32)

    out = jax.block_until_ready(double_conv(x, w1, g1, b1, w2, g2, b2))

    ref = reference(x, w1, g1, b1, w2, g2, b2)
    assert out.shape == (N, Cout, H, W), out.shape
    max_err = float(jnp.max(jnp.abs(out - ref)))
    assert jnp.allclose(out, ref, atol=1e-3, rtol=1e-3), max_err
    print("KERNEL_OK")
</pallas_src>

<mosaic_0001>
module attributes {stable_mosaic.version = 11 : i64} {
  func.func @kernel(%arg0: i32, %arg1: memref<1x16x16x128xf32, #tpu.memory_space<vmem>>, %arg2: memref<1152x128xf32, #tpu.memory_space<vmem>>, %arg3: memref<1x16x16x128xf32, #tpu.memory_space<vmem>>, %arg4: memref<1x2x128xf32, #tpu.memory_space<vmem>>, %arg5: memref<18x18x128xf32, #tpu.memory_space<vmem>>) attributes {dimension_semantics = [#tpu.dimension_semantics<parallel>], iteration_bounds = array<i64: 2>, scalar_prefetch = 0 : i64, scratch_operands = 1 : i64, tpu.core_type = #tpu.core_type<tc>, window_params = [{transform_indices = @transform_0, window_bounds = array<i64: 1, 16, 16, 128>}, {pipeline_mode = #tpu.pipeline_mode<synchronous>, transform_indices = @transform_1, window_bounds = array<i64: 1152, 128>}, {transform_indices = @transform_2, window_bounds = array<i64: 1, 16, 16, 128>}, {transform_indices = @transform_3, window_bounds = array<i64: 1, 2, 128>}]} {
    %cst = arith.constant 0.000000e+00 : f32
    %0 = vector.broadcast %cst : f32 to vector<1x18x128xf32>
    %c0 = arith.constant 0 : index
    %c0_0 = arith.constant 0 : index
    %c0_1 = arith.constant 0 : index
    %1 = vector.load %arg5[%c0, %c0_0, %c0_1] : memref<18x18x128xf32, #tpu.memory_space<vmem>>, vector<1x18x128xf32>
    tpu.vector_store %arg5[%c0, %c0_0, %c0_1], %0 {strides = array<i32>} : memref<18x18x128xf32, #tpu.memory_space<vmem>>, vector<1x18x128xf32>,
    %cst_2 = arith.constant 0.000000e+00 : f32
    %2 = vector.broadcast %cst_2 : f32 to vector<1x18x128xf32>
    %c17 = arith.constant 17 : index
    %c0_3 = arith.constant 0 : index
    %c0_4 = arith.constant 0 : index
    %3 = vector.load %arg5[%c17, %c0_3, %c0_4] : memref<18x18x128xf32, #tpu.memory_space<vmem>>, vector<1x18x128xf32>
    tpu.vector_store %arg5[%c17, %c0_3, %c0_4], %2 {strides = array<i32>} : memref<18x18x128xf32, #tpu.memory_space<vmem>>, vector<1x18x128xf32>,
    %cst_5 = arith.constant 0.000000e+00 : f32
    %4 = vector.broadcast %cst_5 : f32 to vector<16x1x128xf32>
    %c1 = arith.constant 1 : index
    %c0_6 = arith.constant 0 : index
    %c0_7 = arith.constant 0 : index
    %5 = vector.load %arg5[%c1, %c0_6, %c0_7] : memref<18x18x128xf32, #tpu.memory_space<vmem>>, vector<16x1x128xf32>
    tpu.vector_store %arg5[%c1, %c0_6, %c0_7], %4 {strides = array<i32>} : memref<18x18x128xf32, #tpu.memory_space<vmem>>, vector<16x1x128xf32>,
    %cst_8 = arith.constant 0.000000e+00 : f32
    %6 = vector.broadcast %cst_8 : f32 to vector<16x1x128xf32>
    %c1_9 = arith.constant 1 : index
    %c17_10 = arith.constant 17 : index
    %c0_11 = arith.constant 0 : index
    %7 = vector.load %arg5[%c1_9, %c17_10, %c0_11] : memref<18x18x128xf32, #tpu.memory_space<vmem>>, vector<16x1x128xf32>
    tpu.vector_store %arg5[%c1_9, %c17_10, %c0_11], %6 {strides = array<i32>} : memref<18x18x128xf32, #tpu.memory_space<vmem>>, vector<16x1x128xf32>,
    %c0_12 = arith.constant 0 : index
    %c0_13 = arith.constant 0 : index
    %c0_14 = arith.constant 0 : index
    %c0_15 = arith.constant 0 : index
    %8 = vector.load %arg1[%c0_12, %c0_13, %c0_14, %c0_15] : memref<1x16x16x128xf32, #tpu.memory_space<vmem>>, vector<1x16x16x128xf32>
    %9 = vector.shape_cast %8 : vector<1x16x16x128xf32> to vector<16x16x128xf32>
    %c1_16 = arith.constant 1 : index
    %c1_17 = arith.constant 1 : index
    %c0_18 = arith.constant 0 : index
    %10 = vector.load %arg5[%c1_16, %c1_17, %c0_18] : memref<18x18x128xf32, #tpu.memory_space<vmem>>, vector<16x16x128xf32>
    tpu.vector_store %arg5[%c1_16, %c1_17, %c0_18], %9 {strides = array<i32>} : memref<18x18x128xf32, #tpu.memory_space<vmem>>, vector<16x16x128xf32>,
    %c0_19 = arith.constant 0 : index
    %c0_20 = arith.constant 0 : index
    %c0_21 = arith.constant 0 : index
    %11 = vector.load %arg5[%c0_19, %c0_20, %c0_21] : memref<18x18x128xf32, #tpu.memory_space<vmem>>, vector<18x18x128xf32>
    %12 = vector.extract_strided_slice %11 {offsets = [0, 0, 0], sizes = [16, 16, 128], strides = [1, 1, 1]} : vector<18x18x128xf32> to vector<16x16x128xf32>
    %13 = vector.shape_cast %12 : vector<16x16x128xf32> to vector<256x128xf32>
    %14 = vector.extract_strided_slice %11 {offsets = [0, 1, 0], sizes = [16, 16, 128], strides = [1, 1, 1]} : vector<18x18x128xf32> to vector<16x16x128xf32>
    %15 = vector.shape_cast %14 : vector<16x16x128xf32> to vector<256x128xf32>
    %16 = vector.extract_strided_slice %11 {offsets = [0, 2, 0], sizes = [16, 16, 128], strides = [1, 1, 1]} : vector<18x18x128xf32> to vector<16x16x128xf32>
    %17 = vector.shape_cast %16 : vector<16x16x128xf32> to vector<256x128xf32>
    %18 = vector.extract_strided_slice %11 {offsets = [1, 0, 0], sizes = [16, 16, 128], strides = [1, 1, 1]} : vector<18x18x128xf32> to vector<16x16x128xf32>
    %19 = vector.shape_cast %18 : vector<16x16x128xf32> to vector<256x128xf32>
    %20 = vector.extract_strided_slice %11 {offsets = [1, 1, 0], sizes = [16, 16, 128], strides = [1, 1, 1]} : vector<18x18x128xf32> to vector<16x16x128xf32>
    %21 = vector.shape_cast %20 : vector<16x16x128xf32> to vector<256x128xf32>
    %22 = vector.extract_strided_slice %11 {offsets = [1, 2, 0], sizes = [16, 16, 128], strides = [1, 1, 1]} : vector<18x18x128xf32> to vector<16x16x128xf32>
    %23 = vector.shape_cast %22 : vector<16x16x128xf32> to vector<256x128xf32>
    %24 = vector.extract_strided_slice %11 {offsets = [2, 0, 0], sizes = [16, 16, 128], strides = [1, 1, 1]} : vector<18x18x128xf32> to vector<16x16x128xf32>
    %25 = vector.shape_cast %24 : vector<16x16x128xf32> to vector<256x128xf32>
    %26 = vector.extract_strided_slice %11 {offsets = [2, 1, 0], sizes = [16, 16, 128], strides = [1, 1, 1]} : vector<18x18x128xf32> to vector<16x16x128xf32>
    %27 = vector.shape_cast %26 : vector<16x16x128xf32> to vector<256x128xf32>
    %28 = vector.extract_strided_slice %11 {offsets = [2, 2, 0], sizes = [16, 16, 128], strides = [1, 1, 1]} : vector<18x18x128xf32> to vector<16x16x128xf32>
    %29 = vector.shape_cast %28 : vector<16x16x128xf32> to vector<256x128xf32>
    %30 = tpu.concatenate %13, %15, %17, %19, %21, %23, %25, %27, %29 in 1 : vector<256x128xf32>, vector<256x128xf32>, vector<256x128xf32>, vector<256x128xf32>, vector<256x128xf32>, vector<256x128xf32>, vector<256x128xf32>, vector<256x128xf32>, vector<256x128xf32> -> vector<256x1152xf32>
    %c0_22 = arith.constant 0 : index
    %c0_23 = arith.constant 0 : index
    %31 = vector.load %arg2[%c0_22, %c0_23] : memref<1152x128xf32, #tpu.memory_space<vmem>>, vector<1152x128xf32>
    %cst_24 = arith.constant dense<0.000000e+00> : vector<256x128xf32>
    %32 = tpu.matmul %30, %31, %cst_24 {dimension_numbers = #tpu.dot_dimension_numbers<[1], [0], [0], [1], [0, 0, 1, 1], [], []>} : vector<256x1152xf32>, vector<1152x128xf32>, vector<256x128xf32> -> vector<256x128xf32>
    %cst_25 = arith.constant dense<0.000000e+00> : vector<128xf32>
    %33 = vector.multi_reduction <add>, %32, %cst_25 [0] : vector<256x128xf32> to vector<128xf32>
    %34 = vector.shape_cast %33 : vector<128xf32> to vector<1x128xf32>
    %cst_26 = arith.constant 3.906250e-03 : f32
    %35 = vector.broadcast %cst_26 : f32 to vector<1x128xf32>
    %36 = arith.mulf %34, %35 : vector<1x128xf32>
    %37 = vector.broadcast %36 : vector<1x128xf32> to vector<256x128xf32>
    %38 = arith.subf %32, %37 : vector<256x128xf32>
    %39 = arith.mulf %38, %38 : vector<256x128xf32>
    %cst_27 = arith.constant dense<0.000000e+00> : vector<128xf32>
    %40 = vector.multi_reduction <add>, %39, %cst_27 [0] : vector<256x128xf32> to vector<128xf32>
    %41 = vector.shape_cast %40 : vector<128xf32> to vector<1x128xf32>
    %42 = vector.shape_cast %32 : vector<256x128xf32> to vector<1x16x16x128xf32>
    %c0_28 = arith.constant 0 : index
    %c0_29 = arith.constant 0 : index
    %c0_30 = arith.constant 0 : index
    %c0_31 = arith.constant 0 : index
    %43 = vector.load %arg3[%c0_28, %c0_29, %c0_30, %c0_31] : memref<1x16x16x128xf32, #tpu.memory_space<vmem>>, vector<1x16x16x128xf32>
    tpu.vector_store %arg3[%c0_28, %c0_29, %c0_30, %c0_31], %42 {strides = array<i32>} : memref<1x16x16x128xf32, #tpu.memory_space<vmem>>, vector<1x16x16x128xf32>,
    %44 = tpu.concatenate %34, %41 in 0 : vector<1x128xf32>, vector<1x128xf32> -> vector<2x128xf32>
    %45 = vector.shape_cast %44 : vector<2x128xf32> to vector<1x2x128xf32>
    %c0_32 = arith.constant 0 : index
    %c0_33 = arith.constant 0 : index
    %c0_34 = arith.constant 0 : index
    %46 = vector.load %arg4[%c0_32, %c0_33, %c0_34] : memref<1x2x128xf32, #tpu.memory_space<vmem>>, vector<1x2x128xf32>
    tpu.vector_store %arg4[%c0_32, %c0_33, %c0_34], %45 {strides = array<i32>} : memref<1x2x128xf32, #tpu.memory_space<vmem>>, vector<1x2x128xf32>,
    return
  }
  func.func @transform_0(%arg0: i32) -> (i32, i32, i32, i32) {
    %c0_i32 = arith.constant 0 : i32
    %c0_i32_0 = arith.constant 0 : i32
    %c0_i32_1 = arith.constant 0 : i32
    %c0_i32_2 = arith.constant 0 : i32
    return %arg0, %c0_i32, %c0_i32_0, %c0_i32_1 : i32, i32, i32, i32
  }
  func.func @transform_1(%arg0: i32) -> (i32, i32) {
    %c0_i32 = arith.constant 0 : i32
    %c0_i32_0 = arith.constant 0 : i32
    %c0_i32_1 = arith.constant 0 : i32
    return %c0_i32, %c0_i32_0 : i32, i32
  }
  func.func @transform_2(%arg0: i32) -> (i32, i32, i32, i32) {
    %c0_i32 = arith.constant 0 : i32
    %c0_i32_0 = arith.constant 0 : i32
    %c0_i32_1 = arith.constant 0 : i32
    %c0_i32_2 = arith.constant 0 : i32
    return %arg0, %c0_i32, %c0_i32_0, %c0_i32_1 : i32, i32, i32, i32
  }
  func.func @transform_3(%arg0: i32) -> (i32, i32, i32) {
    %c0_i32 = arith.constant 0 : i32
    %c0_i32_0 = arith.constant 0 : i32
    %c0_i32_1 = arith.constant 0 : i32
    return %arg0, %c0_i32, %c0_i32_0 : i32, i32, i32
  }
}

module attributes {stable_mosaic.version = 11 : i64} {
  func.func @kernel(%arg0: i32, %arg1: memref<1x16x16x128xf32, #tpu.memory_space<vmem>>, %arg2: memref<1x128xf32, #tpu.memory_space<vmem>>, %arg3: memref<1x128xf32, #tpu.memory_space<vmem>>, %arg4: memref<1152x128xf32, #tpu.memory_space<vmem>>, %arg5: memref<1x16x16x128xf32, #tpu.memory_space<vmem>>, %arg6: memref<1x2x128xf32, #tpu.memory_space<vmem>>, %arg7: memref<18x18x128xf32, #tpu.memory_space<vmem>>) attributes {dimension_semantics = [#tpu.dimension_semantics<parallel>], iteration_bounds = array<i64: 2>, scalar_prefetch = 0 : i64, scratch_operands = 1 : i64, tpu.core_type = #tpu.core_type<tc>, window_params = [{transform_indices = @transform_0, window_bounds = array<i64: 1, 16, 16, 128>}, {pipeline_mode = #tpu.pipeline_mode<synchronous>, transform_indices = @transform_1, window_bounds = array<i64: 1, 128>}, {pipeline_mode = #tpu.pipeline_mode<synchronous>, transform_indices = @transform_2, window_bounds = array<i64: 1, 128>}, {pipeline_mode = #tpu.pipeline_mode<synchronous>, transform_indices = @transform_3, window_bounds = array<i64: 1152, 128>}, {transform_indices = @transform_4, window_bounds = array<i64: 1, 16, 16, 128>}, {transform_indices = @transform_5, window_bounds = array<i64: 1, 2, 128>}]} {
    %cst = arith.constant 0.000000e+00 : f32
    %0 = vector.broadcast %cst : f32 to vector<1x18x128xf32>
    %c0 = arith.constant 0 : index
    %c0_0 = arith.constant 0 : index
    %c0_1 = arith.constant 0 : index
    %1 = vector.load %arg7[%c0, %c0_0, %c0_1] : memref<18x18x128xf32, #tpu.memory_space<vmem>>, vector<1x18x128xf32>
    tpu.vector_store %arg7[%c0, %c0_0, %c0_1], %0 {strides = array<i32>} : memref<18x18x128xf32, #tpu.memory_space<vmem>>, vector<1x18x128xf32>,
    %cst_2 = arith.constant 0.000000e+00 : f32
    %2 = vector.broadcast %cst_2 : f32 to vector<1x18x128xf32>
    %c17 = arith.constant 17 : index
    %c0_3 = arith.constant 0 : index
    %c0_4 = arith.constant 0 : index
    %3 = vector.load %arg7[%c17, %c0_3, %c0_4] : memref<18x18x128xf32, #tpu.memory_space<vmem>>, vector<1x18x128xf32>
    tpu.vector_store %arg7[%c17, %c0_3, %c0_4], %2 {strides = array<i32>} : memref<18x18x128xf32, #tpu.memory_space<vmem>>, vector<1x18x128xf32>,
    %cst_5 = arith.constant 0.000000e+00 : f32
    %4 = vector.broadcast %cst_5 : f32 to vector<16x1x128xf32>
    %c1 = arith.constant 1 : index
    %c0_6 = arith.constant 0 : index
    %c0_7 = arith.constant 0 : index
    %5 = vector.load %arg7[%c1, %c0_6, %c0_7] : memref<18x18x128xf32, #tpu.memory_space<vmem>>, vector<16x1x128xf32>
    tpu.vector_store %arg7[%c1, %c0_6, %c0_7], %4 {strides = array<i32>} : memref<18x18x128xf32, #tpu.memory_space<vmem>>, vector<16x1x128xf32>,
    %cst_8 = arith.constant 0.000000e+00 : f32
    %6 = vector.broadcast %cst_8 : f32 to vector<16x1x128xf32>
    %c1_9 = arith.constant 1 : index
    %c17_10 = arith.constant 17 : index
    %c0_11 = arith.constant 0 : index
    %7 = vector.load %arg7[%c1_9, %c17_10, %c0_11] : memref<18x18x128xf32, #tpu.memory_space<vmem>>, vector<16x1x128xf32>
    tpu.vector_store %arg7[%c1_9, %c17_10, %c0_11], %6 {strides = array<i32>} : memref<18x18x128xf32, #tpu.memory_space<vmem>>, vector<16x1x128xf32>,
    %c0_12 = arith.constant 0 : index
    %c0_13 = arith.constant 0 : index
    %c0_14 = arith.constant 0 : index
    %c0_15 = arith.constant 0 : index
    %8 = vector.load %arg1[%c0_12, %c0_13, %c0_14, %c0_15] : memref<1x16x16x128xf32, #tpu.memory_space<vmem>>, vector<1x16x16x128xf32>
    %9 = vector.shape_cast %8 : vector<1x16x16x128xf32> to vector<16x16x128xf32>
    %c0_16 = arith.constant 0 : index
    %c0_17 = arith.constant 0 : index
    %10 = vector.load %arg2[%c0_16, %c0_17] : memref<1x128xf32, #tpu.memory_space<vmem>>, vector<1x128xf32>
    %11 = vector.shape_cast %10 : vector<1x128xf32> to vector<1x1x128xf32>
    %12 = vector.broadcast %11 : vector<1x1x128xf32> to vector<16x16x128xf32>
    %13 = arith.mulf %9, %12 : vector<16x16x128xf32>
    %c0_18 = arith.constant 0 : index
    %c0_19 = arith.constant 0 : index
    %14 = vector.load %arg3[%c0_18, %c0_19] : memref<1x128xf32, #tpu.memory_space<vmem>>, vector<1x128xf32>
    %15 = vector.shape_cast %14 : vector<1x128xf32> to vector<1x1x128xf32>
    %16 = vector.broadcast %15 : vector<1x1x128xf32> to vector<16x16x128xf32>
    %17 = arith.addf %13, %16 : vector<16x16x128xf32>
    %cst_20 = arith.constant 0.000000e+00 : f32
    %18 = vector.broadcast %cst_20 : f32 to vector<16x16x128xf32>
    %19 = arith.maximumf %17, %18 : vector<16x16x128xf32>
    %c1_21 = arith.constant 1 : index
    %c1_22 = arith.constant 1 : index
    %c0_23 = arith.constant 0 : index
    %20 = vector.load %arg7[%c1_21, %c1_22, %c0_23] : memref<18x18x128xf32, #tpu.memory_space<vmem>>, vector<16x16x128xf32>
    tpu.vector_store %arg7[%c1_21, %c1_22, %c0_23], %19 {strides = array<i32>} : memref<18x18x128xf32, #tpu.memory_space<vmem>>, vector<16x16x128xf32>,
    %c0_24 = arith.constant 0 : index
    %c0_25 = arith.constant 0 : index
    %c0_26 = arith.constant 0 : index
    %21 = vector.load %arg7[%c0_24, %c0_25, %c0_26] : memref<18x18x128xf32, #tpu.memory_space<vmem>>, vector<18x18x128xf32>
    %22 = vector.extract_strided_slice %21 {offsets = [0, 0, 0], sizes = [16, 16, 128], strides = [1, 1, 1]} : vector<18x18x128xf32> to vector<16x16x128xf32>
    %23 = vector.shape_cast %22 : vector<16x16x128xf32> to vector<256x128xf32>
    %24 = vector.extract_strided_slice %21 {offsets = [0, 1, 0], sizes = [16, 16, 128], strides = [1, 1, 1]} : vector<18x18x128xf32> to vector<16x16x128xf32>
    %25 = vector.shape_cast %24 : vector<16x16x128xf32> to vector<256x128xf32>
    %26 = vector.extract_strided_slice %21 {offsets = [0, 2, 0], sizes = [16, 16, 128], strides = [1, 1, 1]} : vector<18x18x128xf32> to vector<16x16x128xf32>
    %27 = vector.shape_cast %26 : vector<16x16x128xf32> to vector<256x128xf32>
    %28 = vector.extract_strided_slice %21 {offsets = [1, 0, 0], sizes = [16, 16, 128], strides = [1, 1, 1]} : vector<18x18x128xf32> to vector<16x16x128xf32>
    %29 = vector.shape_cast %28 : vector<16x16x128xf32> to vector<256x128xf32>
    %30 = vector.extract_strided_slice %21 {offsets = [1, 1, 0], sizes = [16, 16, 128], strides = [1, 1, 1]} : vector<18x18x128xf32> to vector<16x16x128xf32>
    %31 = vector.shape_cast %30 : vector<16x16x128xf32> to vector<256x128xf32>
    %32 = vector.extract_strided_slice %21 {offsets = [1, 2, 0], sizes = [16, 16, 128], strides = [1, 1, 1]} : vector<18x18x128xf32> to vector<16x16x128xf32>
    %33 = vector.shape_cast %32 : vector<16x16x128xf32> to vector<256x128xf32>
    %34 = vector.extract_strided_slice %21 {offsets = [2, 0, 0], sizes = [16, 16, 128], strides = [1, 1, 1]} : vector<18x18x128xf32> to vector<16x16x128xf32>
    %35 = vector.shape_cast %34 : vector<16x16x128xf32> to vector<256x128xf32>
    %36 = vector.extract_strided_slice %21 {offsets = [2, 1, 0], sizes = [16, 16, 128], strides = [1, 1, 1]} : vector<18x18x128xf32> to vector<16x16x128xf32>
    %37 = vector.shape_cast %36 : vector<16x16x128xf32> to vector<256x128xf32>
    %38 = vector.extract_strided_slice %21 {offsets = [2, 2, 0], sizes = [16, 16, 128], strides = [1, 1, 1]} : vector<18x18x128xf32> to vector<16x16x128xf32>
    %39 = vector.shape_cast %38 : vector<16x16x128xf32> to vector<256x128xf32>
    %40 = tpu.concatenate %23, %25, %27, %29, %31, %33, %35, %37, %39 in 1 : vector<256x128xf32>, vector<256x128xf32>, vector<256x128xf32>, vector<256x128xf32>, vector<256x128xf32>, vector<256x128xf32>, vector<256x128xf32>, vector<256x128xf32>, vector<256x128xf32> -> vector<256x1152xf32>
    %c0_27 = arith.constant 0 : index
    %c0_28 = arith.constant 0 : index
    %41 = vector.load %arg4[%c0_27, %c0_28] : memref<1152x128xf32, #tpu.memory_space<vmem>>, vector<1152x128xf32>
    %cst_29 = arith.constant dense<0.000000e+00> : vector<256x128xf32>
    %42 = tpu.matmul %40, %41, %cst_29 {dimension_numbers = #tpu.dot_dimension_numbers<[1], [0], [0], [1], [0, 0, 1, 1], [], []>} : vector<256x1152xf32>, vector<1152x128xf32>, vector<256x128xf32> -> vector<256x128xf32>
    %cst_30 = arith.constant dense<0.000000e+00> : vector<128xf32>
    %43 = vector.multi_reduction <add>, %42, %cst_30 [0] : vector<256x128xf32> to vector<128xf32>
    %44 = vector.shape_cast %43 : vector<128xf32> to vector<1x128xf32>
    %cst_31 = arith.constant 3.906250e-03 : f32
    %45 = vector.broadcast %cst_31 : f32 to vector<1x128xf32>
    %46 = arith.mulf %44, %45 : vector<1x128xf32>
    %47 = vector.broadcast %46 : vector<1x128xf32> to vector<256x128xf32>
    %48 = arith.subf %42, %47 : vector<256x128xf32>
    %49 = arith.mulf %48, %48 : vector<256x128xf32>
    %cst_32 = arith.constant dense<0.000000e+00> : vector<128xf32>
    %50 = vector.multi_reduction <add>, %49, %cst_32 [0] : vector<256x128xf32> to vector<128xf32>
    %51 = vector.shape_cast %50 : vector<128xf32> to vector<1x128xf32>
    %52 = vector.shape_cast %42 : vector<256x128xf32> to vector<1x16x16x128xf32>
    %c0_33 = arith.constant 0 : index
    %c0_34 = arith.constant 0 : index
    %c0_35 = arith.constant 0 : index
    %c0_36 = arith.constant 0 : index
    %53 = vector.load %arg5[%c0_33, %c0_34, %c0_35, %c0_36] : memref<1x16x16x128xf32, #tpu.memory_space<vmem>>, vector<1x16x16x128xf32>
    tpu.vector_store %arg5[%c0_33, %c0_34, %c0_35, %c0_36], %52 {strides = array<i32>} : memref<1x16x16x128xf32, #tpu.memory_space<vmem>>, vector<1x16x16x128xf32>,
    %54 = tpu.concatenate %44, %51 in 0 : vector<1x128xf32>, vector<1x128xf32> -> vector<2x128xf32>
    %55 = vector.shape_cast %54 : vector<2x128xf32> to vector<1x2x128xf32>
    %c0_37 = arith.constant 0 : index
    %c0_38 = arith.constant 0 : index
    %c0_39 = arith.constant 0 : index
    %56 = vector.load %arg6[%c0_37, %c0_38, %c0_39] : memref<1x2x128xf32, #tpu.memory_space<vmem>>, vector<1x2x128xf32>
    tpu.vector_store %arg6[%c0_37, %c0_38, %c0_39], %55 {strides = array<i32>} : memref<1x2x128xf32, #tpu.memory_space<vmem>>, vector<1x2x128xf32>,
    return
  }
  func.func @transform_0(%arg0: i32) -> (i32, i32, i32, i32) {
    %c0_i32 = arith.constant 0 : i32
    %c0_i32_0 = arith.constant 0 : i32
    %c0_i32_1 = arith.constant 0 : i32
    %c0_i32_2 = arith.constant 0 : i32
    return %arg0, %c0_i32, %c0_i32_0, %c0_i32_1 : i32, i32, i32, i32
  }
  func.func @transform_1(%arg0: i32) -> (i32, i32) {
    %c0_i32 = arith.constant 0 : i32
    %c0_i32_0 = arith.constant 0 : i32
    %c0_i32_1 = arith.constant 0 : i32
    return %c0_i32, %c0_i32_0 : i32, i32
  }
  func.func @transform_2(%arg0: i32) -> (i32, i32) {
    %c0_i32 = arith.constant 0 : i32
    %c0_i32_0 = arith.constant 0 : i32
    %c0_i32_1 = arith.constant 0 : i32
    return %c0_i32, %c0_i32_0 : i32, i32
  }
  func.func @transform_3(%arg0: i32) -> (i32, i32) {
    %c0_i32 = arith.constant 0 : i32
    %c0_i32_0 = arith.constant 0 : i32
    %c0_i32_1 = arith.constant 0 : i32
    return %c0_i32, %c0_i32_0 : i32, i32
  }
  func.func @transform_4(%arg0: i32) -> (i32, i32, i32, i32) {
    %c0_i32 = arith.constant 0 : i32
    %c0_i32_0 = arith.constant 0 : i32
    %c0_i32_1 = arith.constant 0 : i32
    %c0_i32_2 = arith.constant 0 : i32
    return %arg0, %c0_i32, %c0_i32_0, %c0_i32_1 : i32, i32, i32, i32
  }
  func.func @transform_5(%arg0: i32) -> (i32, i32, i32) {
    %c0_i32 = arith.constant 0 : i32
    %c0_i32_0 = arith.constant 0 : i32
    %c0_i32_1 = arith.constant 0 : i32
    return %arg0, %c0_i32, %c0_i32_0 : i32, i32, i32
  }
}

module attributes {stable_mosaic.version = 11 : i64} {
  func.func @_bn_relu_kernel(%arg0: i32, %arg1: memref<1x16x16x128xf32, #tpu.memory_space<vmem>>, %arg2: memref<1x128xf32, #tpu.memory_space<vmem>>, %arg3: memref<1x128xf32, #tpu.memory_space<vmem>>, %arg4: memref<1x16x16x128xf32, #tpu.memory_space<vmem>>) attributes {dimension_semantics = [#tpu.dimension_semantics<parallel>], iteration_bounds = array<i64: 2>, scalar_prefetch = 0 : i64, scratch_operands = 0 : i64, tpu.core_type = #tpu.core_type<tc>, window_params = [{transform_indices = @transform_0, window_bounds = array<i64: 1, 16, 16, 128>}, {pipeline_mode = #tpu.pipeline_mode<synchronous>, transform_indices = @transform_1, window_bounds = array<i64: 1, 128>}, {pipeline_mode = #tpu.pipeline_mode<synchronous>, transform_indices = @transform_2, window_bounds = array<i64: 1, 128>}, {transform_indices = @transform_3, window_bounds = array<i64: 1, 16, 16, 128>}]} {
    %c0 = arith.constant 0 : index
    %c0_0 = arith.constant 0 : index
    %c0_1 = arith.constant 0 : index
    %c0_2 = arith.constant 0 : index
    %0 = vector.load %arg1[%c0, %c0_0, %c0_1, %c0_2] : memref<1x16x16x128xf32, #tpu.memory_space<vmem>>, vector<1x16x16x128xf32>
    %c0_3 = arith.constant 0 : index
    %c0_4 = arith.constant 0 : index
    %1 = vector.load %arg2[%c0_3, %c0_4] : memref<1x128xf32, #tpu.memory_space<vmem>>, vector<1x128xf32>
    %2 = vector.shape_cast %1 : vector<1x128xf32> to vector<1x1x1x128xf32>
    %3 = vector.broadcast %2 : vector<1x1x1x128xf32> to vector<1x16x16x128xf32>
    %4 = arith.mulf %0, %3 : vector<1x16x16x128xf32>
    %c0_5 = arith.constant 0 : index
    %c0_6 = arith.constant 0 : index
    %5 = vector.load %arg3[%c0_5, %c0_6] : memref<1x128xf32, #tpu.memory_space<vmem>>, vector<1x128xf32>
    %6 = vector.shape_cast %5 : vector<1x128xf32> to vector<1x1x1x128xf32>
    %7 = vector.broadcast %6 : vector<1x1x1x128xf32> to vector<1x16x16x128xf32>
    %8 = arith.addf %4, %7 : vector<1x16x16x128xf32>
    %cst = arith.constant 0.000000e+00 : f32
    %9 = vector.broadcast %cst : f32 to vector<1x16x16x128xf32>
    %10 = arith.maximumf %8, %9 : vector<1x16x16x128xf32>
    %c0_7 = arith.constant 0 : index
    %c0_8 = arith.constant 0 : index
    %c0_9 = arith.constant 0 : index
    %c0_10 = arith.constant 0 : index
    %11 = vector.load %arg4[%c0_7, %c0_8, %c0_9, %c0_10] : memref<1x16x16x128xf32, #tpu.memory_space<vmem>>, vector<1x16x16x128xf32>
    tpu.vector_store %arg4[%c0_7, %c0_8, %c0_9, %c0_10], %10 {strides = array<i32>} : memref<1x16x16x128xf32, #tpu.memory_space<vmem>>, vector<1x16x16x128xf32>,
    return
  }
  func.func @transform_0(%arg0: i32) -> (i32, i32, i32, i32) {
    %c0_i32 = arith.constant 0 : i32
    %c0_i32_0 = arith.constant 0 : i32
    %c0_i32_1 = arith.constant 0 : i32
    %c0_i32_2 = arith.constant 0 : i32
    return %arg0, %c0_i32, %c0_i32_0, %c0_i32_1 : i32, i32, i32, i32
  }
  func.func @transform_1(%arg0: i32) -> (i32, i32) {
    %c0_i32 = arith.constant 0 : i32
    %c0_i32_0 = arith.constant 0 : i32
    %c0_i32_1 = arith.constant 0 : i32
    return %c0_i32, %c0_i32_0 : i32, i32
  }
  func.func @transform_2(%arg0: i32) -> (i32, i32) {
    %c0_i32 = arith.constant 0 : i32
    %c0_i32_0 = arith.constant 0 : i32
    %c0_i32_1 = arith.constant 0 : i32
    return %c0_i32, %c0_i32_0 : i32, i32
  }
  func.func @transform_3(%arg0: i32) -> (i32, i32, i32, i32) {
    %c0_i32 = arith.constant 0 : i32
    %c0_i32_0 = arith.constant 0 : i32
    %c0_i32_1 = arith.constant 0 : i32
    %c0_i32_2 = arith.constant 0 : i32
    return %arg0, %c0_i32, %c0_i32_0, %c0_i32_1 : i32, i32, i32, i32
  }
}

</mosaic_0001>

<bundles_post_ra>
// kernel: double_conv.5
= control target key start
LH: loop header
LB: loop body
LE: loop exit
PB: predicated region body
PF: predicated region fallthrough
CT: control target
= control target key end

     0   :  { %s445_s12 = smov 0   ;;  %s604_s0 = inlined_call_operand.vmem [shape: f32[2,16,16,128], index: 0, kind: input, shape index: {}]   ;;  %s605_s1 = inlined_call_operand.vmem [shape: f32[1,128], index: 1, kind: input, shape index: {}]   ;;  %s606_s2 = inlined_call_operand.vmem [shape: f32[1,128], index: 2, kind: input, shape index: {}]   ;;  %s607_s3 = inlined_call_operand.vmem [shape: f32[2,16,16,128], index: 3, kind: output, shape index: {}]  }
   0x1 LB: > { %s394_s13 = sadd.s32 4294967295, %s423_s12   ;;  %p398_p0 = scmp.ge.s32.totalorder %s423_s12, 1  ;;  %s423_s12 = sphi %s445_s12, %s13_s12  }
   0x2   : > { %p137_p1 = scmp.lt.s32.totalorder %s423_s12, 3 }
   0x4   : > { %p138_p2 = pnand %p398_p0, %p137_p1 }
   0x5   : > { %p161_p3 = scmp.lt.s32.totalorder (!%p138_p2), %s394_s13, 1 }
   0x6   : > { %141 = sbr.rel (%p138_p2) target bundleno = 53 (0x35), region = 32 }
   0xb   : > { %s609_s13 = smov (!%p161_p3, %s394_s13), 1  ;;  %v456_v0 = vld [vmem:[%s605_s1] ss:$0 sm:$0xff] }
   0xc   : > { %s405_s16 = sshll.u32 %s609_s13, 8  ;;  %v466_v1 = vld [vmem:[%s606_s2] ss:$0 sm:$0xff] }
   0xd   : > { %s461_s19 = scalar_lea.vmem %s604_s0, %s405_s16  ;;  %s489_s24 = scalar_lea.vmem %s607_s3, %s405_s16 }
   0xe   : > { %v171_v2 = vld [vmem:[%s461_s19] sm:$0xff]  ;;  %v172_v3 = vld [vmem:[%s461_s19 + $0x8] sm:$0xff]  ;;  %v173_v4 = vld [vmem:[%s461_s19 + $0x10] sm:$0xff] }
   0xf   : > { %v207_v5 = vmul.f32 %v456_v0, %v171_v2  ;;  %v208_v6 = vmul.f32 %v456_v0, %v172_v3  ;;  %v209_v7 = vmul.f32 %v456_v0, %v173_v4  ;;  %v174_v8 = vld [vmem:[%s461_s19 + $0x18] sm:$0xff]  ;;  %v175_v9 = vld [vmem:[%s461_s19 + $0x20] sm:$0xff]  ;;  %v176_v10 = vld [vmem:[%s461_s19 + $0x28] sm:$0xff] }
  0x10   : > { %v210_v11 = vmul.f32 %v456_v0, %v174_v8  ;;  %v211_v12 = vmul.f32 %v456_v0, %v175_v9  ;;  %v212_v13 = vmul.f32 %v456_v0, %v176_v10  ;;  %v177_v14 = vld [vmem:[%s461_s19 + $0x30] sm:$0xff]  ;;  %v178_v15 = vld [vmem:[%s461_s19 + $0x38] sm:$0xff]  ;;  %v179_v24 = vld [vmem:[%s461_s19 + $0x40] sm:$0xff] }
  0x11   : > { %v243_v16 = vadd.f32 %v466_v1, %v207_v5  ;;  %v244_v17 = vadd.f32 %v466_v1, %v208_v6  ;;  %v245_v18 = vadd.f32 %v466_v1, %v209_v7  ;;  %v213_v19 = vmul.f32 %v456_v0, %v177_v14  ;;  %v180_v25 = vld [vmem:[%s461_s19 + $0x48] sm:$0xff]  ;;  %v181_v26 = vld [vmem:[%s461_s19 + $0x50] sm:$0xff]  ;;  %v182_v31 = vld [vmem:[%s461_s19 + $0x58] sm:$0xff] }
  0x12   : > { %v246_v20 = vadd.f32 %v466_v1, %v210_v11  ;;  %v247_v21 = vadd.f32 %v466_v1, %v211_v12  ;;  %v248_v22 = vadd.f32 %v466_v1, %v212_v13  ;;  %v214_v23 = vmul.f32 %v456_v0, %v178_v15  ;;  %v183_v32 = vld [vmem:[%s461_s19 + $0x60] sm:$0xff]  ;;  %v184_v33 = vld [vmem:[%s461_s19 + $0x68] sm:$0xff]  ;;  %v185_v37 = vld [vmem:[%s461_s19 + $0x70] sm:$0xff] }
  0x13   : > { %v275_v27 = vmax.f32 %v243_v16, 0.0  ;;  %v276_v28 = vmax.f32 %v244_v17, 0.0  ;;  %v277_v29 = vmax.f32 %v245_v18, 0.0  ;;  %v249_v30 = vadd.f32 %v466_v1, %v213_v19  ;;  %v186_v42 = vld [vmem:[%s461_s19 + $0x78] sm:$0xff]  ;;  %v187_v54 = vld [vmem:[%s461_s19 + $0x80] sm:$0xff]  ;;  %v188_v55 = vld [vmem:[%s461_s19 + $0x88] sm:$0xff] }
  0x14   : > { %v278_v34 = vmax.f32 %v246_v20, 0.0  ;;  %v279_v35 = vmax.f32 %v247_v21, 0.0  ;;  %v250_v36 = vadd.f32 %v466_v1, %v214_v23  ;;  %v280_v38 = vmax.f32 %v248_v22, 0.0  ;;  %v189_v56 = vld [vmem:[%s461_s19 + $0x90] sm:$0xff]  ;;  %v190_v59 = vld [vmem:[%s461_s19 + $0x98] sm:$0xff]  ;;  %v191_v63 = vld [vmem:[%s461_s19 + $0xa0] sm:$0xff] }
  0x15   : > { %307 = vst [vmem:[%s489_s24] sm:$0xff] %v275_v27  ;;  %v215_v39 = vmul.f32 %v456_v0, %v179_v24  ;;  %v216_v40 = vmul.f32 %v456_v0, %v180_v25  ;;  %v217_v41 = vmul.f32 %v456_v0, %v181_v26  ;;  %v281_v43 = vmax.f32 %v249_v30, 0.0  ;;  %v192_v6 = vld [vmem:[%s461_s19 + $0xa8] sm:$0xff]  ;;  %v193_v10 = vld [vmem:[%s461_s19 + $0xb0] sm:$0xff]  ;;  %v194_v14 = vld [vmem:[%s461_s19 + $0xb8] sm:$0xff] }
  0x16   : > { %308 = vst [vmem:[%s489_s24 + $0x8] sm:$0xff] %v276_v28  ;;  %v218_v44 = vmul.f32 %v456_v0, %v182_v31  ;;  %v219_v45 = vmul.f32 %v456_v0, %v183_v32  ;;  %v220_v46 = vmul.f32 %v456_v0, %v184_v33  ;;  %v221_v50 = vmul.f32 %v456_v0, %v185_v37  ;;  %v195_v18 = vld [vmem:[%s461_s19 + $0xc0] sm:$0xff]  ;;  %v196_v22 = vld [vmem:[%s461_s19 + $0xc8] sm:$0xff]  ;;  %v197_v26 = vld [vmem:[%s461_s19 + $0xd0] sm:$0xff] }
  0x17   : > { %309 = vst [vmem:[%s489_s24 + $0x10] sm:$0xff] %v277_v29  ;;  %v251_v47 = vadd.f32 %v466_v1, %v215_v39  ;;  %v252_v48 = vadd.f32 %v466_v1, %v216_v40  ;;  %v253_v49 = vadd.f32 %v466_v1, %v217_v41  ;;  %v282_v51 = vmax.f32 %v250_v36, 0.0  ;;  %v198_v30 = vld [vmem:[%s461_s19 + $0xd8] sm:$0xff] }
  0x18   : > { %310 = vst [vmem:[%s489_s24 + $0x18] sm:$0xff] %v278_v34  ;;  %v254_v52 = vadd.f32 %v466_v1, %v218_v44  ;;  %v222_v53 = vmul.f32 %v456_v0, %v186_v42  ;;  %v255_v58 = vadd.f32 %v466_v1, %v219_v45  ;;  %v256_v62 = vadd.f32 %v466_v1, %v220_v46  ;;  %v199_v34 = vld [vmem:[%s461_s19 + $0xe0] sm:$0xff]  ;;  %v201_v42 = vld [vmem:[%s461_s19 + $0xf0] sm:$0xff]  ;;  %v202_v46 = vld [vmem:[%s461_s19 + $0xf8] sm:$0xff] }
  0x19   : > { %311 = vst [vmem:[%s489_s24 + $0x20] sm:$0xff] %v279_v35  ;;  %v283_v57 = vmax.f32 %v251_v47, 0.0  ;;  %v284_v60 = vmax.f32 %v252_v48, 0.0  ;;  %v285_v61 = vmax.f32 %v253_v49, 0.0  ;;  %v257_v2 = vadd.f32 %v466_v1, %v221_v50 }
  0x1a   : > { %312 = vst [vmem:[%s489_s24 + $0x28] sm:$0xff] %v280_v38  ;;  %v223_v3 = vmul.f32 %v456_v0, %v187_v54  ;;  %v224_v4 = vmul.f32 %v456_v0, %v188_v55  ;;  %v225_v5 = vmul.f32 %v456_v0, %v189_v56  ;;  %v286_v7 = vmax.f32 %v254_v52, 0.0  ;;  %v200_v38 = vld [vmem:[%s461_s19 + $0xe8] sm:$0xff] }
  0x1b   : > { %313 = vst [vmem:[%s489_s24 + $0x30] sm:$0xff] %v281_v43  ;;  %v258_v8 = vadd.f32 %v466_v1, %v222_v53  ;;  %v226_v9 = vmul.f32 %v456_v0, %v190_v59  ;;  %v287_v11 = vmax.f32 %v255_v58, 0.0  ;;  %v227_v13 = vmul.f32 %v456_v0, %v191_v63 }
  0x1c   : > { %314 = vst [vmem:[%s489_s24 + $0x38] sm:$0xff] %v282_v51  ;;  %v259_v12 = vadd.f32 %v466_v1, %v223_v3  ;;  %v288_v15 = vmax.f32 %v256_v62, 0.0  ;;  %v260_v16 = vadd.f32 %v466_v1, %v224_v4  ;;  %v228_v17 = vmul.f32 %v456_v0, %v192_v6 }
  0x1d   : > { %315 = vst [vmem:[%s489_s24 + $0x40] sm:$0xff] %v283_v57  ;;  %v289_v19 = vmax.f32 %v257_v2, 0.0  ;;  %v261_v20 = vadd.f32 %v466_v1, %v225_v5  ;;  %v229_v21 = vmul.f32 %v456_v0, %v193_v10  ;;  %v290_v23 = vmax.f32 %v258_v8, 0.0 }
  0x1e   : > { %316 = vst [vmem:[%s489_s24 + $0x48] sm:$0xff] %v284_v60  ;;  %v262_v24 = vadd.f32 %v466_v1, %v226_v9  ;;  %v230_v25 = vmul.f32 %v456_v0, %v194_v14  ;;  %v291_v27 = vmax.f32 %v259_v12, 0.0  ;;  %v263_v28 = vadd.f32 %v466_v1, %v227_v13 }
  0x1f   : > { %317 = vst [vmem:[%s489_s24 + $0x50] sm:$0xff] %v285_v61  ;;  %v231_v29 = vmul.f32 %v456_v0, %v195_v18  ;;  %v292_v31 = vmax.f32 %v260_v16, 0.0  ;;  %v264_v32 = vadd.f32 %v466_v1, %v228_v17  ;;  %v232_v33 = vmul.f32 %v456_v0, %v196_v22 }
  0x20   : > { %318 = vst [vmem:[%s489_s24 + $0x58] sm:$0xff] %v286_v7  ;;  %v293_v35 = vmax.f32 %v261_v20, 0.0  ;;  %v265_v36 = vadd.f32 %v466_v1, %v229_v21  ;;  %v233_v37 = vmul.f32 %v456_v0, %v197_v26  ;;  %v294_v39 = vmax.f32 %v262_v24, 0.0 }
  0x21   : > { %319 = vst [vmem:[%s489_s24 + $0x60] sm:$0xff] %v287_v11  ;;  %v266_v40 = vadd.f32 %v466_v1, %v230_v25  ;;  %v234_v41 = vmul.f32 %v456_v0, %v198_v30  ;;  %v295_v43 = vmax.f32 %v263_v28, 0.0  ;;  %v267_v44 = vadd.f32 %v466_v1, %v231_v29 }
  0x22   : > { %320 = vst [vmem:[%s489_s24 + $0x68] sm:$0xff] %v288_v15  ;;  %v235_v45 = vmul.f32 %v456_v0, %v199_v34  ;;  %v296_v47 = vmax.f32 %v264_v32, 0.0  ;;  %v268_v48 = vadd.f32 %v466_v1, %v232_v33  ;;  %v236_v49 = vmul.f32 %v456_v0, %v200_v38 }
  0x23   : > { %321 = vst [vmem:[%s489_s24 + $0x70] sm:$0xff] %v289_v19  ;;  %v297_v50 = vmax.f32 %v265_v36, 0.0  ;;  %v269_v51 = vadd.f32 %v466_v1, %v233_v37  ;;  %v237_v52 = vmul.f32 %v456_v0, %v201_v42  ;;  %v298_v53 = vmax.f32 %v266_v40, 0.0 }
  0x24   : > { %322 = vst [vmem:[%s489_s24 + $0x78] sm:$0xff] %v290_v23  ;;  %v270_v54 = vadd.f32 %v466_v1, %v234_v41  ;;  %v238_v55 = vmul.f32 %v456_v0, %v202_v46  ;;  %v299_v56 = vmax.f32 %v267_v44, 0.0  ;;  %v271_v57 = vadd.f32 %v466_v1, %v235_v45 }
  0x25   : > { %323 = vst [vmem:[%s489_s24 + $0x80] sm:$0xff] %v291_v27  ;;  %v300_v58 = vmax.f32 %v268_v48, 0.0  ;;  %v272_v59 = vadd.f32 %v466_v1, %v236_v49  ;;  %v301_v60 = vmax.f32 %v269_v51, 0.0  ;;  %v273_v61 = vadd.f32 %v466_v1, %v237_v52 }
  0x26   : > { %324 = vst [vmem:[%s489_s24 + $0x88] sm:$0xff] %v292_v31  ;;  %v302_v0 = vmax.f32 %v270_v54, 0.0  ;;  %v274_v62 = vadd.f32 %v466_v1, %v238_v55  ;;  %v303_v63 = vmax.f32 %v271_v57, 0.0 }
  0x27   : > { %325 = vst [vmem:[%s489_s24 + $0x90] sm:$0xff] %v293_v35  ;;  %v304_v2 = vmax.f32 %v272_v59, 0.0  ;;  %v305_v3 = vmax.f32 %v273_v61, 0.0 }
  0x28   : > { %326 = vst [vmem:[%s489_s24 + $0x98] sm:$0xff] %v294_v39  ;;  %v306_v4 = vmax.f32 %v274_v62, 0.0 }
  0x29   : > { %327 = vst [vmem:[%s489_s24 + $0xa0] sm:$0xff] %v295_v43 }
  0x2a   : > { %328 = vst [vmem:[%s489_s24 + $0xa8] sm:$0xff] %v296_v47 }
  0x2b   : > { %329 = vst [vmem:[%s489_s24 + $0xb0] sm:$0xff] %v297_v50 }
  0x2c   : > { %330 = vst [vmem:[%s489_s24 + $0xb8] sm:$0xff] %v298_v53 }
  0x2d   : > { %331 = vst [vmem:[%s489_s24 + $0xc0] sm:$0xff] %v299_v56 }
  0x2e   : > { %332 = vst [vmem:[%s489_s24 + $0xc8] sm:$0xff] %v300_v58 }
  0x2f   : > { %333 = vst [vmem:[%s489_s24 + $0xd0] sm:$0xff] %v301_v60 }
  0x30   : > { %334 = vst [vmem:[%s489_s24 + $0xd8] sm:$0xff] %v302_v0 }
  0x31   : > { %335 = vst [vmem:[%s489_s24 + $0xe0] sm:$0xff] %v303_v63 }
  0x32   : > { %336 = vst [vmem:[%s489_s24 + $0xe8] sm:$0xff] %v304_v2 }
  0x33   : > { %337 = vst [vmem:[%s489_s24 + $0xf0] sm:$0xff] %v305_v3 }
  0x34   : > { %338 = vst [vmem:[%s489_s24 + $0xf8] sm:$0xff] %v306_v4 }
  0x35 PF: > { %s13_s12 = sadd.s32 1, %s423_s12  }
  0x36   : > { %p10_p4 = scmp.ge.s32.totalorder %s13_s12, 4  }
  0x38   :  { %12 = sbr.rel (!%p10_p4) target bundleno = 1 (0x1), region = 62 }

// kernel: double_conv.3
= control target key start
LH: loop header
LB: loop body
LE: loop exit
PB: predicated region body
PF: predicated region fallthrough
CT: control target
= control target key end

     0   :  { %s2198_s12 = smov 0   ;;  %s3771_s0 = inlined_call_operand.vmem [shape: f32[2,16,16,128], index: 0, kind: input, shape index: {}]   ;;  %s3772_s1 = inlined_call_operand.vmem [shape: f32[1152,128], index: 1, kind: input, shape index: {}]   ;;  %s3773_s2 = inlined_call_operand.vmem [shape: f32[2,16,16,128], index: 2, kind: output, shape index: {0}]   ;;  %s3774_s3 = inlined_call_operand.vmem [shape: f32[2,2,128], index: 3, kind: output, shape index: {1}]  }
   0x1 LB: > { %s2069_s13 = sadd.s32 4294967295, %s2175_s12   ;;  %p2073_p0 = scmp.ge.s32.totalorder %s2175_s12, 1  ;;  %s2175_s12 = sphi %s2198_s12, %s14_s12  }
   0x2   : > { %p140_p1 = scmp.lt.s32.totalorder %s2175_s12, 3 }
   0x4   : > { %p141_p2 = pnand %p2073_p0, %p140_p1 }
   0x6   : > { %144 = sbr.rel (%p141_p2) target bundleno = 861 (0x35d), region = 28 }
   0xb   : > { %v663_v0 = vld [vmem:[%s3772_s1 + $0x78] sm:$0xff]  ;;  %v662_v1 = vld [vmem:[%s3772_s1 + $0x70] sm:$0xff]  ;;  %p168_p3 = scmp.lt.s32.totalorder %s2069_s13, 1  ;;  %v2177_v2 = vmov 0.0   ;;  %v661_v3 = vld [vmem:[%s3772_s1 + $0x68] sm:$0xff]  ;;  %vm388_vm0 = vcmask 1046528  }
   0xc   : > { %2083 = vmatpush.msra.mxu1 %v663_v0  ;;  %2084 = vmatpush.msra.mxu2 %v663_v0  ;;  %193 = vst [vmem:[#allocation2 + $0x60] sm:$0x1] %v2177_v2  ;;  %v660_v4 = vld [vmem:[%s3772_s1 + $0x60] sm:$0xff]  ;;  %v659_v5 = vld [vmem:[%s3772_s1 + $0x58] sm:$0xff]  ;;  %v658_v7 = vld [vmem:[%s3772_s1 + $0x50] sm:$0xff]  ;;  %vm501_vm1 = vcmask 1045504  }
   0xd   : > { %2085 = vmatpush.msra.mxu3 %v663_v0  ;;  %792 = vmatpush.msra.mxu0 %v663_v0  ;;  %s3926_s13 = smov (!%p168_p3, %s2069_s13), 1  ;;  %182 = vst [vmem:[#allocation2] sm:$0xff] %v2177_v2  ;;  %v657_v8 = vld [vmem:[%s3772_s1 + $0x48] sm:$0xff]  ;;  %v656_v9 = vld [vmem:[%s3772_s1 + $0x40] sm:$0xff]  ;;  %v655_v10 = vld [vmem:[%s3772_s1 + $0x38] sm:$0xff]  ;;  %vm1980_vm2 = vcmask 1040384  }
   0xe   : > { %2086 = vmatpush.msra.mxu1 %v662_v1  ;;  %2087 = vmatpush.msra.mxu2 %v662_v1  ;;  %s2081_s22 = sshll.u32 %s3926_s13, 8  ;;  %184 = vst [vmem:[#allocation2 + $0x10] sm:$0x3] %v2177_v2  ;;  %v654_v11 = vld [vmem:[%s3772_s1 + $0x30] sm:$0xff]  ;;  %v653_v12 = vld [vmem:[%s3772_s1 + $0x28] sm:$0xff]  ;;  %v652_v13 = vld [vmem:[%s3772_s1 + $0x20] sm:$0xff] }
   0xf   : > { %2088 = vmatpush.msra.mxu3 %v662_v1  ;;  %793 = vmatpush.msra.mxu0 %v662_v1  ;;  %s2229_s25 = scalar_lea.vmem %s3771_s0, %s2081_s22  ;;  %188 = vst [vmem:[#allocation2 + $0x1a8] sm:$0x3] %v2177_v2  ;;  %v651_v14 = vld [vmem:[%s3772_s1 + $0x18] sm:$0xff]  ;;  %v650_v15 = vld [vmem:[%s3772_s1 + $0x10] sm:$0xff]  ;;  %v649_v16 = vld [vmem:[%s3772_s1 + $0x8] sm:$0xff]  ;;  %s3449_s4 = scalar_lea.vmem %s3773_s2, %s2081_s22 }
  0x10   : > { %2089 = vmatpush.msra.mxu1 %v661_v3  ;;  %2090 = vmatpush.msra.mxu2 %v661_v3  ;;  %v228_v6 = vld [vmem:[%s2229_s25 + $0x30] sm:$0xff]  ;;  %190 = vst [vmem:[#allocation2 + $0x18] sm:$0x1] %v2177_v2  ;;  %v648_v17 = vld [vmem:[%s3772_s1] sm:$0xff]  ;;  %v695_v19 = vld [vmem:[%s3772_s1 + $0x178] sm:$0xff]  ;;  %s2078_s22 = sshll.u32 %s3926_s13, 1 }
  0x11   : > { %2091 = vmatpush.msra.mxu3 %v661_v3  ;;  %794 = vmatpush.msra.mxu0 %v661_v3  ;;  %260 = vst [vmem:[#allocation2 + $0x61] sm:$0xff] %v228_v6  ;;  %v679_v20 = vld [vmem:[%s3772_s1 + $0xf8] sm:$0xff]  ;;  %v694_v22 = vld [vmem:[%s3772_s1 + $0x170] sm:$0xff]  ;;  %v693_v25 = vld [vmem:[%s3772_s1 + $0x168] sm:$0xff]  ;;  %s181_s7 = scalar_lea.vmem %s3774_s3, %s2078_s22 }
  0x12   : > { %2092 = vmatpush.msra.mxu1 %v660_v4  ;;  %2093 = vmatpush.msra.mxu2 %v660_v4  ;;  %191 = vst [vmem:[#allocation2 + $0x30] sm:$0x1] %v2177_v2  ;;  %v711_v21 = vld [vmem:[%s3772_s1 + $0x1f8] sm:$0xff]  ;;  %v678_v23 = vld [vmem:[%s3772_s1 + $0xf0] sm:$0xff]  ;;  %v677_v26 = vld [vmem:[%s3772_s1 + $0xe8] sm:$0xff] }
  0x13   : > { %2094 = vmatpush.msra.mxu3 %v660_v4  ;;  %795 = vmatpush.msra.mxu0 %v660_v4  ;;  %192 = vst [vmem:[#allocation2 + $0x48] sm:$0x1] %v2177_v2  ;;  %v710_v24 = vld [vmem:[%s3772_s1 + $0x1f0] sm:$0xff]  ;;  %v709_v27 = vld [vmem:[%s3772_s1 + $0x1e8] sm:$0xff]  ;;  %v727_v28 = vld [vmem:[%s3772_s1 + $0x278] sm:$0xff] }
  0x14   : > { %2095 = vmatpush.msra.mxu1 %v659_v5  ;;  %2096 = vmatpush.msra.mxu2 %v659_v5  ;;  %194 = vst [vmem:[#allocation2 + $0x78] sm:$0x1] %v2177_v2  ;;  %v692_v29 = vld [vmem:[%s3772_s1 + $0x160] sm:$0xff]  ;;  %v236_v31 = vld [vmem:[%s2229_s25 + $0x70] sm:$0xff]  ;;  %v691_v35 = vld [vmem:[%s3772_s1 + $0x158] sm:$0xff] }
  0x15   : > { %2097 = vmatpush.msra.mxu3 %v659_v5  ;;  %796 = vmatpush.msra.mxu0 %v659_v5  ;;  %195 = vst [vmem:[#allocation2 + $0x90] sm:$0x1] %v2177_v2  ;;  %v676_v30 = vld [vmem:[%s3772_s1 + $0xe0] sm:$0xff]  ;;  %v726_v33 = vld [vmem:[%s3772_s1 + $0x270] sm:$0xff]  ;;  %v675_v36 = vld [vmem:[%s3772_s1 + $0xd8] sm:$0xff] }
  0x16   : > { %2098 = vmatpush.msra.mxu1 %v658_v7  ;;  %2099 = vmatpush.msra.mxu2 %v658_v7  ;;  %196 = vst [vmem:[#allocation2 + $0xa8] sm:$0x1] %v2177_v2  ;;  %v708_v32 = vld [vmem:[%s3772_s1 + $0x1e0] sm:$0xff]  ;;  %v244_v34 = vld [vmem:[%s2229_s25 + $0xb0] sm:$0xff]  ;;  %v229_v37 = vld [vmem:[%s2229_s25 + $0x38] sm:$0xff] }
  0x17   : > { %2100 = vmatpush.msra.mxu3 %v658_v7  ;;  %797 = vmatpush.msra.mxu0 %v658_v7  ;;  %197 = vst [vmem:[#allocation2 + $0xc0] sm:$0x1] %v2177_v2  ;;  %v707_v38 = vld [vmem:[%s3772_s1 + $0x1d8] sm:$0xff]  ;;  %v725_v39 = vld [vmem:[%s3772_s1 + $0x268] sm:$0xff]  ;;  %v690_v41 = vld [vmem:[%s3772_s1 + $0x150] sm:$0xff] }
  0x18   : > { %2101 = vmatpush.msra.mxu1 %v657_v8  ;;  %2102 = vmatpush.msra.mxu2 %v657_v8  ;;  %198 = vst [vmem:[#allocation2 + $0xd8] sm:$0x1] %v2177_v2  ;;  %v2289_v18 = vld [vmem:[#allocation2 + $0x60] sm:$0xff]  ;;  %v237_v40 = vld [vmem:[%s2229_s25 + $0x78] sm:$0xff]  ;;  %v674_v42 = vld [vmem:[%s3772_s1 + $0xd0] sm:$0xff] }
  0x19   : > { %2103 = vmatpush.msra.mxu3 %v657_v8  ;;  %798 = vmatpush.msra.mxu0 %v657_v8  ;;  %199 = vst [vmem:[#allocation2 + $0xf0] sm:$0x1] %v2177_v2  ;;  %v245_v43 = vld [vmem:[%s2229_s25 + $0xb8] sm:$0xff]  ;;  %v706_v44 = vld [vmem:[%s3772_s1 + $0x1d0] sm:$0xff]  ;;  %v724_v45 = vld [vmem:[%s3772_s1 + $0x260] sm:$0xff] }
  0x1a   : > { %2104 = vmatpush.msra.mxu1 %v656_v9  ;;  %2105 = vmatpush.msra.mxu2 %v656_v9  ;;  %200 = vst [vmem:[#allocation2 + $0x108] sm:$0x1] %v2177_v2  ;;  %v230_v46 = vld [vmem:[%s2229_s25 + $0x40] sm:$0xff]  ;;  %v689_v47 = vld [vmem:[%s3772_s1 + $0x148] sm:$0xff]  ;;  %v723_v50 = vld [vmem:[%s3772_s1 + $0x258] sm:$0xff] }
  0x1b   : > { %2106 = vmatpush.msra.mxu3 %v656_v9  ;;  %799 = vmatpush.msra.mxu0 %v656_v9  ;;  %201 = vst [vmem:[#allocation2 + $0x120] sm:$0x1] %v2177_v2  ;;  %v238_v48 = vld [vmem:[%s2229_s25 + $0x80] sm:$0xff]  ;;  %v705_v49 = vld [vmem:[%s3772_s1 + $0x1c8] sm:$0xff]  ;;  %v722_v58 = vld [vmem:[%s3772_s1 + $0x250] sm:$0xff] }
  0x1c   : > { %2107 = vmatpush.msra.mxu1 %v655_v10  ;;  %2108 = vmatpush.msra.mxu2 %v655_v10  ;;  %202 = vst [vmem:[#allocation2 + $0x138] sm:$0x1] %v2177_v2  ;;  %v246_v51 = vld [vmem:[%s2229_s25 + $0xc0] sm:$0xff]  ;;  %v673_v52 = vld [vmem:[%s3772_s1 + $0xc8] sm:$0xff]  ;;  %v232_v61 = vld [vmem:[%s2229_s25 + $0x50] sm:$0xff] }
  0x1d   : > { %2109 = vmatpush.msra.mxu3 %v655_v10  ;;  %800 = vmatpush.msra.mxu0 %v655_v10  ;;  %203 = vst [vmem:[#allocation2 + $0x150] sm:$0x1] %v2177_v2  ;;  %v688_v53 = vld [vmem:[%s3772_s1 + $0x140] sm:$0xff]  ;;  %v231_v54 = vld [vmem:[%s2229_s25 + $0x48] sm:$0xff]  ;;  %v687_v0 = vld [vmem:[%s3772_s1 + $0x138] sm:$0xff] }
  0x1e   : > { %2110 = vmatpush.msra.mxu1 %v654_v11  ;;  %2111 = vmatpush.msra.mxu2 %v654_v11  ;;  %204 = vst [vmem:[#allocation2 + $0x168] sm:$0x1] %v2177_v2  ;;  %v704_v55 = vld [vmem:[%s3772_s1 + $0x1c0] sm:$0xff]  ;;  %v239_v56 = vld [vmem:[%s2229_s25 + $0x88] sm:$0xff]  ;;  %v703_v3 = vld [vmem:[%s3772_s1 + $0x1b8] sm:$0xff] }
  0x1f   : > { %2112 = vmatpush.msra.mxu3 %v654_v11  ;;  %801 = vmatpush.msra.mxu0 %v654_v11  ;;  %205 = vst [vmem:[#allocation2 + $0x180] sm:$0x1] %v2177_v2  ;;  %v222_v57 = vld [vmem:[%s2229_s25] sm:$0xff]  ;;  %v247_v60 = vld [vmem:[%s2229_s25 + $0xc8] sm:$0xff]  ;;  %v240_v5 = vld [vmem:[%s2229_s25 + $0x90] sm:$0xff] }
  0x20   : > { %2113 = vmatpush.msra.mxu1 %v653_v12  ;;  %2114 = vmatpush.msra.mxu2 %v653_v12  ;;  %206 = vst [vmem:[#allocation2 + $0x29] sm:$0x1] %v2177_v2  ;;  %v672_v63 = vld [vmem:[%s3772_s1 + $0xc0] sm:$0xff]  ;;  %v721_v4 = vld [vmem:[%s3772_s1 + $0x248] sm:$0xff]  ;;  %v671_v6 = vld [vmem:[%s3772_s1 + $0xb8] sm:$0xff] }
  0x21   : > { %2115 = vmatpush.msra.mxu3 %v653_v12  ;;  %802 = vmatpush.msra.mxu0 %v653_v12  ;;  %207 = vst [vmem:[#allocation2 + $0x41] sm:$0x1] %v2177_v2  ;;  %v686_v7 = vld [vmem:[%s3772_s1 + $0x130] sm:$0xff]  ;;  %v223_v8 = vld [vmem:[%s2229_s25 + $0x8] sm:$0xff]  ;;  %v720_v10 = vld [vmem:[%s3772_s1 + $0x240] sm:$0xff] }
  0x22   : > { %2116 = vmatpush.msra.mxu1 %v652_v13  ;;  %2117 = vmatpush.msra.mxu2 %v652_v13  ;;  %208 = vst [vmem:[#allocation2 + $0x59] sm:$0x1] %v2177_v2  ;;  %v702_v9 = vld [vmem:[%s3772_s1 + $0x1b0] sm:$0xff] }
  0x23   : > { %2118 = vmatpush.msra.mxu3 %v652_v13  ;;  %803 = vmatpush.msra.mxu0 %v652_v13  ;;  %209 = vst [vmem:[#allocation2 + $0x71] sm:$0x1] %v2177_v2  ;;  %v248_v11 = vld [vmem:[%s2229_s25 + $0xd0] sm:$0xff]  ;;  %v233_v13 = vld [vmem:[%s2229_s25 + $0x58] sm:$0xff] }
  0x24   : > { %2119 = vmatpush.msra.mxu1 %v651_v14  ;;  %2120 = vmatpush.msra.mxu2 %v651_v14  ;;  %210 = vst [vmem:[#allocation2 + $0x89] sm:$0x1] %v2177_v2 }
  0x25   : > { %2121 = vmatpush.msra.mxu3 %v651_v14  ;;  %804 = vmatpush.msra.mxu0 %v651_v14  ;;  %211 = vst [vmem:[#allocation2 + $0xa1] sm:$0x1] %v2177_v2 }
  0x26   : > { %2122 = vmatpush.msra.mxu1 %v650_v15  ;;  %2123 = vmatpush.msra.mxu2 %v650_v15  ;;  %212 = vst [vmem:[#allocation2 + $0xb9] sm:$0x1] %v2177_v2 }
  0x27   : > { %2124 = vmatpush.msra.mxu3 %v650_v15  ;;  %805 = vmatpush.msra.mxu0 %v650_v15  ;;  %213 = vst [vmem:[#allocation2 + $0xd1] sm:$0x1] %v2177_v2  ;;  %v241_v15 = vld [vmem:[%s2229_s25 + $0x98] sm:$0xff] }
  0x28   : > { %2125 = vmatpush.msra.mxu1 %v649_v16  ;;  %2126 = vmatpush.msra.mxu2 %v649_v16  ;;  %214 = vst [vmem:[#allocation2 + $0xe9] sm:$0x1] %v2177_v2 }
  0x29   : > { %2127 = vmatpush.msra.mxu3 %v649_v16  ;;  %806 = vmatpush.msra.mxu0 %v649_v16  ;;  %215 = vst [vmem:[#allocation2 + $0x101] sm:$0x1] %v2177_v2 }
  0x2a   : > { %2128 = vmatpush.msra.mxu1 %v648_v17  ;;  %2129 = vmatpush.msra.mxu2 %v648_v17  ;;  %216 = vst [vmem:[#allocation2 + $0x119] sm:$0x1] %v2177_v2 }
  0x2b   : > { %832 = vmatmul.f32.vlgmr.msra.gmra.mxu1 %v2289_v18  ;;  %2130 = vmatpush.msra.mxu3 %v648_v17  ;;  %217 = vst [vmem:[#allocation2 + $0x131] sm:$0x1] %v2177_v2 }
  0x2c   : > { %1018 = vmatpush.msrb.mxu2 %v695_v19  ;;  %905 = vmatpush.msrb.mxu1 %v679_v20  ;;  %218 = vst [vmem:[#allocation2 + $0x149] sm:$0x1] %v2177_v2  ;;  %v249_v19 = vld [vmem:[%s2229_s25 + $0xd8] sm:$0xff]  ;;  %v670_v20 = vld [vmem:[%s3772_s1 + $0xb0] sm:$0xff] }
  0x2d   : > { %1131 = vmatpush.msrb.mxu3 %v711_v21  ;;  %807 = vmatpush.msra.mxu0 %v648_v17  ;;  %219 = vst [vmem:[#allocation2 + $0x161] sm:$0x1] %v2177_v2  ;;  %v224_v17 = vld [vmem:[%s2229_s25 + $0x10] sm:$0xff]  ;;  %v685_v21 = vld [vmem:[%s3772_s1 + $0x128] sm:$0xff] }
  0x2e   : > { %1019 = vmatpush.msrb.mxu2 %v694_v22  ;;  %906 = vmatpush.msrb.mxu1 %v678_v23  ;;  %220 = vst [vmem:[#allocation2 + $0x179] sm:$0x1] %v2177_v2  ;;  %v234_v22 = vld [vmem:[%s2229_s25 + $0x60] sm:$0xff] }
  0x2f   : > { %1132 = vmatpush.msrb.mxu3 %v710_v24  ;;  %808 = vmatmul.f32.vlgmr.msra.gmra.mxu0 %v2177_v2  ;;  %221 = vst [vmem:[#allocation2 + $0x191] sm:$0x1] %v2177_v2  ;;  %v701_v24 = vld [vmem:[%s3772_s1 + $0x1a8] sm:$0xff] }
  0x30   : > { %1020 = vmatpush.msrb.mxu2 %v693_v25  ;;  %907 = vmatpush.msrb.mxu1 %v677_v26  ;;  %268 = vst [vmem:[#allocation2 + $0xc1] sm:$0xff] %v236_v31  ;;  %v719_v25 = vld [vmem:[%s3772_s1 + $0x238] sm:$0xff]  ;;  %v669_v26 = vld [vmem:[%s3772_s1 + $0xa8] sm:$0xff] }
  0x31   : > { %1133 = vmatpush.msrb.mxu3 %v709_v27  ;;  %1244 = vmatpush.msrb.mxu0 %v727_v28  ;;  %276 = vst [vmem:[#allocation2 + $0x121] sm:$0xff] %v244_v34  ;;  %v684_v27 = vld [vmem:[%s3772_s1 + $0x120] sm:$0xff]  ;;  %v225_v31 = vld [vmem:[%s2229_s25 + $0x18] sm:$0xff] }
  0x32   : > { %1021 = vmatpush.msrb.mxu2 %v692_v29  ;;  %908 = vmatpush.msrb.mxu1 %v676_v30  ;;  %261 = vst [vmem:[#allocation2 + $0x69] sm:$0xff] %v229_v37  ;;  %v242_v28 = vld [vmem:[%s2229_s25 + $0xa0] sm:$0xff]  ;;  %v718_v30 = vld [vmem:[%s3772_s1 + $0x230] sm:$0xff]  ;;  %v235_v37 = vld [vmem:[%s2229_s25 + $0x68] sm:$0xff] }
  0x33   : > { %1134 = vmatpush.msrb.mxu3 %v708_v32  ;;  %1245 = vmatpush.msrb.mxu0 %v726_v33  ;;  %269 = vst [vmem:[#allocation2 + $0xc9] sm:$0xff] %v237_v40  ;;  %v700_v29 = vld [vmem:[%s3772_s1 + $0x1a0] sm:$0xff]  ;;  %v683_v40 = vld [vmem:[%s3772_s1 + $0x118] sm:$0xff] }
  0x34   : > { %1022 = vmatpush.msrb.mxu2 %v691_v35  ;;  %909 = vmatpush.msrb.mxu1 %v675_v36  ;;  %277 = vst [vmem:[#allocation2 + $0x129] sm:$0xff] %v245_v43  ;;  %v250_v32 = vld [vmem:[%s2229_s25 + $0xe0] sm:$0xff]  ;;  %v667_v43 = vld [vmem:[%s3772_s1 + $0x98] sm:$0xff] }
  0x35   : > { %1135 = vmatpush.msrb.mxu3 %v707_v38  ;;  %1246 = vmatpush.msrb.mxu0 %v725_v39  ;;  %262 = vst [vmem:[#allocation2 + $0x79] sm:$0xff] %v230_v46  ;;  %v243_v38 = vld [vmem:[%s2229_s25 + $0xa8] sm:$0xff]  ;;  %v668_v39 = vld [vmem:[%s3772_s1 + $0xa0] sm:$0xff] }
  0x36   : > { %1023 = vmatpush.msrb.mxu2 %v690_v41  ;;  %910 = vmatpush.msrb.mxu1 %v674_v42  ;;  %270 = vst [vmem:[#allocation2 + $0xd9] sm:$0xff] %v238_v48  ;;  %v699_v41 = vld [vmem:[%s3772_s1 + $0x198] sm:$0xff]  ;;  %v717_v42 = vld [vmem:[%s3772_s1 + $0x228] sm:$0xff]  ;;  %v716_v46 = vld [vmem:[%s3772_s1 + $0x220] sm:$0xff] }
  0x37   : > { %1136 = vmatpush.msrb.mxu3 %v706_v44  ;;  %1247 = vmatpush.msrb.mxu0 %v724_v45  ;;  %v2403_v59 = vld [vmem:[#allocation2 + $0xc0] sm:$0xff]  ;;  %278 = vst [vmem:[#allocation2 + $0x139] sm:$0xff] %v246_v51  ;;  %v682_v44 = vld [vmem:[%s3772_s1 + $0x110] sm:$0xff]  ;;  %v251_v48 = vld [vmem:[%s2229_s25 + $0xe8] sm:$0xff] }
  0x38   : > { %811 = vmatmul.f32.gmra.mxu0 %v2177_v2  ;;  %1024 = vmatpush.msrb.mxu2 %v689_v47  ;;  %v322_v62 = vld [vmem:[#allocation2 + $0x120] sm:$0xff]  ;;  %263 = vst [vmem:[#allocation2 + $0x81] sm:$0xff] %v231_v54  ;;  %v698_v45 = vld [vmem:[%s3772_s1 + $0x190] sm:$0xff]  ;;  %v681_v54 = vld [vmem:[%s3772_s1 + $0x108] sm:$0xff] }
  0x39   : > { %1137 = vmatpush.msrb.mxu3 %v705_v49  ;;  %1248 = vmatpush.msrb.mxu0 %v723_v50  ;;  %v2414_v1 = vld [vmem:[#allocation2 + $0x68] sm:$0xff]  ;;  %271 = vst [vmem:[#allocation2 + $0xe1] sm:$0xff] %v239_v56  ;;  %v226_v47 = vld [vmem:[%s2229_s25 + $0x20] sm:$0xff]  ;;  %v715_v56 = vld [vmem:[%s3772_s1 + $0x218] sm:$0xff] }
  0x3a   : > { %911 = vmatpush.msrb.mxu1 %v673_v52  ;;  %1025 = vmatpush.msrb.mxu2 %v688_v53  ;;  %254 = vst [vmem:[#allocation2 + $0x19] sm:$0xff] %v222_v57  ;;  %v2438_v12 = vld [vmem:[#allocation2 + $0xc8] sm:$0xff]  ;;  %v666_v53 = vld [vmem:[%s3772_s1 + $0x90] sm:$0xff] }
  0x3b   : > { %856 = vmatmul.f32.vlgmr.msra.gmra.mxu2 %v2403_v59  ;;  %1138 = vmatpush.msrb.mxu3 %v704_v55  ;;  %279 = vst [vmem:[#allocation2 + $0x141] sm:$0xff] %v247_v60  ;;  %v323_v14 = vld [vmem:[#allocation2 + $0x128] sm:$0xff]  ;;  %v696_v60 = vld [vmem:[%s3772_s1 + $0x180] sm:$0xff] }
  0x3c   : > { %880 = vmatmul.f32.vlgmr.msra.gmra.mxu3 %v322_v62  ;;  %1249 = vmatpush.msrb.mxu0 %v722_v58  ;;  %264 = vst [vmem:[#allocation2 + $0x91] sm:$0xff] %v232_v61  ;;  %v2442_v16 = vld [vmem:[#allocation2 + $0x78] sm:$0xff]  ;;  %v697_v55 = vld [vmem:[%s3772_s1 + $0x188] sm:$0xff]  ;;  %v680_v58 = vld [vmem:[%s3772_s1 + $0x100] sm:$0xff] }
  0x3d   : > { %835 = vmatmul.f32.gmra.mxu1 %v2414_v1  ;;  %1026 = vmatpush.msrb.mxu2 %v687_v0  ;;  %272 = vst [vmem:[#allocation2 + $0xf1] sm:$0xff] %v240_v5  ;;  %v2479_v33 = vld [vmem:[#allocation2 + $0xd8] sm:$0xff]  ;;  %v665_v57 = vld [vmem:[%s3772_s1 + $0x88] sm:$0xff]  ;;  %v714_v61 = vld [vmem:[%s3772_s1 + $0x210] sm:$0xff] }
  0x3e   : > { %912 = vmatpush.msrb.mxu1 %v672_v63  ;;  %1139 = vmatpush.msrb.mxu3 %v703_v3  ;;  %255 = vst [vmem:[#allocation2 + $0x21] sm:$0xff] %v223_v8  ;;  %v325_v34 = vld [vmem:[#allocation2 + $0x138] sm:$0xff]  ;;  %v664_v62 = vld [vmem:[%s3772_s1 + $0x80] sm:$0xff]  ;;  %v227_v63 = vld [vmem:[%s2229_s25 + $0x28] sm:$0xff] }
  0x3f   : > { %1250 = vmatpush.msrb.mxu0 %v721_v4  ;;  %1027 = vmatpush.msrb.mxu2 %v686_v7  ;;  %280 = vst [vmem:[#allocation2 + $0x151] sm:$0xff] %v248_v11  ;;  %v2481_v35 = vld [vmem:[#allocation2 + $0x80] sm:$0xff]  ;;  %v713_v7 = vld [vmem:[%s3772_s1 + $0x208] sm:$0xff]  ;;  %v775_v8 = vld [vmem:[%s3772_s1 + $0x3f8] sm:$0xff] }
  0x40   : > { %913 = vmatpush.msrb.mxu1 %v671_v6  ;;  %1140 = vmatpush.msrb.mxu3 %v702_v9  ;;  %265 = vst [vmem:[#allocation2 + $0x99] sm:$0xff] %v233_v13  ;;  %v2516_v49 = vld [vmem:[#allocation2 + $0xe0] sm:$0xff]  ;;  %v759_v6 = vld [vmem:[%s3772_s1 + $0x378] sm:$0xff] }
  0x41   : > { %1251 = vmatpush.msrb.mxu0 %v720_v10  ;;  %v2454_v23 = vld [vmem:[#allocation2 + $0x18] sm:$0xff]  ;;  %273 = vst [vmem:[#allocation2 + $0xf9] sm:$0xff] %v241_v15  ;;  %1028 = vmatpush.msrb.mxu2 %v685_v21  ;;  %v712_v10 = vld [vmem:[%s3772_s1 + $0x200] sm:$0xff] }
  0x42   : > { %914 = vmatpush.msrb.mxu1 %v670_v20  ;;  %814 = vmatmul.f32.gmra.mxu0 %v2454_v23  ;;  %256 = vst [vmem:[#allocation2 + $0x31] sm:$0xff] %v224_v17  ;;  %v2518_v50 = vld [vmem:[#allocation2 + $0x140] sm:$0xff]  ;;  %v743_v9 = vld [vmem:[%s3772_s1 + $0x2f8] sm:$0xff] }
  0x43   : > { %859 = vmatmul.f32.gmra.mxu2 %v2438_v12  ;;  %281 = vst [vmem:[#allocation2 + $0x159] sm:$0xff] %v249_v19  ;;  %1141 = vmatpush.msrb.mxu3 %v701_v24  ;;  %v2520_v51 = vld [vmem:[#allocation2 + $0x90] sm:$0xff]  ;;  %v791_v17 = vld [vmem:[%s3772_s1 + $0x478] sm:$0xff] }
  0x44   : > { %883 = vmatmul.f32.gmra.mxu3 %v323_v14  ;;  %1252 = vmatpush.msrb.mxu0 %v719_v25  ;;  %266 = vst [vmem:[#allocation2 + $0xa9] sm:$0xff] %v234_v22  ;;  %v2556_v0 = vld [vmem:[#allocation2 + $0xf0] sm:$0xff] }
  0x45   : > { %838 = vmatmul.f32.gmra.mxu1 %v2442_v16  ;;  %1029 = vmatpush.msrb.mxu2 %v684_v27  ;;  %274 = vst [vmem:[#allocation2 + $0x109] sm:$0xff] %v242_v28  ;;  %v2483_v36 = vld [vmem:[#allocation2 + $0x20] sm:$0xff]  ;;  %v758_v24 = vld [vmem:[%s3772_s1 + $0x370] sm:$0xff]  ;;  %v389_v27 = vrot.slane %v2177_v2, 1  ;;  %v394_v28 = vrot.slane %v2454_v23, 1 }
  0x46   : > { %915 = vmatpush.msrb.mxu1 %v669_v26  ;;  %1142 = vmatpush.msrb.mxu3 %v700_v29  ;;  %257 = vst [vmem:[#allocation2 + $0x39] sm:$0xff] %v225_v31  ;;  %v2558_v3 = vld [vmem:[#allocation2 + $0x150] sm:$0xff]  ;;  %v395_v29 = vrot.slane %v2483_v36, 1 }
  0x47   : > { %1253 = vmatpush.msrb.mxu0 %v718_v30  ;;  %282 = vst [vmem:[#allocation2 + $0x169] sm:$0xff] %v250_v32  ;;  %1030 = vmatpush.msrb.mxu2 %v683_v40  ;;  %v2560_v4 = vld [vmem:[#allocation2 + $0x98] sm:$0xff]  ;;  %v774_v25 = vld [vmem:[%s3772_s1 + $0x3f0] sm:$0xff] }
  0x48   : > { %267 = vst [vmem:[#allocation2 + $0xb1] sm:$0xff] %v235_v37  ;;  %916 = vmatpush.msrb.mxu1 %v668_v39  ;;  %1143 = vmatpush.msrb.mxu3 %v699_v41  ;;  %v2583_v11 = vld [vmem:[#allocation2 + $0xf8] sm:$0xff]  ;;  %v742_v26 = vld [vmem:[%s3772_s1 + $0x2f0] sm:$0xff]  ;;  %v396_v32 = vsel %vm388_vm0, %v394_v28, %v395_v29  ;;  %v291_v37 = vld [vmem:[#allocation2 + $0x28] sm:$0x3] }
  0x49   : > { %275 = vst [vmem:[#allocation2 + $0x111] sm:$0xff] %v243_v38  ;;  %1254 = vmatpush.msrb.mxu0 %v717_v42  ;;  %1031 = vmatpush.msrb.mxu2 %v682_v44  ;;  %v2522_v52 = vld [vmem:[#allocation2 + $0x30] sm:$0xff]  ;;  %v502_v38 = vrot.slane %v2177_v2, 2  ;;  %v397_v41 = vrot.slane %v291_v37, 1  ;;  %v757_v2 = vld [vmem:[%s3772_s1 + $0x368] sm:$0xff] }
  0x4a   : > { %817 = vmatmul.f32.gmra.mxu0 %v2483_v36  ;;  %917 = vmatpush.msrb.mxu1 %v667_v43  ;;  %258 = vst [vmem:[#allocation2 + $0x49] sm:$0xff] %v226_v47  ;;  %v2585_v13 = vld [vmem:[#allocation2 + $0x158] sm:$0xff]  ;;  %v790_v39 = vld [vmem:[%s3772_s1 + $0x470] sm:$0xff]  ;;  %v399_v47 = vrot.slane %v2522_v52, 1 }
  0x4b   : > { %862 = vmatmul.f32.gmra.mxu2 %v2479_v33  ;;  %1144 = vmatpush.msrb.mxu3 %v698_v45  ;;  %283 = vst [vmem:[#allocation2 + $0x171] sm:$0xff] %v251_v48  ;;  %v2587_v14 = vld [vmem:[#allocation2 + $0xa8] sm:$0xff]  ;;  %v398_v43 = vsel %vm388_vm0, %v395_v29, %v397_v41  ;;  %v771_v29 = vld [vmem:[%s3772_s1 + $0x3d8] sm:$0xff] }
  0x4c   : > { %886 = vmatmul.f32.gmra.mxu3 %v325_v34  ;;  %1255 = vmatpush.msrb.mxu0 %v716_v46  ;;  %259 = vst [vmem:[#allocation2 + $0x51] sm:$0xff] %v227_v63  ;;  %v2598_v19 = vld [vmem:[#allocation2 + $0x108] sm:$0xff]  ;;  %v288_v34 = vld [vmem:[#allocation2 + $0x10] sm:$0x3]  ;;  %v772_v63 = vld [vmem:[%s3772_s1 + $0x3e0] sm:$0xff] }
  0x4d   : > { %841 = vmatmul.f32.gmra.mxu1 %v2481_v35  ;;  %1032 = vmatpush.msrb.mxu2 %v681_v54  ;;  %v2562_v5 = vld [vmem:[#allocation2 + $0x38] sm:$0xff]  ;;  %v392_v40 = vrot.slane %v288_v34, 1  ;;  %v505_v44 = vrot.slane %v288_v34, 2  ;;  %v773_v45 = vld [vmem:[%s3772_s1 + $0x3e8] sm:$0xff]  ;;  %v410_v34 = vrot.slane %v2414_v1, 1 }
  0x4e   : > { %918 = vmatpush.msrb.mxu1 %v666_v53  ;;  %1145 = vmatpush.msrb.mxu3 %v697_v55  ;;  %v331_v20 = vld [vmem:[#allocation2 + $0x168] sm:$0xff]  ;;  %v400_v48 = vrot.slane %v2562_v5, 1  ;;  %v294_v55 = vld [vmem:[#allocation2 + $0x40] sm:$0x3] }
  0x4f   : > { %1256 = vmatpush.msrb.mxu0 %v715_v56  ;;  %1033 = vmatpush.msrb.mxu2 %v680_v58  ;;  %v2600_v21 = vld [vmem:[#allocation2 + $0xb0] sm:$0xff]  ;;  %v393_v42 = vsel %vm388_vm0, %v389_v27, %v392_v40  ;;  %v741_v46 = vld [vmem:[%s3772_s1 + $0x2e8] sm:$0xff]  ;;  %v506_v53 = vsel %vm501_vm1, %v502_v38, %v505_v44  ;;  %v507_v56 = vrot.slane %v2454_v23, 2 }
  0x50   : > { %919 = vmatpush.msrb.mxu1 %v665_v57  ;;  %1146 = vmatpush.msrb.mxu3 %v696_v60  ;;  %v2619_v30 = vld [vmem:[#allocation2 + $0x110] sm:$0xff]  ;;  %v2646_v54 = vsel %vm388_vm0, %v399_v47, %v400_v48  ;;  %v508_v57 = vrot.slane %v2483_v36, 2  ;;  %v789_v58 = vld [vmem:[%s3772_s1 + $0x468] sm:$0xff]  ;;  %v402_v60 = vrot.slane %v294_v55, 1 }
  0x51   : > { %1257 = vmatpush.msrb.mxu0 %v714_v61  ;;  %1470 = vmatpush.msra.mxu2 %v759_v6  ;;  %v2589_v15 = vld [vmem:[#allocation2 + $0x48] sm:$0xff]  ;;  %v740_v6 = vld [vmem:[%s3772_s1 + $0x2e0] sm:$0xff]  ;;  %v300_v40 = vld [vmem:[#allocation2 + $0x70] sm:$0x3] }
  0x52   : > { %820 = vmatmul.f32.gmra.mxu0 %v2522_v52  ;;  %920 = vmatpush.msrb.mxu1 %v664_v62  ;;  %v2621_v31 = vld [vmem:[#allocation2 + $0x170] sm:$0xff]  ;;  %v2656_v61 = vsel %vm501_vm1, %v507_v56, %v508_v57  ;;  %v2659_v62 = vsel %vm388_vm0, %v400_v48, %v402_v60  ;;  %v517_v41 = vrot.slane %v2589_v15, 2  ;;  %v414_v48 = vrot.slane %v2442_v16, 1  ;;  %v2758_v60 = vld [vmem:[#allocation2 + $0x88] sm:$0x3] }
  0x53   : > { %865 = vmatmul.f32.gmra.mxu2 %v2516_v49  ;;  %1258 = vmatpush.msrb.mxu0 %v713_v7  ;;  %v2602_v22 = vld [vmem:[#allocation2 + $0x50] sm:$0xff]  ;;  %v404_v7 = vrot.slane %v2589_v15, 1 }
  0x54   : > { %889 = vmatmul.f32.gmra.mxu3 %v2518_v50  ;;  %1357 = vmatpush.msra.mxu1 %v743_v9 }
  0x55   : > { %844 = vmatmul.f32.gmra.mxu1 %v2520_v51  ;;  %1583 = vmatpush.msra.mxu3 %v775_v8  ;;  %v405_v8 = vrot.slane %v2602_v22, 1 }
  0x56   : > { %1259 = vmatpush.msrb.mxu0 %v712_v10  ;;  %1471 = vmatpush.msra.mxu2 %v758_v24  ;;  %v513_v24 = vrot.slane %v2562_v5, 2 }
  0x57   : > { %1584 = vmatpush.msra.mxu3 %v774_v25  ;;  %1358 = vmatpush.msra.mxu1 %v742_v26  ;;  %v2679_v10 = vsel %vm388_vm0, %v404_v7, %v405_v8  ;;  %v788_v25 = vld [vmem:[%s3772_s1 + $0x460] sm:$0xff] }
  0x58   : > { %1696 = vmatpush.msra.mxu0 %v791_v17  ;;  %1472 = vmatpush.msra.mxu2 %v757_v2  ;;  %v297_v17 = vld [vmem:[#allocation2 + $0x58] sm:$0x3]  ;;  %v412_v2 = vrot.slane %v300_v40, 1 }
  0x59   : > { %1585 = vmatpush.msra.mxu3 %v773_v45  ;;  %1359 = vmatpush.msra.mxu1 %v741_v46  ;;  %v407_v26 = vrot.slane %v297_v17, 1  ;;  %v770_v46 = vld [vmem:[%s3772_s1 + $0x3d0] sm:$0xff] }
  0x5a   : > { %823 = vmatmul.f32.gmra.mxu0 %v2562_v5  ;;  %v2730_v45 = vsel %vm388_vm0, %v410_v34, %v412_v2  ;;  %v785_v2 = vld [vmem:[%s3772_s1 + $0x448] sm:$0xff] }
  0x5b   : > { %868 = vmatmul.f32.gmra.mxu2 %v2556_v0  ;;  %1697 = vmatpush.msra.mxu0 %v790_v39  ;;  %v2694_v28 = vsel %vm388_vm0, %v405_v8, %v407_v26  ;;  %3815 = vst [vmem:[#allocation3_spill] sm:$0xff] %v2730_v45  ;;  %v419_v26 = vrot.slane %v2520_v51, 1 }
  0x5c   : > { %892 = vmatmul.f32.gmra.mxu3 %v2558_v3  ;;  %1360 = vmatpush.msra.mxu1 %v740_v6  ;;  %v417_v6 = vrot.slane %v2758_v60, 1 }
  0x5d   : > { %847 = vmatmul.f32.gmra.mxu1 %v2560_v4  ;;  %1698 = vmatpush.msra.mxu0 %v789_v58 }
  0x5e   : > { %1586 = vmatpush.msra.mxu3 %v772_v63  ;;  %v786_v63 = vld [vmem:[%s3772_s1 + $0x450] sm:$0xff] }
  0x5f   : > { %1699 = vmatpush.msra.mxu0 %v788_v25 }
  0x60   : > { %1587 = vmatpush.msra.mxu3 %v771_v29 }
  0x62   : > { %826 = vmatmul.f32.gmra.mxu0 %v2589_v15  ;;  %1588 = vmatpush.msra.mxu3 %v770_v46 }
  0x63   : > { %871 = vmatmul.f32.gmra.mxu2 %v2583_v11 }
  0x64   : > { %895 = vmatmul.f32.gmra.mxu3 %v2585_v13 }
  0x65   : > { %850 = vmatmul.f32.gmra.mxu1 %v2587_v14 }
  0x6a   : > { %829 = vmatmul.f32.gmra.mxu0 %v2602_v22 }
  0x6b   : > { %874 = vmatmul.f32.gmra.mxu2 %v2598_v19 }
  0x6c   : > { %898 = vmatmul.f32.gmra.mxu3 %v331_v20  ;;  %v512_v20 = vrot.slane %v2522_v52, 2 }
  0x6d   : > { %853 = vmatmul.f32.gmra.mxu1 %v2600_v21 }
  0x72   : > { %1260 = vmatmul.f32.vlgmr.msrb.gmra.mxu0 %v396_v32 }
  0x73   : > { %877 = vmatmul.f32.gmra.mxu2 %v2619_v30 }
  0x74   : > { %901 = vmatmul.f32.gmra.mxu3 %v2621_v31 }
  0x75   : > { %921 = vmatmul.f32.vlgmr.msrb.gmra.mxu1 %v389_v27  ;;  %v2691_v27 = vsel %vm501_vm1, %v512_v20, %v513_v24  ;;  %v525_v20 = vrot.slane %v300_v40, 2 }
  0x7a   : > { %1263 = vmatmul.f32.gmra.mxu0 %v398_v43 }
  0x7b   : > { %1034 = vmatmul.f32.vlgmr.msrb.gmra.mxu2 %v502_v38 }
  0x7c   : > { %1147 = vmatmul.f32.vlgmr.msrb.gmra.mxu3 %v2454_v23  ;;  %v756_v23 = vld [vmem:[%s3772_s1 + $0x360] sm:$0xff] }
  0x7d   : > { %924 = vmatmul.f32.gmra.mxu1 %v393_v42  ;;  %1473 = vmatpush.msra.mxu2 %v756_v23  ;;  %v518_v42 = vrot.slane %v2602_v22, 2  ;;  %v522_v23 = vrot.slane %v2289_v18, 2 }
  0x7f   : > { %v2727_v44 = vsel %vm501_vm1, %v517_v41, %v518_v42  ;;  %v2809_v41 = vld [vmem:[#allocation2 + $0xa0] sm:$0x3] }
  0x82   : > { %1266 = vmatmul.f32.gmra.mxu0 %v2646_v54 }
  0x83   : > { %1037 = vmatmul.f32.gmra.mxu2 %v506_v53  ;;  %v415_v53 = vrot.slane %v2481_v35, 1 }
  0x84   : > { %1150 = vmatmul.f32.gmra.mxu3 %v2483_v36  ;;  %v510_v36 = vrot.slane %v291_v37, 2  ;;  %v739_v37 = vld [vmem:[%s3772_s1 + $0x2d8] sm:$0xff] }
  0x85   : > { %927 = vmatmul.f32.gmra.mxu1 %v396_v32  ;;  %v409_v32 = vrot.slane %v2289_v18, 1  ;;  %v2755_v58 = vsel %vm388_vm0, %v414_v48, %v415_v53 }
  0x86   : > { %v2676_v9 = vsel %vm501_vm1, %v508_v57, %v510_v36  ;;  %1361 = vmatpush.msra.mxu1 %v739_v37  ;;  %3816 = vst [vmem:[#allocation4_spill] sm:$0xff] %v2755_v58  ;;  %v523_v36 = vrot.slane %v2414_v1, 2 }
  0x87   : > { %v2715_v39 = vsel %vm388_vm0, %v409_v32, %v410_v34 }
  0x88   : > { %v2770_v7 = vsel %vm501_vm1, %v522_v23, %v523_v36  ;;  %v2799_v32 = vsel %vm501_vm1, %v523_v36, %v525_v20  ;;  %v530_v23 = vrot.slane %v2758_v60, 2  ;;  %v768_v36 = vld [vmem:[%s3772_s1 + $0x3c0] sm:$0xff] }
  0x89   : > { %3819 = vst [vmem:[#allocation7_spill] sm:$0xff] %v2799_v32  ;;  %v736_v60 = vld [vmem:[%s3772_s1 + $0x2c0] sm:$0xff] }
  0x8a   : > { %1269 = vmatmul.f32.gmra.mxu0 %v2659_v62 }
  0x8b   : > { %1040 = vmatmul.f32.gmra.mxu2 %v2656_v61 }
  0x8c   : > { %1153 = vmatmul.f32.gmra.mxu3 %v2522_v52  ;;  %v755_v52 = vld [vmem:[%s3772_s1 + $0x358] sm:$0xff] }
  0x8d   : > { %930 = vmatmul.f32.gmra.mxu1 %v398_v43  ;;  %1474 = vmatpush.msra.mxu2 %v755_v52  ;;  %v787_v43 = vld [vmem:[%s3772_s1 + $0x458] sm:$0xff]  ;;  %v420_v52 = vrot.slane %v2560_v4, 1 }
  0x8e   : > { %1700 = vmatpush.msra.mxu0 %v787_v43  ;;  %v528_v43 = vrot.slane %v2481_v35, 2 }
  0x8f   : > { %v2806_v40 = vsel %vm388_vm0, %v419_v26, %v420_v52 }
  0x90   : > { %1701 = vmatpush.msra.mxu0 %v786_v63  ;;  %3820 = vst [vmem:[#allocation8_spill] sm:$0xff] %v2806_v40 }
  0x92   : > { %1272 = vmatmul.f32.gmra.mxu0 %v2679_v10 }
  0x93   : > { %1043 = vmatmul.f32.gmra.mxu2 %v2676_v9  ;;  %1702 = vmatpush.msra.mxu0 %v785_v2  ;;  %v532_v2 = vrot.slane %v2520_v51, 2 }
  0x94   : > { %1156 = vmatmul.f32.gmra.mxu3 %v2562_v5  ;;  %v515_v5 = vrot.slane %v294_v55, 2  ;;  %v738_v55 = vld [vmem:[%s3772_s1 + $0x2d0] sm:$0xff] }
  0x95   : > { %933 = vmatmul.f32.gmra.mxu1 %v2646_v54 }
  0x96   : > { %v2712_v38 = vsel %vm501_vm1, %v513_v24, %v515_v5  ;;  %1362 = vmatpush.msra.mxu1 %v738_v55  ;;  %v769_v24 = vld [vmem:[%s3772_s1 + $0x3c8] sm:$0xff]  ;;  %v752_v55 = vld [vmem:[%s3772_s1 + $0x340] sm:$0xff] }
  0x97   : > { %1589 = vmatpush.msra.mxu3 %v769_v24  ;;  %v737_v5 = vld [vmem:[%s3772_s1 + $0x2c8] sm:$0xff]  ;;  %v2855_v24 = vsel %vm501_vm1, %v528_v43, %v530_v23 }
  0x98   : > { %1363 = vmatpush.msra.mxu1 %v737_v5  ;;  %3825 = vst [vmem:[#allocation13_spill] sm:$0xff] %v2855_v24 }
  0x99   : > { %1590 = vmatpush.msra.mxu3 %v768_v36 }
  0x9a   : > { %1275 = vmatmul.f32.gmra.mxu0 %v2694_v28  ;;  %1364 = vmatpush.msra.mxu1 %v736_v60 }
  0x9b   : > { %1046 = vmatmul.f32.gmra.mxu2 %v2691_v27 }
  0x9c   : > { %1159 = vmatmul.f32.gmra.mxu3 %v2589_v15  ;;  %v754_v15 = vld [vmem:[%s3772_s1 + $0x350] sm:$0xff] }
  0x9d   : > { %936 = vmatmul.f32.gmra.mxu1 %v2659_v62  ;;  %1475 = vmatpush.msra.mxu2 %v754_v15 }
  0xa2   : > { %1278 = vmatmul.f32.gmra.mxu0 %v2715_v39 }
  0xa3   : > { %1049 = vmatmul.f32.gmra.mxu2 %v2712_v38 }
  0xa4   : > { %1162 = vmatmul.f32.gmra.mxu3 %v2602_v22  ;;  %v520_v22 = vrot.slane %v297_v17, 2 }
  0xa5   : > { %939 = vmatmul.f32.gmra.mxu1 %v2679_v10 }
  0xa6   : > { %v2750_v56 = vsel %vm501_vm1, %v518_v42, %v520_v22  ;;  %v527_v42 = vrot.slane %v2442_v16, 2  ;;  %v422_v22 = vrot.slane %v2809_v41, 1 }
  0xa8   : > { %v2752_v57 = vpop.f32.mrf.mxu1  ;;  %v2825_v48 = vsel %vm501_vm1, %v527_v42, %v528_v43  ;;  %v2865_v42 = vld [vmem:[#allocation2 + $0xb8] sm:$0x3]  ;;  %v784_v43 = vld [vmem:[%s3772_s1 + $0x440] sm:$0xff] }
  0xa9   : > { %3822 = vst [vmem:[#allocation10_spill] sm:$0xff] %v2825_v48  ;;  %v427_v23 = vrot.slane %v2865_v42, 1  ;;  %1703 = vmatpush.msra.mxu0 %v784_v43  ;;  %v535_v43 = vrot.slane %v2809_v41, 2  ;;  %v735_v41 = vld [vmem:[%s3772_s1 + $0x2b8] sm:$0xff] }
  0xaa   : > { %1281 = vmatmul.f32.gmra.mxu0 %v2730_v45  ;;  %1365 = vmatpush.msra.mxu1 %v735_v41 }
  0xab   : > { %1052 = vmatmul.f32.gmra.mxu2 %v2727_v44 }
  0xac   : > { %1165 = vmatmul.f32.gmra.mxu3 %v2289_v18  ;;  %v2742_v47 = vpop.f32.mrf.mxu0  ;;  %v2777_v18 = vsel %vm388_vm0, %v415_v53, %v417_v6  ;;  %v2832_v53 = vsel %vm388_vm0, %v420_v52, %v422_v22  ;;  %v424_v6 = vrot.slane %v2587_v14, 1  ;;  %v533_v22 = vrot.slane %v2560_v4, 2 }
  0xad   : > { %942 = vmatmul.f32.gmra.mxu1 %v2694_v28  ;;  %3817 = vst [vmem:[#allocation5_spill] sm:$0xff] %v2777_v18 }
  0xae   : > { %3823 = vst [vmem:[#allocation11_spill] sm:$0xff] %v2832_v53 }
  0xb2   : > { %1284 = vmatmul.f32.gmra.mxu0 %v2755_v58 }
  0xb3   : > { %1055 = vmatmul.f32.gmra.mxu2 %v2750_v56 }
  0xb4   : > { %1168 = vmatmul.f32.gmra.mxu3 %v2414_v1  ;;  %v753_v1 = vld [vmem:[%s3772_s1 + $0x348] sm:$0xff] }
  0xb5   : > { %945 = vmatmul.f32.gmra.mxu1 %v2715_v39  ;;  %v2772_v8 = vpop.f32.mrf.mxu0  ;;  %1476 = vmatpush.msra.mxu2 %v753_v1  ;;  %v425_v1 = vrot.slane %v2600_v21, 1 }
  0xb7   : > { %1477 = vmatpush.msra.mxu2 %v752_v55  ;;  %v2862_v5 = vsel %vm388_vm0, %v424_v6, %v425_v1  ;;  %v2881_v6 = vsel %vm501_vm1, %v532_v2, %v533_v22  ;;  %v2888_v60 = vsel %vm388_vm0, %v425_v1, %v427_v23  ;;  %v767_v2 = vld [vmem:[%s3772_s1 + $0x3b8] sm:$0xff]  ;;  %v429_v23 = vrot.slane %v2403_v59, 1 }
  0xb8   : > { %3826 = vst [vmem:[#allocation14_spill] sm:$0xff] %v2862_v5  ;;  %1591 = vmatpush.msra.mxu3 %v767_v2  ;;  %v2921_v2 = vld [vmem:[#allocation2 + $0xd0] sm:$0x3] }
  0xb9   : > { %3828 = vst [vmem:[#allocation16_spill] sm:$0xff] %v2881_v6 }
  0xba   : > { %v2774_v17 = vpop.f32.mrf.mxu1  ;;  %1287 = vmatmul.f32.gmra.mxu0 %v2777_v18  ;;  %3829 = vst [vmem:[#allocation17_spill] sm:$0xff] %v2888_v60 }
  0xbb   : > { %1058 = vmatmul.f32.gmra.mxu2 %v2770_v7 }
  0xbc   : > { %1171 = vmatmul.f32.gmra.mxu3 %v2442_v16 }
  0xbd   : > { %948 = vmatmul.f32.gmra.mxu1 %v2730_v45 }
  0xbe   : > { %v2789_v25 = vpop.f32.mrf.mxu2 }
  0xbf   : > { %v2796_v29 = vpop.f32.mrf.mxu3  ;;  %v2803_v37 = vpop.f32.mrf.mxu0 }
  0xc0   : > { %3818 = vst [vmem:[#allocation6_spill] sm:$0xff] %v2796_v29 }
  0xc2   : > { %v2801_v34 = vpop.f32.mrf.mxu1  ;;  %1290 = vmatmul.f32.gmra.mxu0 %v2806_v40 }
  0xc3   : > { %1061 = vmatmul.f32.gmra.mxu2 %v2799_v32 }
  0xc4   : > { %1174 = vmatmul.f32.gmra.mxu3 %v2481_v35 }
  0xc5   : > { %951 = vmatmul.f32.gmra.mxu1 %v2755_v58 }
  0xc6   : > { %v2819_v15 = vpop.f32.mrf.mxu2 }
  0xc7   : > { %v2822_v46 = vpop.f32.mrf.mxu3  ;;  %v2829_v35 = vpop.f32.mrf.mxu0 }
  0xc8   : > { %3821 = vst [vmem:[#allocation9_spill] sm:$0xff] %v2822_v46 }
  0xca   : > { %v2827_v16 = vpop.f32.mrf.mxu1  ;;  %1293 = vmatmul.f32.gmra.mxu0 %v2832_v53 }
  0xcb   : > { %1064 = vmatmul.f32.gmra.mxu2 %v2825_v48 }
  0xcc   : > { %1177 = vmatmul.f32.gmra.mxu3 %v2520_v51 }
  0xcd   : > { %954 = vmatmul.f32.gmra.mxu1 %v2777_v18 }
  0xce   : > { %v2845_v63 = vpop.f32.mrf.mxu2 }
  0xcf   : > { %v2852_v20 = vpop.f32.mrf.mxu3  ;;  %v2859_v52 = vpop.f32.mrf.mxu0 }
  0xd0   : > { %3824 = vst [vmem:[#allocation12_spill] sm:$0xff] %v2852_v20  ;;  %v751_v20 = vld [vmem:[%s3772_s1 + $0x338] sm:$0xff] }
  0xd1   : > { %1478 = vmatpush.msra.mxu2 %v751_v20  ;;  %v2911_v20 = vsel %vm501_vm1, %v533_v22, %v535_v43  ;;  %v783_v22 = vld [vmem:[%s3772_s1 + $0x438] sm:$0xff] }
  0xd2   : > { %v2857_v26 = vpop.f32.mrf.mxu1  ;;  %1296 = vmatmul.f32.gmra.mxu0 %v2862_v5  ;;  %3831 = vst [vmem:[#allocation19_spill] sm:$0xff] %v2911_v20 }
  0xd3   : > { %1067 = vmatmul.f32.gmra.mxu2 %v2855_v24  ;;  %1704 = vmatpush.msra.mxu0 %v783_v22  ;;  %v540_v22 = vrot.slane %v2865_v42, 2 }
  0xd4   : > { %1180 = vmatmul.f32.gmra.mxu3 %v2560_v4 }
  0xd5   : > { %957 = vmatmul.f32.gmra.mxu1 %v2806_v40 }
  0xd6   : > { %v2875_v55 = vpop.f32.mrf.mxu2 }
  0xd7   : > { %v2878_v36 = vpop.f32.mrf.mxu3  ;;  %v2885_v4 = vpop.f32.mrf.mxu0 }
  0xd8   : > { %3827 = vst [vmem:[#allocation15_spill] sm:$0xff] %v2878_v36  ;;  %v430_v36 = vrot.slane %v2438_v12, 1 }
  0xda   : > { %v2883_v51 = vpop.f32.mrf.mxu1  ;;  %1299 = vmatmul.f32.gmra.mxu0 %v2888_v60  ;;  %v2918_v40 = vsel %vm388_vm0, %v429_v23, %v430_v36  ;;  %v432_v23 = vrot.slane %v2921_v2, 1 }
  0xdb   : > { %1070 = vmatmul.f32.gmra.mxu2 %v2881_v6  ;;  %3832 = vst [vmem:[#allocation20_spill] sm:$0xff] %v2918_v40  ;;  %v538_v6 = vrot.slane %v2600_v21, 2 }
  0xdc   : > { %1183 = vmatmul.f32.gmra.mxu3 %v2587_v14  ;;  %v2944_v18 = vsel %vm388_vm0, %v430_v36, %v432_v23  ;;  %v434_v23 = vrot.slane %v2479_v33, 1 }
  0xdd   : > { %960 = vmatmul.f32.gmra.mxu1 %v2832_v53  ;;  %3836 = vst [vmem:[#allocation24_spill] sm:$0xff] %v2944_v18  ;;  %v2967_v42 = vsel %vm501_vm1, %v538_v6, %v540_v22 }
  0xde   : > { %v2901_v1 = vpop.f32.mrf.mxu2  ;;  %3839 = vst [vmem:[#allocation27_spill] sm:$0xff] %v2967_v42 }
  0xdf   : > { %v2905_v46 = vpop.f32.mrf.mxu3  ;;  %v2915_v29 = vpop.f32.mrf.mxu0 }
  0xe0   : > { %3830 = vst [vmem:[#allocation18_spill] sm:$0xff] %v2905_v46  ;;  %v537_v46 = vrot.slane %v2587_v14, 2 }
  0xe2   : > { %v2913_v53 = vpop.f32.mrf.mxu1  ;;  %1302 = vmatmul.f32.gmra.mxu0 %v2918_v40 }
  0xe3   : > { %1073 = vmatmul.f32.gmra.mxu2 %v2911_v20  ;;  %v2937_v20 = vsel %vm501_vm1, %v537_v46, %v538_v6  ;;  %v766_v46 = vld [vmem:[%s3772_s1 + $0x3b0] sm:$0xff] }
  0xe4   : > { %1186 = vmatmul.f32.gmra.mxu3 %v2600_v21  ;;  %3835 = vst [vmem:[#allocation23_spill] sm:$0xff] %v2937_v20  ;;  %v782_v6 = vld [vmem:[%s3772_s1 + $0x430] sm:$0xff] }
  0xe5   : > { %963 = vmatmul.f32.gmra.mxu1 %v2862_v5  ;;  %v750_v5 = vld [vmem:[%s3772_s1 + $0x330] sm:$0xff]  ;;  %1592 = vmatpush.msra.mxu3 %v766_v46  ;;  %v542_v46 = vrot.slane %v2403_v59, 2 }
  0xe6   : > { %v2931_v43 = vpop.f32.mrf.mxu2  ;;  %1479 = vmatpush.msra.mxu2 %v750_v5  ;;  %v734_v5 = vld [vmem:[%s3772_s1 + $0x2b0] sm:$0xff]  ;;  %1705 = vmatpush.msra.mxu0 %v782_v6  ;;  %v545_v6 = vrot.slane %v2921_v2, 2 }
  0xe7   : > { %3833 = vst [vmem:[#allocation21_spill] sm:$0xff] %v2931_v43  ;;  %v2934_v41 = vpop.f32.mrf.mxu3  ;;  %v2941_v21 = vpop.f32.mrf.mxu0  ;;  %1366 = vmatpush.msra.mxu1 %v734_v5 }
  0xe8   : > { %3834 = vst [vmem:[#allocation22_spill] sm:$0xff] %v2934_v41  ;;  %v435_v41 = vrot.slane %v2516_v49, 1 }
  0xea   : > { %v2939_v14 = vpop.f32.mrf.mxu1  ;;  %1305 = vmatmul.f32.gmra.mxu0 %v2944_v18  ;;  %v2970_v58 = vsel %vm388_vm0, %v434_v23, %v435_v41 }
  0xeb   : > { %1076 = vmatmul.f32.gmra.mxu2 %v2937_v20 }
  0xec   : > { %1189 = vmatmul.f32.gmra.mxu3 %v2403_v59 }
  0xed   : > { %966 = vmatmul.f32.gmra.mxu1 %v2888_v60 }
  0xee   : > { %v2957_v36 = vpop.f32.mrf.mxu2 }
  0xef   : > { %3837 = vst [vmem:[#allocation25_spill] sm:$0xff] %v2957_v36  ;;  %v2961_v20 = vpop.f32.mrf.mxu3  ;;  %v1261_v24 = vpop.f32.mrf.mxu0  ;;  %v2973_v36 = vld [vmem:[#allocation2 + $0xe8] sm:$0x3] }
  0xf0   : > { %3838 = vst [vmem:[#allocation26_spill] sm:$0xff] %v2961_v20  ;;  %v543_v20 = vrot.slane %v2438_v12, 2  ;;  %v437_v23 = vrot.slane %v2973_v36, 1 }
  0xf2   : > { %v922_v60 = vpop.f32.mrf.mxu1  ;;  %1308 = vmatmul.f32.gmra.mxu0 %v2970_v58  ;;  %v2992_v48 = vsel %vm388_vm0, %v435_v41, %v437_v23  ;;  %v439_v23 = vrot.slane %v2556_v0, 1  ;;  %v3012_v2 = vsel %vm501_vm1, %v543_v20, %v545_v6 }
  0xf3   : > { %1079 = vmatmul.f32.gmra.mxu2 %v2967_v42  ;;  %v2989_v42 = vsel %vm501_vm1, %v542_v46, %v543_v20  ;;  %v765_v46 = vld [vmem:[%s3772_s1 + $0x3a8] sm:$0xff]  ;;  %v548_v20 = vrot.slane %v2516_v49, 2 }
  0xf4   : > { %1192 = vmatmul.f32.gmra.mxu3 %v2438_v12  ;;  %3842 = vst [vmem:[#allocation30_spill] sm:$0xff] %v2989_v42 }
  0xf5   : > { %969 = vmatmul.f32.gmra.mxu1 %v2918_v40  ;;  %v749_v40 = vld [vmem:[%s3772_s1 + $0x328] sm:$0xff]  ;;  %1593 = vmatpush.msra.mxu3 %v765_v46  ;;  %v547_v46 = vrot.slane %v2479_v33, 2 }
  0xf6   : > { %v2983_v22 = vpop.f32.mrf.mxu2  ;;  %1480 = vmatpush.msra.mxu2 %v749_v40  ;;  %v733_v40 = vld [vmem:[%s3772_s1 + $0x2a8] sm:$0xff] }
  0xf7   : > { %3840 = vst [vmem:[#allocation28_spill] sm:$0xff] %v2983_v22  ;;  %v2986_v5 = vpop.f32.mrf.mxu3  ;;  %v1264_v12 = vpop.f32.mrf.mxu0  ;;  %1367 = vmatpush.msra.mxu1 %v733_v40 }
  0xf8   : > { %3841 = vst [vmem:[#allocation29_spill] sm:$0xff] %v2986_v5  ;;  %v923_v5 = vadd.f32 %v922_v60, %v2742_v47 }
  0xfa   : > { %v925_v59 = vpop.f32.mrf.mxu1  ;;  %1311 = vmatmul.f32.gmra.mxu0 %v2992_v48 }
  0xfb   : > { %1082 = vmatmul.f32.gmra.mxu2 %v2989_v42  ;;  %v440_v42 = vrot.slane %v2583_v11, 1 }
  0xfc   : > { %1195 = vmatmul.f32.gmra.mxu3 %v2479_v33  ;;  %v3033_v33 = vsel %vm501_vm1, %v547_v46, %v548_v20  ;;  %v764_v46 = vld [vmem:[%s3772_s1 + $0x3a0] sm:$0xff] }
  0xfd   : > { %972 = vmatmul.f32.gmra.mxu1 %v2944_v18  ;;  %v3015_v45 = vsel %vm388_vm0, %v439_v23, %v440_v42  ;;  %1594 = vmatpush.msra.mxu3 %v764_v46  ;;  %v3066_v46 = vld [vmem:[#allocation2 + $0x118] sm:$0x3] }
  0xfe   : > { %v1035_v41 = vpop.f32.mrf.mxu2  ;;  %3843 = vst [vmem:[#allocation31_spill] sm:$0xff] %v3015_v45 }
  0xff   : > { %v1036_v22 = vadd.f32 %v1035_v41, %v923_v5  ;;  %v1148_v43 = vpop.f32.mrf.mxu3  ;;  %v1267_v18 = vpop.f32.mrf.mxu0  ;;  %v3020_v5 = vld [vmem:[#allocation2 + $0x100] sm:$0x3] }
 0x100   : > { %v442_v6 = vrot.slane %v3020_v5, 1 }
 0x101   : > { %v1149_v47 = vadd.f32 %v1148_v43, %v1036_v22  ;;  %v781_v43 = vld [vmem:[%s3772_s1 + $0x428] sm:$0xff]  ;;  %v926_v22 = vadd.f32 %v925_v59, %v2772_v8  ;;  %v748_v59 = vld [vmem:[%s3772_s1 + $0x320] sm:$0xff] }
 0x102   : > { %v928_v60 = vpop.f32.mrf.mxu1  ;;  %1314 = vmatmul.f32.gmra.mxu0 %v3015_v45  ;;  %1481 = vmatpush.msra.mxu2 %v748_v59 }
 0x103   : > { %v3017_v32 = vadd.f32 %v1261_v24, %v1149_v47  ;;  %1085 = vmatmul.f32.gmra.mxu2 %v3012_v2  ;;  %1706 = vmatpush.msra.mxu0 %v781_v43  ;;  %v550_v43 = vrot.slane %v2973_v36, 2  ;;  %v732_v36 = vld [vmem:[%s3772_s1 + $0x2a0] sm:$0xff] }
 0x104   : > { %1198 = vmatmul.f32.gmra.mxu3 %v2516_v49  ;;  %1368 = vmatpush.msra.mxu1 %v732_v36 }
 0x105   : > { %3844 = vst [vmem:[#allocation32_spill] sm:$0xff] %v3017_v32  ;;  %975 = vmatmul.f32.gmra.mxu1 %v2970_v58  ;;  %v3036_v32 = vsel %vm388_vm0, %v440_v42, %v442_v6  ;;  %v929_v42 = vadd.f32 %v928_v60, %v2803_v37 }
 0x106   : > { %v1038_v24 = vpop.f32.mrf.mxu2  ;;  %3845 = vst [vmem:[#allocation33_spill] sm:$0xff] %v3036_v32 }
 0x107   : > { %v1039_v41 = vadd.f32 %v1038_v24, %v926_v22  ;;  %v1151_v23 = vpop.f32.mrf.mxu3  ;;  %v1270_v47 = vpop.f32.mrf.mxu0  ;;  %v444_v22 = vrot.slane %v2598_v19, 1  ;;  %v445_v24 = vrot.slane %v2619_v30, 1 }
 0x109   : > { %v1152_v49 = vadd.f32 %v1151_v23, %v1039_v41  ;;  %v3058_v23 = vsel %vm501_vm1, %v548_v20, %v550_v43  ;;  %v3061_v59 = vsel %vm388_vm0, %v444_v22, %v445_v24  ;;  %v553_v20 = vrot.slane %v2583_v11, 2  ;;  %v780_v43 = vld [vmem:[%s3772_s1 + $0x420] sm:$0xff] }
 0x10a   : > { %v931_v40 = vpop.f32.mrf.mxu1  ;;  %1317 = vmatmul.f32.gmra.mxu0 %v3036_v32  ;;  %v447_v22 = vrot.slane %v3066_v46, 1 }
 0x10b   : > { %v3038_v8 = vadd.f32 %v1264_v12, %v1152_v49  ;;  %1088 = vmatmul.f32.gmra.mxu2 %v3033_v33  ;;  %1707 = vmatpush.msra.mxu0 %v780_v43  ;;  %v555_v43 = vrot.slane %v3020_v5, 2 }
 0x10c   : > { %1201 = vmatmul.f32.gmra.mxu3 %v2556_v0 }
 0x10d   : > { %3846 = vst [vmem:[#allocation34_spill] sm:$0xff] %v3038_v8  ;;  %978 = vmatmul.f32.gmra.mxu1 %v2992_v48 }
 0x10e   : > { %v1041_v12 = vpop.f32.mrf.mxu2 }
 0x10f   : > { %v1042_v6 = vadd.f32 %v1041_v12, %v929_v42  ;;  %v1154_v41 = vpop.f32.mrf.mxu3  ;;  %v1273_v49 = vpop.f32.mrf.mxu0  ;;  %v552_v42 = vrot.slane %v2556_v0, 2  ;;  %v932_v12 = vadd.f32 %v931_v40, %v2829_v35  ;;  %v747_v40 = vld [vmem:[%s3772_s1 + $0x318] sm:$0xff] }
 0x110   : > { %1482 = vmatpush.msra.mxu2 %v747_v40 }
 0x111   : > { %v1155_v37 = vadd.f32 %v1154_v41, %v1042_v6  ;;  %v3079_v0 = vsel %vm501_vm1, %v552_v42, %v553_v20  ;;  %v763_v42 = vld [vmem:[%s3772_s1 + $0x398] sm:$0xff] }
 0x112   : > { %v934_v60 = vpop.f32.mrf.mxu1  ;;  %1320 = vmatmul.f32.gmra.mxu0 %v3061_v59  ;;  %1595 = vmatpush.msra.mxu3 %v763_v42  ;;  %v3116_v42 = vld [vmem:[#allocation2 + $0x130] sm:$0x3] }
 0x113   : > { %v3063_v8 = vadd.f32 %v1267_v18, %v1155_v37  ;;  %1091 = vmatmul.f32.gmra.mxu2 %v3058_v23 }
 0x114   : > { %1204 = vmatmul.f32.gmra.mxu3 %v2583_v11 }
 0x115   : > { %3847 = vst [vmem:[#allocation35_spill] sm:$0xff] %v3063_v8  ;;  %981 = vmatmul.f32.gmra.mxu1 %v3015_v45  ;;  %v3082_v8 = vsel %vm388_vm0, %v445_v24, %v447_v22  ;;  %v935_v24 = vadd.f32 %v934_v60, %v2859_v52  ;;  %v3101_v22 = vld [vmem:[#allocation2 + $0x128] sm:$0xff]  ;;  %v731_v52 = vld [vmem:[%s3772_s1 + $0x298] sm:$0xff]  ;;  %v3108_v60 = vsel %vm501_vm1, %v553_v20, %v555_v43  ;;  %v558_v20 = vrot.slane %v2619_v30, 2 }
 0x116   : > { %v1044_v18 = vpop.f32.mrf.mxu2  ;;  %3848 = vst [vmem:[#allocation36_spill] sm:$0xff] %v3082_v8  ;;  %v450_v5 = vrot.slane %v3101_v22, 1  ;;  %1369 = vmatpush.msra.mxu1 %v731_v52  ;;  %v779_v43 = vld [vmem:[%s3772_s1 + $0x418] sm:$0xff] }
 0x117   : > { %v1045_v6 = vadd.f32 %v1044_v18, %v932_v12  ;;  %v1157_v41 = vpop.f32.mrf.mxu3  ;;  %v1276_v37 = vpop.f32.mrf.mxu0  ;;  %v3098_v12 = vld [vmem:[#allocation2 + $0x120] sm:$0xff]  ;;  %3850 = vst [vmem:[#allocation38_spill] sm:$0xff] %v3101_v22  ;;  %1708 = vmatpush.msra.mxu0 %v779_v43  ;;  %v560_v43 = vrot.slane %v3066_v46, 2 }
 0x118   : > { %v449_v18 = vrot.slane %v3098_v12, 1 }
 0x119   : > { %v1158_v11 = vadd.f32 %v1157_v41, %v1045_v6 }
 0x11a   : > { %v937_v36 = vpop.f32.mrf.mxu1  ;;  %1323 = vmatmul.f32.gmra.mxu0 %v3082_v8 }
 0x11b   : > { %v3084_v35 = vadd.f32 %v1270_v47, %v1158_v11  ;;  %1094 = vmatmul.f32.gmra.mxu2 %v3079_v0 }
 0x11c   : > { %1207 = vmatmul.f32.gmra.mxu3 %v2598_v19 }
 0x11d   : > { %3849 = vst [vmem:[#allocation37_spill] sm:$0xff] %v3084_v35  ;;  %984 = vmatmul.f32.gmra.mxu1 %v3036_v32  ;;  %v3111_v32 = vsel %vm388_vm0, %v449_v18, %v450_v5  ;;  %v452_v18 = vrot.slane %v3116_v42, 1 }
 0x11e   : > { %v1047_v47 = vpop.f32.mrf.mxu2 }
 0x11f   : > { %v1048_v6 = vadd.f32 %v1047_v47, %v935_v24  ;;  %v1160_v41 = vpop.f32.mrf.mxu3  ;;  %v1279_v35 = vpop.f32.mrf.mxu0  ;;  %v557_v24 = vrot.slane %v2598_v19, 2  ;;  %v938_v47 = vadd.f32 %v937_v36, %v2885_v4  ;;  %v746_v36 = vld [vmem:[%s3772_s1 + $0x310] sm:$0xff] }
 0x120   : > { %1483 = vmatpush.msra.mxu2 %v746_v36 }
 0x121   : > { %v1161_v11 = vadd.f32 %v1160_v41, %v1048_v6  ;;  %v3129_v19 = vsel %vm501_vm1, %v557_v24, %v558_v20  ;;  %v762_v24 = vld [vmem:[%s3772_s1 + $0x390] sm:$0xff] }
 0x122   : > { %v940_v40 = vpop.f32.mrf.mxu1  ;;  %1326 = vmatmul.f32.gmra.mxu0 %v3111_v32  ;;  %1596 = vmatpush.msra.mxu3 %v762_v24  ;;  %v562_v24 = vrot.slane %v3098_v12, 2 }
 0x123   : > { %v3113_v45 = vadd.f32 %v1273_v49, %v1161_v11  ;;  %1097 = vmatmul.f32.gmra.mxu2 %v3108_v60 }
 0x124   : > { %1210 = vmatmul.f32.gmra.mxu3 %v2619_v30 }
 0x125   : > { %3851 = vst [vmem:[#allocation39_spill] sm:$0xff] %v3113_v45  ;;  %987 = vmatmul.f32.gmra.mxu1 %v3061_v59  ;;  %v3132_v45 = vsel %vm388_vm0, %v450_v5, %v452_v18  ;;  %v941_v5 = vadd.f32 %v940_v40, %v2915_v29  ;;  %v455_v18 = vrot.slane %v2518_v50, 1  ;;  %v3156_v29 = vsel %vm501_vm1, %v558_v20, %v560_v43  ;;  %v3164_v50 = vld [vmem:[#allocation2 + $0x148] sm:$0x3]  ;;  %v778_v43 = vld [vmem:[%s3772_s1 + $0x410] sm:$0xff] }
 0x126   : > { %v1050_v49 = vpop.f32.mrf.mxu2  ;;  %v563_v20 = vrot.slane %v3101_v22, 2  ;;  %1709 = vmatpush.msra.mxu0 %v778_v43  ;;  %v565_v43 = vrot.slane %v3116_v42, 2  ;;  %v729_v42 = vld [vmem:[%s3772_s1 + $0x288] sm:$0xff] }
 0x127   : > { %v1051_v6 = vadd.f32 %v1050_v49, %v938_v47  ;;  %v1163_v41 = vpop.f32.mrf.mxu3  ;;  %v1282_v11 = vpop.f32.mrf.mxu0  ;;  %v3148_v47 = vld [vmem:[#allocation2 + $0x138] sm:$0xff] }
 0x128   : > { %3853 = vst [vmem:[#allocation41_spill] sm:$0xff] %v3148_v47  ;;  %v454_v49 = vrot.slane %v3148_v47, 1 }
 0x129   : > { %v1164_v30 = vadd.f32 %v1163_v41, %v1051_v6  ;;  %v730_v41 = vld [vmem:[%s3772_s1 + $0x290] sm:$0xff] }
 0x12a   : > { %v943_v52 = vpop.f32.mrf.mxu1  ;;  %1329 = vmatmul.f32.gmra.mxu0 %v3132_v45  ;;  %1370 = vmatpush.msra.mxu1 %v730_v41 }
 0x12b   : > { %v3134_v4 = vadd.f32 %v1276_v37, %v1164_v30  ;;  %1100 = vmatmul.f32.gmra.mxu2 %v3129_v19 }
 0x12c   : > { %1213 = vmatmul.f32.gmra.mxu3 %v3098_v12  ;;  %1371 = vmatpush.msra.mxu1 %v729_v42 }
 0x12d   : > { %3852 = vst [vmem:[#allocation40_spill] sm:$0xff] %v3134_v4  ;;  %990 = vmatmul.f32.gmra.mxu1 %v3082_v8  ;;  %v3159_v4 = vsel %vm388_vm0, %v454_v49, %v455_v18 }
 0x12e   : > { %v1053_v37 = vpop.f32.mrf.mxu2 }
 0x12f   : > { %v1054_v46 = vadd.f32 %v1053_v37, %v941_v5  ;;  %v1166_v6 = vpop.f32.mrf.mxu3  ;;  %v1285_v36 = vpop.f32.mrf.mxu0  ;;  %v944_v5 = vadd.f32 %v943_v52, %v2941_v21  ;;  %v457_v37 = vrot.slane %v3164_v50, 1  ;;  %v745_v52 = vld [vmem:[%s3772_s1 + $0x308] sm:$0xff] }
 0x130   : > { %1484 = vmatpush.msra.mxu2 %v745_v52 }
 0x131   : > { %v1167_v40 = vadd.f32 %v1166_v6, %v1054_v46  ;;  %v3177_v6 = vsel %vm501_vm1, %v562_v24, %v563_v20  ;;  %v761_v24 = vld [vmem:[%s3772_s1 + $0x388] sm:$0xff] }
 0x132   : > { %v946_v30 = vpop.f32.mrf.mxu1  ;;  %1332 = vmatmul.f32.gmra.mxu0 %v3159_v4  ;;  %1597 = vmatpush.msra.mxu3 %v761_v24  ;;  %v3212_v24 = vld [vmem:[#allocation2 + $0x140] sm:$0xff] }
 0x133   : > { %v3161_v8 = vadd.f32 %v1279_v35, %v1167_v40  ;;  %1103 = vmatmul.f32.gmra.mxu2 %v3156_v29  ;;  %3859 = vst [vmem:[#allocation47_spill] sm:$0xff] %v3212_v24 }
 0x134   : > { %1216 = vmatmul.f32.gmra.mxu3 %v3101_v22  ;;  %v3180_v22 = vsel %vm388_vm0, %v455_v18, %v457_v37  ;;  %v947_v18 = vadd.f32 %v946_v30, %v2752_v57 }
 0x135   : > { %3854 = vst [vmem:[#allocation42_spill] sm:$0xff] %v3161_v8  ;;  %993 = vmatmul.f32.gmra.mxu1 %v3111_v32 }
 0x136   : > { %v1056_v35 = vpop.f32.mrf.mxu2  ;;  %3855 = vst [vmem:[#allocation43_spill] sm:$0xff] %v3180_v22 }
 0x137   : > { %v1057_v49 = vadd.f32 %v1056_v35, %v944_v5  ;;  %v1169_v46 = vpop.f32.mrf.mxu3  ;;  %v1288_v8 = vpop.f32.mrf.mxu0  ;;  %v459_v5 = vrot.slane %v2558_v3, 1  ;;  %v460_v35 = vrot.slane %v2585_v13, 1  ;;  %v3210_v13 = vld [vmem:[#allocation2 + $0x160] sm:$0x3] }
 0x139   : > { %v1170_v41 = vadd.f32 %v1169_v46, %v1057_v49  ;;  %v3202_v46 = vsel %vm501_vm1, %v563_v20, %v565_v43  ;;  %v3205_v52 = vsel %vm388_vm0, %v459_v5, %v460_v35  ;;  %v567_v20 = vrot.slane %v3148_v47, 2 }
 0x13a   : > { %v949_v40 = vpop.f32.mrf.mxu1  ;;  %1335 = vmatmul.f32.gmra.mxu0 %v3180_v22  ;;  %3857 = vst [vmem:[#allocation45_spill] sm:$0xff] %v3205_v52  ;;  %v568_v43 = vrot.slane %v3212_v24, 2 }
 0x13b   : > { %v3182_v21 = vadd.f32 %v1282_v11, %v1170_v41  ;;  %1106 = vmatmul.f32.gmra.mxu2 %v3177_v6 }
 0x13c   : > { %1219 = vmatmul.f32.gmra.mxu3 %v3148_v47 }
 0x13d   : > { %3856 = vst [vmem:[#allocation44_spill] sm:$0xff] %v3182_v21  ;;  %996 = vmatmul.f32.gmra.mxu1 %v3132_v45  ;;  %v253_v21 = vld [vmem:[%s2229_s25 + $0xf8] sm:$0xff] }
 0x13e   : > { %v1059_v11 = vpop.f32.mrf.mxu2  ;;  %285 = vst [vmem:[#allocation2 + $0x189] sm:$0xff] %v253_v21 }
 0x13f   : > { %v1060_v37 = vadd.f32 %v1059_v11, %v947_v18  ;;  %v1172_v49 = vpop.f32.mrf.mxu3  ;;  %v1291_v41 = vpop.f32.mrf.mxu0  ;;  %v777_v18 = vld [vmem:[%s3772_s1 + $0x408] sm:$0xff]  ;;  %v252_v11 = vld [vmem:[%s2229_s25 + $0xf0] sm:$0xff] }
 0x140   : > { %284 = vst [vmem:[#allocation2 + $0x181] sm:$0xff] %v252_v11  ;;  %1710 = vmatpush.msra.mxu0 %v777_v18  ;;  %v744_v18 = vld [vmem:[%s3772_s1 + $0x300] sm:$0xff]  ;;  %v3238_v11 = vld [vmem:[#allocation2 + $0x150] sm:$0xff] }
 0x141   : > { %v1173_v57 = vadd.f32 %v1172_v49, %v1060_v37  ;;  %v462_v37 = vrot.slane %v3210_v13, 1  ;;  %3862 = vst [vmem:[#allocation50_spill] sm:$0xff] %v3238_v11  ;;  %1485 = vmatpush.msra.mxu2 %v744_v18 }
 0x142   : > { %v952_v30 = vpop.f32.mrf.mxu1  ;;  %1338 = vmatmul.f32.gmra.mxu0 %v3205_v52 }
 0x143   : > { %v3207_v3 = vadd.f32 %v1285_v36, %v1173_v57  ;;  %1109 = vmatmul.f32.gmra.mxu2 %v3202_v46  ;;  %v950_v36 = vadd.f32 %v949_v40, %v2774_v17  ;;  %v3226_v57 = vsel %vm501_vm1, %v567_v20, %v568_v43  ;;  %v3230_v17 = vsel %vm388_vm0, %v460_v35, %v462_v37  ;;  %v760_v35 = vld [vmem:[%s3772_s1 + $0x380] sm:$0xff] }
 0x144   : > { %1222 = vmatmul.f32.gmra.mxu3 %v3212_v24  ;;  %3860 = vst [vmem:[#allocation48_spill] sm:$0xff] %v3230_v17  ;;  %v570_v20 = vrot.slane %v3164_v50, 2 }
 0x145   : > { %3858 = vst [vmem:[#allocation46_spill] sm:$0xff] %v3207_v3  ;;  %999 = vmatmul.f32.gmra.mxu1 %v3159_v4  ;;  %1598 = vmatpush.msra.mxu3 %v760_v35  ;;  %v3266_v35 = vld [vmem:[#allocation2 + $0x158] sm:$0xff] }
 0x146   : > { %v1062_v5 = vpop.f32.mrf.mxu2  ;;  %3865 = vst [vmem:[#allocation53_spill] sm:$0xff] %v3266_v35 }
 0x147   : > { %v1063_v49 = vadd.f32 %v1062_v5, %v950_v36  ;;  %v1175_v42 = vpop.f32.mrf.mxu3  ;;  %v1294_v47 = vpop.f32.mrf.mxu0  ;;  %v465_v5 = vrot.slane %v2621_v31, 1  ;;  %v3264_v31 = vld [vmem:[#allocation2 + $0x178] sm:$0x3] }
 0x149   : > { %v1176_v3 = vadd.f32 %v1175_v42, %v1063_v49  ;;  %v728_v49 = vld [vmem:[%s3772_s1 + $0x280] sm:$0xff] }
 0x14a   : > { %v955_v24 = vpop.f32.mrf.mxu1  ;;  %1341 = vmatmul.f32.gmra.mxu0 %v3230_v17  ;;  %1372 = vmatpush.msra.mxu1 %v728_v49 }
 0x14b   : > { %v3232_v40 = vadd.f32 %v1288_v8, %v1176_v3  ;;  %1112 = vmatmul.f32.gmra.mxu2 %v3226_v57  ;;  %v953_v8 = vadd.f32 %v952_v30, %v2801_v34  ;;  %v3248_v3 = vld [vmem:[#allocation2 + $0x168] sm:$0xff]  ;;  %v3256_v34 = vsel %vm501_vm1, %v568_v43, %v570_v20  ;;  %v572_v43 = vrot.slane %v3238_v11, 2 }
 0x14c   : > { %1225 = vmatmul.f32.gmra.mxu3 %v3238_v11  ;;  %3863 = vst [vmem:[#allocation51_spill] sm:$0xff] %v3248_v3  ;;  %v464_v36 = vrot.slane %v3248_v3, 1  ;;  %v573_v20 = vrot.slane %v3266_v35, 2 }
 0x14d   : > { %3861 = vst [vmem:[#allocation49_spill] sm:$0xff] %v3232_v40  ;;  %1002 = vmatmul.f32.gmra.mxu1 %v3180_v22 }
 0x14e   : > { %v1065_v21 = vpop.f32.mrf.mxu2  ;;  %v3259_v40 = vsel %vm388_vm0, %v464_v36, %v465_v5  ;;  %v467_v36 = vrot.slane %v3264_v31, 1  ;;  %v3279_v49 = vsel %vm501_vm1, %v572_v43, %v573_v20  ;;  %v3293_v43 = vld [vmem:[#allocation2 + $0x180] sm:$0xff] }
 0x14f   : > { %v1066_v50 = vadd.f32 %v1065_v21, %v953_v8  ;;  %v1178_v37 = vpop.f32.mrf.mxu3  ;;  %v1297_v18 = vpop.f32.mrf.mxu0  ;;  %v776_v8 = vld [vmem:[%s3772_s1 + $0x400] sm:$0xff]  ;;  %v956_v21 = vadd.f32 %v955_v24, %v2827_v16  ;;  %v3287_v24 = vld [vmem:[#allocation2 + $0x188] sm:$0xff] }
 0x150   : > { %1711 = vmatpush.msra.mxu0 %v776_v8  ;;  %v3282_v11 = vsel %vm388_vm0, %v465_v5, %v467_v36  ;;  %v575_v8 = vrot.slane %v3210_v13, 2 }
 0x151   : > { %v1179_v30 = vadd.f32 %v1178_v37, %v1066_v50 }
 0x152   : > { %v958_v42 = vpop.f32.mrf.mxu1  ;;  %1344 = vmatmul.f32.gmra.mxu0 %v3259_v40 }
 0x153   : > { %v3261_v22 = vadd.f32 %v1291_v41, %v1179_v30  ;;  %1115 = vmatmul.f32.gmra.mxu2 %v3256_v34 }
 0x154   : > { %1228 = vmatmul.f32.gmra.mxu3 %v3266_v35 }
 0x155   : > { %3864 = vst [vmem:[#allocation52_spill] sm:$0xff] %v3261_v22  ;;  %1005 = vmatmul.f32.gmra.mxu1 %v3205_v52  ;;  %v3309_v52 = vld [vmem:[#allocation2 + $0x170] sm:$0xff] }
 0x156   : > { %v1068_v41 = vpop.f32.mrf.mxu2  ;;  %3869 = vst [vmem:[#allocation57_spill] sm:$0xff] %v3309_v52 }
 0x157   : > { %v1069_v50 = vadd.f32 %v1068_v41, %v956_v21  ;;  %v1181_v37 = vpop.f32.mrf.mxu3  ;;  %v1300_v35 = vpop.f32.mrf.mxu0  ;;  %v959_v21 = vadd.f32 %v958_v42, %v2857_v26  ;;  %v618_v41 = vrot.slane %v3287_v24, 1 }
 0x159   : > { %v1182_v30 = vadd.f32 %v1181_v37, %v1069_v50  ;;  %v3299_v37 = vsel %vm501_vm1, %v573_v20, %v575_v8  ;;  %v578_v20 = vrot.slane %v3309_v52, 2 }
 0x15a   : > { %v961_v22 = vpop.f32.mrf.mxu1  ;;  %1347 = vmatmul.f32.gmra.mxu0 %v3282_v11  ;;  %3867 = vst [vmem:[#allocation55_spill] sm:$0xff] %v3299_v37 }
 0x15b   : > { %v3284_v16 = vadd.f32 %v1294_v47, %v1182_v30  ;;  %1118 = vmatmul.f32.gmra.mxu2 %v3279_v49  ;;  %v617_v47 = vrot.slane %v3293_v43, 1  ;;  %v962_v8 = vadd.f32 %v961_v22, %v2883_v51  ;;  %v580_v51 = vrot.slane %v3264_v31, 2 }
 0x15c   : > { %1231 = vmatmul.f32.gmra.mxu3 %v3248_v3 }
 0x15d   : > { %3866 = vst [vmem:[#allocation54_spill] sm:$0xff] %v3284_v16  ;;  %1008 = vmatmul.f32.gmra.mxu1 %v3230_v17  ;;  %v3302_v26 = vsel %vm388_vm0, %v617_v47, %v618_v41  ;;  %v3307_v17 = vld [vmem:[#allocation2 + $0x190] sm:$0x3] }
 0x15e   : > { %v1071_v5 = vpop.f32.mrf.mxu2 }
 0x15f   : > { %v1072_v36 = vadd.f32 %v1071_v5, %v959_v21  ;;  %v1184_v50 = vpop.f32.mrf.mxu3  ;;  %v1303_v16 = vpop.f32.mrf.mxu0  ;;  %v577_v21 = vrot.slane %v3248_v3, 2  ;;  %v620_v5 = vrot.slane %v3307_v17, 1 }
 0x161   : > { %v1185_v30 = vadd.f32 %v1184_v50, %v1072_v36  ;;  %v3319_v50 = vsel %vm501_vm1, %v577_v21, %v578_v20  ;;  %v3322_v3 = vsel %vm388_vm0, %v618_v41, %v620_v5  ;;  %v3333_v41 = vsel %vm501_vm1, %v578_v20, %v580_v51 }
 0x162   : > { %v964_v13 = vpop.f32.mrf.mxu1  ;;  %1350 = vmatmul.f32.gmra.mxu0 %v3302_v26 }
 0x163   : > { %v3304_v42 = vadd.f32 %v1297_v18, %v1185_v30  ;;  %1121 = vmatmul.f32.gmra.mxu2 %v3299_v37  ;;  %v965_v22 = vadd.f32 %v964_v13, %v2913_v53 }
 0x164   : > { %1234 = vmatmul.f32.gmra.mxu3 %v3309_v52 }
 0x165   : > { %3868 = vst [vmem:[#allocation56_spill] sm:$0xff] %v3304_v42  ;;  %1011 = vmatmul.f32.gmra.mxu1 %v3259_v40 }
 0x166   : > { %v1074_v18 = vpop.f32.mrf.mxu2 }
 0x167   : > { %v1075_v47 = vadd.f32 %v1074_v18, %v962_v8  ;;  %v1187_v36 = vpop.f32.mrf.mxu3  ;;  %v1306_v37 = vpop.f32.mrf.mxu0 }
 0x169   : > { %v1188_v30 = vadd.f32 %v1187_v36, %v1075_v47 }
 0x16a   : > { %v967_v42 = vpop.f32.mrf.mxu1  ;;  %1353 = vmatmul.f32.gmra.mxu0 %v3322_v3 }
 0x16b   : > { %v3324_v52 = vadd.f32 %v1300_v35, %v1188_v30  ;;  %1124 = vmatmul.f32.gmra.mxu2 %v3319_v50  ;;  %v968_v53 = vadd.f32 %v967_v42, %v2939_v14 }
 0x16c   : > { %1237 = vmatmul.f32.gmra.mxu3 %v3293_v43 }
 0x16d   : > { %1014 = vmatmul.f32.gmra.mxu1 %v3282_v11 }
 0x16e   : > { %v1077_v21 = vpop.f32.mrf.mxu2 }
 0x16f   : > { %v1078_v8 = vadd.f32 %v1077_v21, %v965_v22  ;;  %v1190_v18 = vpop.f32.mrf.mxu3  ;;  %v1309_v47 = vpop.f32.mrf.mxu0 }
 0x171   : > { %v1191_v35 = vadd.f32 %v1190_v18, %v1078_v8 }
 0x172   : > { %v970_v5 = vpop.f32.mrf.mxu1  ;;  %1712 = vmatmul.f32.vlgmr.msra.gmra.mxu0 %v2691_v27 }
 0x173   : > { %v3335_v36 = vadd.f32 %v1303_v16, %v1191_v35  ;;  %1127 = vmatmul.f32.gmra.mxu2 %v3333_v41  ;;  %v2148_v16 = vld [vmem:[#allocation2 + $0x30] sm:$0xff]  ;;  %v971_v8 = vadd.f32 %v970_v5, %v2789_v25 }
 0x174   : > { %1240 = vmatmul.f32.gmra.mxu3 %v3287_v24 }
 0x175   : > { %1373 = vmatmul.f32.vlgmr.msra.gmra.mxu1 %v2656_v61 }
 0x176   : > { %v1080_v31 = vpop.f32.mrf.mxu2 }
 0x177   : > { %v1081_v13 = vadd.f32 %v1080_v31, %v968_v53  ;;  %v1193_v30 = vpop.f32.mrf.mxu3  ;;  %v1312_v22 = vpop.f32.mrf.mxu0 }
 0x179   : > { %v1194_v20 = vadd.f32 %v1193_v30, %v1081_v13 }
 0x17a   : > { %v973_v51 = vpop.f32.mrf.mxu1  ;;  %1715 = vmatmul.f32.gmra.mxu0 %v2712_v38 }
 0x17b   : > { %v3342_v21 = vadd.f32 %v1306_v37, %v1194_v20  ;;  %1486 = vmatmul.f32.vlgmr.msra.gmra.mxu2 %v2148_v16  ;;  %v2149_v37 = vld [vmem:[#allocation2 + $0x38] sm:$0xff] }
 0x17c   : > { %1599 = vmatmul.f32.vlgmr.msra.gmra.mxu3 %v2646_v54  ;;  %v974_v54 = vadd.f32 %v973_v51, %v2819_v15 }
 0x17d   : > { %1376 = vmatmul.f32.gmra.mxu1 %v2676_v9 }
 0x17e   : > { %v1083_v61 = vpop.f32.mrf.mxu2 }
 0x17f   : > { %v1084_v14 = vadd.f32 %v1083_v61, %v971_v8  ;;  %v1196_v42 = vpop.f32.mrf.mxu3  ;;  %v1315_v53 = vpop.f32.mrf.mxu0 }
 0x181   : > { %v1197_v18 = vadd.f32 %v1196_v42, %v1084_v14 }
 0x182   : > { %v976_v35 = vpop.f32.mrf.mxu1  ;;  %1718 = vmatmul.f32.gmra.mxu0 %v2727_v44 }
 0x183   : > { %v3348_v31 = vadd.f32 %v1309_v47, %v1197_v18  ;;  %1489 = vmatmul.f32.gmra.mxu2 %v2149_v37  ;;  %v2150_v47 = vld [vmem:[#allocation2 + $0x48] sm:$0xff] }
 0x184   : > { %1602 = vmatmul.f32.gmra.mxu3 %v2659_v62  ;;  %v977_v62 = vadd.f32 %v976_v35, %v2845_v63 }
 0x185   : > { %1379 = vmatmul.f32.gmra.mxu1 %v2691_v27 }
 0x186   : > { %v1086_v9 = vpop.f32.mrf.mxu2 }
 0x187   : > { %v1087_v25 = vadd.f32 %v1086_v9, %v974_v54  ;;  %v1199_v5 = vpop.f32.mrf.mxu3  ;;  %v1318_v20 = vpop.f32.mrf.mxu0 }
 0x189   : > { %v1200_v13 = vadd.f32 %v1199_v5, %v1087_v25 }
 0x18a   : > { %v979_v30 = vpop.f32.mrf.mxu1  ;;  %1721 = vmatmul.f32.gmra.mxu0 %v2750_v56 }
 0x18b   : > { %v3354_v16 = vadd.f32 %v1312_v22, %v1200_v13  ;;  %1492 = vmatmul.f32.gmra.mxu2 %v2150_v47  ;;  %v2151_v22 = vld [vmem:[#allocation2 + $0x50] sm:$0xff] }
 0x18c   : > { %1605 = vmatmul.f32.gmra.mxu3 %v2679_v10  ;;  %v980_v10 = vadd.f32 %v979_v30, %v2875_v55  ;;  %v3870_v55 = vld [vmem:[#allocation7_spill] sm:$0xff] }
 0x18d   : > { %1382 = vmatmul.f32.gmra.mxu1 %v2712_v38 }
 0x18e   : > { %v1089_v27 = vpop.f32.mrf.mxu2 }
 0x18f   : > { %v1090_v15 = vadd.f32 %v1089_v27, %v977_v62  ;;  %v1202_v51 = vpop.f32.mrf.mxu3  ;;  %v1321_v14 = vpop.f32.mrf.mxu0  ;;  %v3871_v27 = vld [vmem:[#allocation3_spill] sm:$0xff] }
 0x191   : > { %v1203_v8 = vadd.f32 %v1202_v51, %v1090_v15  ;;  %v3872_v15 = vld [vmem:[#allocation21_spill] sm:$0xff] }
 0x192   : > { %v982_v61 = vpop.f32.mrf.mxu1  ;;  %1724 = vmatmul.f32.gmra.mxu0 %v2770_v7 }
 0x193   : > { %v3360_v42 = vadd.f32 %v1315_v53, %v1203_v8  ;;  %1495 = vmatmul.f32.gmra.mxu2 %v2151_v22  ;;  %v2152_v53 = vld [vmem:[#allocation2 + $0x60] sm:$0xff] }
 0x194   : > { %1608 = vmatmul.f32.gmra.mxu3 %v2694_v28  ;;  %v983_v28 = vadd.f32 %v982_v61, %v2901_v1  ;;  %v3873_v1 = vld [vmem:[#allocation10_spill] sm:$0xff] }
 0x195   : > { %1385 = vmatmul.f32.gmra.mxu1 %v2727_v44 }
 0x196   : > { %v1092_v38 = vpop.f32.mrf.mxu2 }
 0x197   : > { %v1093_v63 = vadd.f32 %v1092_v38, %v980_v10  ;;  %v1205_v18 = vpop.f32.mrf.mxu3  ;;  %v1324_v54 = vpop.f32.mrf.mxu0 }
 0x199   : > { %v1206_v35 = vadd.f32 %v1205_v18, %v1093_v63  ;;  %v3874_v63 = vld [vmem:[#allocation4_spill] sm:$0xff]  ;;  %v3875_v18 = vld [vmem:[#allocation25_spill] sm:$0xff] }
 0x19a   : > { %v985_v37 = vpop.f32.mrf.mxu1  ;;  %1727 = vmatmul.f32.gmra.mxu0 %v3870_v55 }
 0x19b   : > { %v3366_v9 = vadd.f32 %v1318_v20, %v1206_v35  ;;  %1498 = vmatmul.f32.gmra.mxu2 %v2152_v53  ;;  %v2153_v20 = vld [vmem:[#allocation2 + $0x68] sm:$0xff] }
 0x19c   : > { %1611 = vmatmul.f32.gmra.mxu3 %v2715_v39  ;;  %v986_v39 = vadd.f32 %v985_v37, %v3872_v15  ;;  %v3876_v37 = vld [vmem:[#allocation13_spill] sm:$0xff] }
 0x19d   : > { %1388 = vmatmul.f32.gmra.mxu1 %v2750_v56 }
 0x19e   : > { %v1095_v44 = vpop.f32.mrf.mxu2 }
 0x19f   : > { %v1096_v25 = vadd.f32 %v1095_v44, %v983_v28  ;;  %v1208_v5 = vpop.f32.mrf.mxu3  ;;  %v1327_v47 = vpop.f32.mrf.mxu0 }
 0x1a1   : > { %v1209_v13 = vadd.f32 %v1208_v5, %v1096_v25 }
 0x1a2   : > { %v988_v30 = vpop.f32.mrf.mxu1  ;;  %1730 = vmatmul.f32.gmra.mxu0 %v3873_v1 }
 0x1a3   : > { %v3372_v62 = vadd.f32 %v1321_v14, %v1209_v13  ;;  %1501 = vmatmul.f32.gmra.mxu2 %v2153_v20  ;;  %v2154_v14 = vld [vmem:[#allocation2 + $0x78] sm:$0xff]  ;;  %v989_v35 = vadd.f32 %v988_v30, %v3875_v18  ;;  %v3877_v20 = vld [vmem:[#allocation5_spill] sm:$0xff]  ;;  %v3881_v18 = vld [vmem:[#allocation6_spill] sm:$0xff] }
 0x1a4   : > { %1614 = vmatmul.f32.gmra.mxu3 %v3871_v27  ;;  %v3878_v27 = vld [vmem:[#allocation28_spill] sm:$0xff] }
 0x1a5   : > { %1391 = vmatmul.f32.gmra.mxu1 %v2770_v7  ;;  %v3879_v30 = vld [vmem:[#allocation16_spill] sm:$0xff] }
 0x1a6   : > { %v1098_v56 = vpop.f32.mrf.mxu2 }
 0x1a7   : > { %v1099_v51 = vadd.f32 %v1098_v56, %v986_v39  ;;  %v1211_v8 = vpop.f32.mrf.mxu3  ;;  %v1330_v10 = vpop.f32.mrf.mxu0 }
 0x1a9   : > { %v1212_v61 = vadd.f32 %v1211_v8, %v1099_v51 }
 0x1aa   : > { %v991_v22 = vpop.f32.mrf.mxu1  ;;  %1733 = vmatmul.f32.gmra.mxu0 %v3876_v37 }
 0x1ab   : > { %v3378_v38 = vadd.f32 %v1324_v54, %v1212_v61  ;;  %1504 = vmatmul.f32.gmra.mxu2 %v2154_v14  ;;  %v2155_v54 = vld [vmem:[#allocation2 + $0x80] sm:$0xff]  ;;  %v992_v15 = vadd.f32 %v991_v22, %v3878_v27  ;;  %v3882_v22 = vld [vmem:[#allocation19_spill] sm:$0xff] }
 0x1ac   : > { %1617 = vmatmul.f32.gmra.mxu3 %v3874_v63  ;;  %v3880_v63 = vld [vmem:[#allocation8_spill] sm:$0xff]  ;;  %v3883_v27 = vld [vmem:[#allocation11_spill] sm:$0xff] }
 0x1ad   : > { %1394 = vmatmul.f32.gmra.mxu1 %v3870_v55 }
 0x1ae   : > { %v1101_v7 = vpop.f32.mrf.mxu2 }
 0x1af   : > { %v1102_v53 = vadd.f32 %v1101_v7, %v989_v35  ;;  %v1214_v28 = vpop.f32.mrf.mxu3  ;;  %v1333_v5 = vpop.f32.mrf.mxu0 }
 0x1b1   : > { %v1215_v44 = vadd.f32 %v1214_v28, %v1102_v53 }
 0x1b2   : > { %v994_v25 = vpop.f32.mrf.mxu1  ;;  %1736 = vmatmul.f32.gmra.mxu0 %v3879_v30 }
 0x1b3   : > { %v3384_v13 = vadd.f32 %v1327_v47, %v1215_v44  ;;  %1507 = vmatmul.f32.gmra.mxu2 %v2155_v54  ;;  %v2156_v47 = vld [vmem:[#allocation2 + $0x90] sm:$0xff]  ;;  %v995_v35 = vadd.f32 %v994_v25, %v3881_v18 }
 0x1b4   : > { %1620 = vmatmul.f32.gmra.mxu3 %v3877_v20  ;;  %v3885_v25 = vld [vmem:[#allocation23_spill] sm:$0xff] }
 0x1b5   : > { %1397 = vmatmul.f32.gmra.mxu1 %v3873_v1 }
 0x1b6   : > { %v1104_v55 = vpop.f32.mrf.mxu2 }
 0x1b7   : > { %v1105_v39 = vadd.f32 %v1104_v55, %v992_v15  ;;  %v1217_v56 = vpop.f32.mrf.mxu3  ;;  %v1336_v61 = vpop.f32.mrf.mxu0  ;;  %v3884_v15 = vld [vmem:[#allocation9_spill] sm:$0xff] }
 0x1b9   : > { %v1218_v51 = vadd.f32 %v1217_v56, %v1105_v39 }
 0x1ba   : > { %v997_v8 = vpop.f32.mrf.mxu1  ;;  %1739 = vmatmul.f32.gmra.mxu0 %v3882_v22 }
 0x1bb   : > { %v3390_v14 = vadd.f32 %v1330_v10, %v1218_v51  ;;  %1510 = vmatmul.f32.gmra.mxu2 %v2156_v47  ;;  %v2157_v10 = vld [vmem:[#allocation2 + $0x98] sm:$0xff]  ;;  %v998_v55 = vadd.f32 %v997_v8, %v3884_v15  ;;  %v3888_v8 = vld [vmem:[#allocation27_spill] sm:$0xff] }
 0x1bc   : > { %1623 = vmatmul.f32.gmra.mxu3 %v3880_v63 }
 0x1bd   : > { %1400 = vmatmul.f32.gmra.mxu1 %v3876_v37 }
 0x1be   : > { %v1107_v1 = vpop.f32.mrf.mxu2 }
 0x1bf   : > { %v1108_v7 = vadd.f32 %v1107_v1, %v995_v35  ;;  %v1220_v53 = vpop.f32.mrf.mxu3  ;;  %v1339_v54 = vpop.f32.mrf.mxu0  ;;  %v3886_v35 = vld [vmem:[#allocation14_spill] sm:$0xff]  ;;  %v3887_v1 = vld [vmem:[#allocation12_spill] sm:$0xff] }
 0x1c1   : > { %v1221_v28 = vadd.f32 %v1220_v53, %v1108_v7 }
 0x1c2   : > { %v1000_v44 = vpop.f32.mrf.mxu1  ;;  %1742 = vmatmul.f32.gmra.mxu0 %v3885_v25 }
 0x1c3   : > { %v3396_v20 = vadd.f32 %v1333_v5, %v1221_v28  ;;  %1513 = vmatmul.f32.gmra.mxu2 %v2157_v10  ;;  %v2158_v5 = vld [vmem:[#allocation2 + $0xa8] sm:$0xff]  ;;  %v1001_v7 = vadd.f32 %v1000_v44, %v3887_v1 }
 0x1c4   : > { %1626 = vmatmul.f32.gmra.mxu3 %v3883_v27  ;;  %v3891_v44 = vld [vmem:[#allocation30_spill] sm:$0xff] }
 0x1c5   : > { %1403 = vmatmul.f32.gmra.mxu1 %v3879_v30 }
 0x1c6   : > { %v1110_v37 = vpop.f32.mrf.mxu2 }
 0x1c7   : > { %v1111_v39 = vadd.f32 %v1110_v37, %v998_v55  ;;  %v1223_v56 = vpop.f32.mrf.mxu3  ;;  %v1342_v63 = vpop.f32.mrf.mxu0  ;;  %v3889_v37 = vld [vmem:[#allocation17_spill] sm:$0xff] }
 0x1c9   : > { %v1224_v51 = vadd.f32 %v1223_v56, %v1111_v39  ;;  %v3890_v39 = vld [vmem:[#allocation15_spill] sm:$0xff] }
 0x1ca   : > { %v1003_v47 = vpop.f32.mrf.mxu1  ;;  %1745 = vmatmul.f32.gmra.mxu0 %v3888_v8 }
 0x1cb   : > { %v3402_v18 = vadd.f32 %v1336_v61, %v1224_v51  ;;  %1516 = vmatmul.f32.gmra.mxu2 %v2158_v5  ;;  %v2159_v61 = vld [vmem:[#allocation2 + $0xb0] sm:$0xff]  ;;  %v1004_v56 = vadd.f32 %v1003_v47, %v3890_v39 }
 0x1cc   : > { %1629 = vmatmul.f32.gmra.mxu3 %v3886_v35 }
 0x1cd   : > { %1406 = vmatmul.f32.gmra.mxu1 %v3882_v22 }
 0x1ce   : > { %v1113_v30 = vpop.f32.mrf.mxu2 }
 0x1cf   : > { %v1114_v53 = vadd.f32 %v1113_v30, %v1001_v7  ;;  %v1226_v28 = vpop.f32.mrf.mxu3  ;;  %v1345_v15 = vpop.f32.mrf.mxu0 }
 0x1d1   : > { %v1227_v10 = vadd.f32 %v1226_v28, %v1114_v53  ;;  %v3892_v53 = vld [vmem:[#allocation20_spill] sm:$0xff]  ;;  %v3893_v28 = vld [vmem:[#allocation18_spill] sm:$0xff] }
 0x1d2   : > { %v1006_v27 = vpop.f32.mrf.mxu1  ;;  %1748 = vmatmul.f32.gmra.mxu0 %v3891_v44 }
 0x1d3   : > { %v3408_v55 = vadd.f32 %v1339_v54, %v1227_v10  ;;  %1519 = vmatmul.f32.gmra.mxu2 %v2159_v61  ;;  %v2160_v54 = vld [vmem:[#allocation2 + $0xc0] sm:$0xff]  ;;  %v1007_v10 = vadd.f32 %v1006_v27, %v3893_v28 }
 0x1d4   : > { %1632 = vmatmul.f32.gmra.mxu3 %v3889_v37 }
 0x1d5   : > { %1409 = vmatmul.f32.gmra.mxu1 %v3885_v25 }
 0x1d6   : > { %v1116_v22 = vpop.f32.mrf.mxu2 }
 0x1d7   : > { %v1117_v51 = vadd.f32 %v1116_v22, %v1004_v56  ;;  %v1229_v5 = vpop.f32.mrf.mxu3  ;;  %v1348_v7 = vpop.f32.mrf.mxu0 }
 0x1d9   : > { %v1230_v35 = vadd.f32 %v1229_v5, %v1117_v51  ;;  %v3894_v51 = vld [vmem:[#allocation24_spill] sm:$0xff]  ;;  %v3895_v5 = vld [vmem:[#allocation22_spill] sm:$0xff] }
 0x1da   : > { %v1009_v1 = vpop.f32.mrf.mxu1  ;;  %1751 = vmatmul.f32.gmra.mxu0 %v3012_v2 }
 0x1db   : > { %v3414_v30 = vadd.f32 %v1342_v63, %v1230_v35  ;;  %1522 = vmatmul.f32.gmra.mxu2 %v2160_v54  ;;  %v2161_v63 = vld [vmem:[#allocation2 + $0xc8] sm:$0xff]  ;;  %v1010_v35 = vadd.f32 %v1009_v1, %v3895_v5 }
 0x1dc   : > { %1635 = vmatmul.f32.gmra.mxu3 %v3892_v53 }
 0x1dd   : > { %1412 = vmatmul.f32.gmra.mxu1 %v3888_v8 }
 0x1de   : > { %v1119_v25 = vpop.f32.mrf.mxu2 }
 0x1df   : > { %v1120_v47 = vadd.f32 %v1119_v25, %v1007_v10  ;;  %v1232_v61 = vpop.f32.mrf.mxu3  ;;  %v1351_v56 = vpop.f32.mrf.mxu0 }
 0x1e1   : > { %v1233_v37 = vadd.f32 %v1232_v61, %v1120_v47  ;;  %v3896_v47 = vld [vmem:[#allocation26_spill] sm:$0xff] }
 0x1e2   : > { %v1012_v39 = vpop.f32.mrf.mxu1  ;;  %1754 = vmatmul.f32.gmra.mxu0 %v3033_v33 }
 0x1e3   : > { %v3420_v22 = vadd.f32 %v1345_v15, %v1233_v37  ;;  %1525 = vmatmul.f32.gmra.mxu2 %v2161_v63  ;;  %v2162_v15 = vld [vmem:[#allocation2 + $0xd8] sm:$0xff]  ;;  %v1013_v61 = vadd.f32 %v1012_v39, %v3896_v47 }
 0x1e4   : > { %1638 = vmatmul.f32.gmra.mxu3 %v3894_v51 }
 0x1e5   : > { %1415 = vmatmul.f32.gmra.mxu1 %v3891_v44 }
 0x1e6   : > { %v1122_v8 = vpop.f32.mrf.mxu2 }
 0x1e7   : > { %v1123_v27 = vadd.f32 %v1122_v8, %v1010_v35  ;;  %v1235_v54 = vpop.f32.mrf.mxu3  ;;  %v1354_v10 = vpop.f32.mrf.mxu0  ;;  %v3897_v8 = vld [vmem:[#allocation29_spill] sm:$0xff] }
 0x1e9   : > { %v1236_v53 = vadd.f32 %v1235_v54, %v1123_v27 }
 0x1ea   : > { %v1015_v28 = vpop.f32.mrf.mxu1  ;;  %1757 = vmatmul.f32.gmra.mxu0 %v3058_v23 }
 0x1eb   : > { %v3426_v25 = vadd.f32 %v1348_v7, %v1236_v53  ;;  %1528 = vmatmul.f32.gmra.mxu2 %v2162_v15  ;;  %v2163_v7 = vld [vmem:[#allocation2 + $0xe0] sm:$0xff] }
 0x1ec   : > { %1641 = vmatmul.f32.gmra.mxu3 %v2970_v58  ;;  %v1016_v58 = vadd.f32 %v1015_v28, %v3897_v8  ;;  %v3901_v8 = vld [vmem:[#allocation34_spill] sm:$0xff] }
 0x1ed   : > { %1418 = vmatmul.f32.gmra.mxu1 %v3012_v2 }
 0x1ee   : > { %v1125_v44 = vpop.f32.mrf.mxu2 }
 0x1ef   : > { %v1126_v1 = vadd.f32 %v1125_v44, %v1013_v61  ;;  %v1238_v37 = vpop.f32.mrf.mxu3  ;;  %v1713_v5 = vpop.f32.mrf.mxu0  ;;  %v3898_v61 = vld [vmem:[#allocation31_spill] sm:$0xff] }
 0x1f1   : > { %v1239_v63 = vadd.f32 %v1238_v37, %v1126_v1 }
 0x1f2   : > { %v1374_v51 = vpop.f32.mrf.mxu1  ;;  %1760 = vmatmul.f32.gmra.mxu0 %v3079_v0 }
 0x1f3   : > { %v3432_v35 = vadd.f32 %v1351_v56, %v1239_v63  ;;  %1531 = vmatmul.f32.gmra.mxu2 %v2163_v7  ;;  %v2164_v56 = vld [vmem:[#allocation2 + $0xf0] sm:$0xff] }
 0x1f4   : > { %1644 = vmatmul.f32.gmra.mxu3 %v2992_v48  ;;  %v3899_v48 = vld [vmem:[#allocation32_spill] sm:$0xff] }
 0x1f5   : > { %1421 = vmatmul.f32.gmra.mxu1 %v3033_v33  ;;  %v1375_v44 = vadd.f32 %v1374_v51, %v3899_v48  ;;  %v2165_v51 = vld [vmem:[#allocation2 + $0xf8] sm:$0xff]  ;;  %v2166_v48 = vld [vmem:[#allocation2 + $0x108] sm:$0xff] }
 0x1f6   : > { %v1128_v2 = vpop.f32.mrf.mxu2 }
 0x1f7   : > { %v1129_v39 = vadd.f32 %v1128_v2, %v1016_v58  ;;  %v1241_v27 = vpop.f32.mrf.mxu3  ;;  %v1716_v15 = vpop.f32.mrf.mxu0 }
 0x1f9   : > { %v1242_v54 = vadd.f32 %v1241_v27, %v1129_v39 }
 0x1fa   : > { %v1377_v53 = vpop.f32.mrf.mxu1  ;;  %1763 = vmatmul.f32.gmra.mxu0 %v3108_v60 }
 0x1fb   : > { %v3438_v47 = vadd.f32 %v1354_v10, %v1242_v54  ;;  %1534 = vmatmul.f32.gmra.mxu2 %v2164_v56  ;;  %v1378_v58 = vadd.f32 %v1377_v53, %v3901_v8 }
 0x1fc   : > { %1647 = vmatmul.f32.gmra.mxu3 %v3898_v61 }
 0x1fd   : > { %1424 = vmatmul.f32.gmra.mxu1 %v3058_v23  ;;  %v3900_v23 = vld [vmem:[#allocation33_spill] sm:$0xff] }
 0x1fe   : > { %v1487_v33 = vpop.f32.mrf.mxu2 }
 0x1ff   : > { %v1488_v28 = vadd.f32 %v1487_v33, %v1375_v44  ;;  %v1600_v1 = vpop.f32.mrf.mxu3  ;;  %v1719_v63 = vpop.f32.mrf.mxu0  ;;  %v3902_v44 = vld [vmem:[#allocation35_spill] sm:$0xff] }
 0x201   : > { %v1601_v37 = vadd.f32 %v1600_v1, %v1488_v28 }
 0x202   : > { %v1380_v10 = vpop.f32.mrf.mxu1  ;;  %1766 = vmatmul.f32.gmra.mxu0 %v3129_v19 }
 0x203   : > { %v3451_v7 = vadd.f32 %v1713_v5, %v1601_v37  ;;  %1537 = vmatmul.f32.gmra.mxu2 %v2165_v51  ;;  %v1381_v53 = vadd.f32 %v1380_v10, %v3902_v44  ;;  %v3904_v10 = vld [vmem:[#allocation37_spill] sm:$0xff] }
 0x204   : > { %1650 = vmatmul.f32.gmra.mxu3 %v3900_v23  ;;  %v2167_v23 = vld [vmem:[#allocation2 + $0x110] sm:$0xff] }
 0x205   : > { %1948 = vst [vmem:[%s3449_s4] sm:$0xff] %v3451_v7  ;;  %1427 = vmatmul.f32.gmra.mxu1 %v3079_v0 }
 0x206   : > { %v1490_v2 = vpop.f32.mrf.mxu2 }
 0x207   : > { %v1491_v39 = vadd.f32 %v1490_v2, %v1378_v58  ;;  %v1603_v27 = vpop.f32.mrf.mxu3  ;;  %v1722_v5 = vpop.f32.mrf.mxu0 }
 0x209   : > { %v1604_v54 = vadd.f32 %v1603_v27, %v1491_v39 }
 0x20a   : > { %v1383_v56 = vpop.f32.mrf.mxu1  ;;  %1769 = vmatmul.f32.gmra.mxu0 %v3156_v29 }
 0x20b   : > { %v3459_v61 = vadd.f32 %v1716_v15, %v1604_v54  ;;  %1540 = vmatmul.f32.gmra.mxu2 %v2166_v48  ;;  %v1384_v8 = vadd.f32 %v1383_v56, %v3904_v10  ;;  %v3905_v56 = vld [vmem:[#allocation39_spill] sm:$0xff] }
 0x20c   : > { %1653 = vmatmul.f32.gmra.mxu3 %v3061_v59  ;;  %v3903_v59 = vld [vmem:[#allocation36_spill] sm:$0xff] }
 0x20d   : > { %1949 = vst [vmem:[%s3449_s4 + $0x8] sm:$0xff] %v3459_v61  ;;  %1430 = vmatmul.f32.gmra.mxu1 %v3108_v60 }
 0x20e   : > { %v1493_v0 = vpop.f32.mrf.mxu2 }
 0x20f   : > { %v1494_v33 = vadd.f32 %v1493_v0, %v1381_v53  ;;  %v1606_v28 = vpop.f32.mrf.mxu3  ;;  %v1725_v15 = vpop.f32.mrf.mxu0 }
 0x211   : > { %v1607_v1 = vadd.f32 %v1606_v28, %v1494_v33 }
 0x212   : > { %v1386_v37 = vpop.f32.mrf.mxu1  ;;  %1772 = vmatmul.f32.gmra.mxu0 %v3177_v6 }
 0x213   : > { %v3467_v51 = vadd.f32 %v1719_v63, %v1607_v1  ;;  %1543 = vmatmul.f32.gmra.mxu2 %v2167_v23  ;;  %v1387_v48 = vadd.f32 %v1386_v37, %v3905_v56 }
 0x214   : > { %1656 = vmatmul.f32.gmra.mxu3 %v3903_v59 }
 0x215   : > { %1950 = vst [vmem:[%s3449_s4 + $0x10] sm:$0xff] %v3467_v51  ;;  %1433 = vmatmul.f32.gmra.mxu1 %v3129_v19 }
 0x216   : > { %v1496_v60 = vpop.f32.mrf.mxu2 }
 0x217   : > { %v1497_v58 = vadd.f32 %v1496_v60, %v1384_v8  ;;  %v1609_v2 = vpop.f32.mrf.mxu3  ;;  %v1728_v63 = vpop.f32.mrf.mxu0  ;;  %v3908_v60 = vld [vmem:[#allocation41_spill] sm:$0xff] }
 0x219   : > { %v1610_v39 = vadd.f32 %v1609_v2, %v1497_v58 }
 0x21a   : > { %v1389_v27 = vpop.f32.mrf.mxu1  ;;  %1775 = vmatmul.f32.gmra.mxu0 %v3202_v46 }
 0x21b   : > { %v3475_v54 = vadd.f32 %v1722_v5, %v1610_v39  ;;  %1546 = vmatmul.f32.gmra.mxu2 %v3098_v12  ;;  %v3906_v12 = vld [vmem:[#allocation38_spill] sm:$0xff] }
 0x21c   : > { %1659 = vmatmul.f32.gmra.mxu3 %v3111_v32  ;;  %v3907_v32 = vld [vmem:[#allocation40_spill] sm:$0xff] }
 0x21d   : > { %1951 = vst [vmem:[%s3449_s4 + $0x18] sm:$0xff] %v3475_v54  ;;  %1436 = vmatmul.f32.gmra.mxu1 %v3156_v29  ;;  %v1390_v1 = vadd.f32 %v1389_v27, %v3907_v32 }
 0x21e   : > { %v1499_v19 = vpop.f32.mrf.mxu2 }
 0x21f   : > { %v1500_v44 = vadd.f32 %v1499_v19, %v1387_v48  ;;  %v1612_v53 = vpop.f32.mrf.mxu3  ;;  %v1731_v5 = vpop.f32.mrf.mxu0  ;;  %v3910_v19 = vld [vmem:[#allocation47_spill] sm:$0xff] }
 0x221   : > { %v1613_v0 = vadd.f32 %v1612_v53, %v1500_v44  ;;  %v3911_v44 = vld [vmem:[#allocation43_spill] sm:$0xff] }
 0x222   : > { %v1392_v33 = vpop.f32.mrf.mxu1  ;;  %1778 = vmatmul.f32.gmra.mxu0 %v3226_v57 }
 0x223   : > { %v3484_v28 = vadd.f32 %v1725_v15, %v1613_v0  ;;  %1549 = vmatmul.f32.gmra.mxu2 %v3906_v12 }
 0x224   : > { %1662 = vmatmul.f32.gmra.mxu3 %v3132_v45  ;;  %v3909_v45 = vld [vmem:[#allocation42_spill] sm:$0xff] }
 0x225   : > { %1952 = vst [vmem:[%s3449_s4 + $0x20] sm:$0xff] %v3484_v28  ;;  %1439 = vmatmul.f32.gmra.mxu1 %v3177_v6  ;;  %v1393_v58 = vadd.f32 %v1392_v33, %v3909_v45 }
 0x226   : > { %v1502_v29 = vpop.f32.mrf.mxu2 }
 0x227   : > { %v1503_v37 = vadd.f32 %v1502_v29, %v1390_v1  ;;  %v1615_v23 = vpop.f32.mrf.mxu3  ;;  %v1734_v15 = vpop.f32.mrf.mxu0  ;;  %v3913_v29 = vld [vmem:[#allocation50_spill] sm:$0xff] }
 0x229   : > { %v1616_v59 = vadd.f32 %v1615_v23, %v1503_v37  ;;  %v3914_v37 = vld [vmem:[#allocation45_spill] sm:$0xff]  ;;  %v3915_v23 = vld [vmem:[#allocation46_spill] sm:$0xff] }
 0x22a   : > { %v1395_v10 = vpop.f32.mrf.mxu1  ;;  %1781 = vmatmul.f32.gmra.mxu0 %v3256_v34 }
 0x22b   : > { %v3493_v8 = vadd.f32 %v1728_v63, %v1616_v59  ;;  %1552 = vmatmul.f32.gmra.mxu2 %v3908_v60 }
 0x22c   : > { %1665 = vmatmul.f32.gmra.mxu3 %v3159_v4  ;;  %v3912_v4 = vld [vmem:[#allocation44_spill] sm:$0xff] }
 0x22d   : > { %1953 = vst [vmem:[%s3449_s4 + $0x28] sm:$0xff] %v3493_v8  ;;  %1442 = vmatmul.f32.gmra.mxu1 %v3202_v46  ;;  %v1396_v53 = vadd.f32 %v1395_v10, %v3912_v4 }
 0x22e   : > { %v1505_v6 = vpop.f32.mrf.mxu2 }
 0x22f   : > { %v1506_v2 = vadd.f32 %v1505_v6, %v1393_v58  ;;  %v1618_v39 = vpop.f32.mrf.mxu3  ;;  %v1737_v63 = vpop.f32.mrf.mxu0 }
 0x231   : > { %v1619_v27 = vadd.f32 %v1618_v39, %v1506_v2  ;;  %v3917_v39 = vld [vmem:[#allocation53_spill] sm:$0xff] }
 0x232   : > { %v1398_v56 = vpop.f32.mrf.mxu1  ;;  %1784 = vmatmul.f32.gmra.mxu0 %v3279_v49 }
 0x233   : > { %v3502_v48 = vadd.f32 %v1731_v5, %v1619_v27  ;;  %1555 = vmatmul.f32.gmra.mxu2 %v3910_v19  ;;  %v1399_v59 = vadd.f32 %v1398_v56, %v3915_v23  ;;  %v3918_v27 = vld [vmem:[#allocation48_spill] sm:$0xff]  ;;  %v3919_v56 = vld [vmem:[#allocation49_spill] sm:$0xff] }
 0x234   : > { %1668 = vmatmul.f32.gmra.mxu3 %v3911_v44 }
 0x235   : > { %1954 = vst [vmem:[%s3449_s4 + $0x30] sm:$0xff] %v3502_v48  ;;  %1445 = vmatmul.f32.gmra.mxu1 %v3226_v57  ;;  %v3916_v57 = vld [vmem:[#allocation55_spill] sm:$0xff] }
 0x236   : > { %v1508_v46 = vpop.f32.mrf.mxu2 }
 0x237   : > { %v1509_v0 = vadd.f32 %v1508_v46, %v1396_v53  ;;  %v1621_v33 = vpop.f32.mrf.mxu3  ;;  %v1740_v5 = vpop.f32.mrf.mxu0 }
 0x239   : > { %v1622_v12 = vadd.f32 %v1621_v33, %v1509_v0  ;;  %v3920_v33 = vld [vmem:[#allocation51_spill] sm:$0xff] }
 0x23a   : > { %v1401_v32 = vpop.f32.mrf.mxu1  ;;  %1787 = vmatmul.f32.gmra.mxu0 %v3916_v57 }
 0x23b   : > { %v3511_v1 = vadd.f32 %v1734_v15, %v1622_v12  ;;  %1558 = vmatmul.f32.gmra.mxu2 %v3913_v29  ;;  %v1402_v19 = vadd.f32 %v1401_v32, %v3919_v56  ;;  %v3921_v12 = vld [vmem:[#allocation52_spill] sm:$0xff]  ;;  %v624_v29 = vrot.slane %v3293_v43, 2 }
 0x23c   : > { %1671 = vmatmul.f32.gmra.mxu3 %v3914_v37  ;;  %v625_v37 = vrot.slane %v3287_v24, 2 }
 0x23d   : > { %1955 = vst [vmem:[%s3449_s4 + $0x38] sm:$0xff] %v3511_v1  ;;  %1448 = vmatmul.f32.gmra.mxu1 %v3256_v34 }
 0x23e   : > { %v1511_v10 = vpop.f32.mrf.mxu2 }
 0x23f   : > { %v1512_v60 = vadd.f32 %v1511_v10, %v1399_v59  ;;  %v1624_v45 = vpop.f32.mrf.mxu3  ;;  %v1743_v15 = vpop.f32.mrf.mxu0 }
 0x241   : > { %v1625_v58 = vadd.f32 %v1624_v45, %v1512_v60 }
 0x242   : > { %v1404_v6 = vpop.f32.mrf.mxu1  ;;  %1790 = vmatmul.f32.gmra.mxu0 %v3319_v50 }
 0x243   : > { %v3520_v2 = vadd.f32 %v1737_v63, %v1625_v58  ;;  %1561 = vmatmul.f32.gmra.mxu2 %v3917_v39  ;;  %v1405_v32 = vadd.f32 %v1404_v6, %v3921_v12  ;;  %v3922_v58 = vld [vmem:[#allocation57_spill] sm:$0xff] }
 0x244   : > { %1674 = vmatmul.f32.gmra.mxu3 %v3918_v27  ;;  %v627_v27 = vrot.slane %v3307_v17, 2 }
 0x245   : > { %1956 = vst [vmem:[%s3449_s4 + $0x40] sm:$0xff] %v3520_v2  ;;  %1451 = vmatmul.f32.gmra.mxu1 %v3279_v49 }
 0x246   : > { %v1514_v34 = vpop.f32.mrf.mxu2 }
 0x247   : > { %v1515_v44 = vadd.f32 %v1514_v34, %v1402_v19  ;;  %v1627_v4 = vpop.f32.mrf.mxu3  ;;  %v1746_v63 = vpop.f32.mrf.mxu0 }
 0x249   : > { %v1628_v53 = vadd.f32 %v1627_v4, %v1515_v44  ;;  %v628_v4 = vsel %vm501_vm1, %v625_v37, %v627_v27 }
 0x24a   : > { %v1407_v46 = vpop.f32.mrf.mxu1  ;;  %1793 = vmatmul.f32.gmra.mxu0 %v3333_v41 }
 0x24b   : > { %v3529_v0 = vadd.f32 %v1740_v5, %v1628_v53  ;;  %1564 = vmatmul.f32.gmra.mxu2 %v3920_v33 }
 0x24c   : > { %1677 = vmatmul.f32.gmra.mxu3 %v3259_v40  ;;  %v626_v40 = vsel %vm501_vm1, %v624_v29, %v625_v37 }
 0x24d   : > { %1957 = vst [vmem:[%s3449_s4 + $0x48] sm:$0xff] %v3529_v0  ;;  %1454 = vmatmul.f32.gmra.mxu1 %v3916_v57  ;;  %v3923_v57 = vld [vmem:[#allocation54_spill] sm:$0xff] }
 0x24e   : > { %v1517_v49 = vpop.f32.mrf.mxu2  ;;  %v1408_v6 = vadd.f32 %v1407_v46, %v3923_v57 }
 0x24f   : > { %v1518_v5 = vadd.f32 %v1517_v49, %v1405_v32  ;;  %v1630_v23 = vpop.f32.mrf.mxu3  ;;  %v1749_v60 = vpop.f32.mrf.mxu0 }
 0x251   : > { %v1631_v59 = vadd.f32 %v1630_v23, %v1518_v5 }
 0x252   : > { %v1410_v10 = vpop.f32.mrf.mxu1  ;;  %1796 = vmatmul.f32.gmra.mxu0 %v626_v40 }
 0x253   : > { %v3541_v45 = vadd.f32 %v1743_v15, %v1631_v59  ;;  %1567 = vmatmul.f32.gmra.mxu2 %v3922_v58 }
 0x254   : > { %1680 = vmatmul.f32.gmra.mxu3 %v3282_v11  ;;  %v3924_v11 = vld [vmem:[#allocation56_spill] sm:$0xff] }
 0x255   : > { %1958 = vst [vmem:[%s3449_s4 + $0x50] sm:$0xff] %v3541_v45  ;;  %1457 = vmatmul.f32.gmra.mxu1 %v3319_v50  ;;  %v1411_v46 = vadd.f32 %v1410_v10, %v3924_v11  ;;  %v2168_v50 = vld [vmem:[#allocation2] sm:$0xff] }
 0x256   : > { %v1520_v39 = vpop.f32.mrf.mxu2  ;;  %v641_v33 = vrot.slane %v2168_v50, 2 }
 0x257   : > { %v1521_v56 = vadd.f32 %v1520_v39, %v1408_v6  ;;  %v1633_v19 = vpop.f32.mrf.mxu3  ;;  %v1752_v44 = vpop.f32.mrf.mxu0 }
 0x259   : > { %v1634_v34 = vadd.f32 %v1633_v19, %v1521_v56 }
 0x25a   : > { %v1413_v15 = vpop.f32.mrf.mxu1  ;;  %1799 = vmatmul.f32.gmra.mxu0 %v628_v4 }
 0x25b   : > { %v3551_v53 = vadd.f32 %v1746_v63, %v1634_v34  ;;  %1570 = vmatmul.f32.gmra.mxu2 %v3293_v43  ;;  %v1414_v43 = vadd.f32 %v1413_v15, %v3324_v52 }
 0x25c   : > { %1683 = vmatmul.f32.gmra.mxu3 %v3302_v26  ;;  %v634_v26 = vrot.slane %v2168_v50, 1 }
 0x25d   : > { %1959 = vst [vmem:[%s3449_s4 + $0x58] sm:$0xff] %v3551_v53  ;;  %1460 = vmatmul.f32.gmra.mxu1 %v3333_v41  ;;  %v339_v41 = vld [vmem:[#allocation2 + $0x1a8] sm:$0x3] }
 0x25e   : > { %v1523_v17 = vpop.f32.mrf.mxu2  ;;  %v644_v23 = vrot.slane %v339_v41, 2 }
 0x25f   : > { %v1524_v12 = vadd.f32 %v1523_v17, %v1411_v46  ;;  %v1636_v32 = vpop.f32.mrf.mxu3  ;;  %v1755_v29 = vpop.f32.mrf.mxu0 }
 0x261   : > { %v1637_v49 = vadd.f32 %v1636_v32, %v1524_v12 }
 0x262   : > { %v1416_v63 = vpop.f32.mrf.mxu1  ;;  %1802 = vmatmul.f32.gmra.mxu0 %v641_v33 }
 0x263   : > { %v3559_v37 = vadd.f32 %v1749_v60, %v1637_v49  ;;  %1573 = vmatmul.f32.gmra.mxu2 %v3287_v24  ;;  %v645_v24 = vsel %vm501_vm1, %v641_v33, %v644_v23  ;;  %v1417_v52 = vadd.f32 %v1416_v63, %v3335_v36 }
 0x264   : > { %1686 = vmatmul.f32.gmra.mxu3 %v3322_v3  ;;  %v637_v3 = vrot.slane %v339_v41, 1 }
 0x265   : > { %1960 = vst [vmem:[%s3449_s4 + $0x60] sm:$0xff] %v3559_v37  ;;  %1463 = vmatmul.f32.gmra.mxu1 %v626_v40 }
 0x266   : > { %v1526_v5 = vpop.f32.mrf.mxu2  ;;  %v638_v19 = vsel %vm388_vm0, %v634_v26, %v637_v3 }
 0x267   : > { %v1527_v59 = vadd.f32 %v1526_v5, %v1414_v43  ;;  %v1639_v10 = vpop.f32.mrf.mxu3  ;;  %v1758_v57 = vpop.f32.mrf.mxu0 }
 0x269   : > { %v1640_v58 = vadd.f32 %v1639_v10, %v1527_v59 }
 0x26a   : > { %v1419_v60 = vpop.f32.mrf.mxu1  ;;  %1805 = vmatmul.f32.gmra.mxu0 %v645_v24 }
 0x26b   : > { %v3567_v6 = vadd.f32 %v1752_v44, %v1640_v58  ;;  %1576 = vmatmul.f32.gmra.mxu2 %v2168_v50  ;;  %v1420_v36 = vadd.f32 %v1419_v60, %v3342_v21 }
 0x26c   : > { %1689 = vmatmul.f32.gmra.mxu3 %v634_v26 }
 0x26d   : > { %1961 = vst [vmem:[%s3449_s4 + $0x68] sm:$0xff] %v3567_v6  ;;  %1466 = vmatmul.f32.gmra.mxu1 %v628_v4 }
 0x26e   : > { %v1529_v40 = vpop.f32.mrf.mxu2 }
 0x26f   : > { %v1530_v39 = vadd.f32 %v1529_v40, %v1417_v52  ;;  %v1642_v27 = vpop.f32.mrf.mxu3  ;;  %v1761_v15 = vpop.f32.mrf.mxu0 }
 0x271   : > { %v1643_v56 = vadd.f32 %v1642_v27, %v1530_v39 }
 0x272   : > { %v1422_v34 = vpop.f32.mrf.mxu1 }
 0x273   : > { %v3573_v44 = vadd.f32 %v1755_v29, %v1643_v56  ;;  %1579 = vmatmul.f32.gmra.mxu2 %v2168_v50  ;;  %v1423_v49 = vadd.f32 %v1422_v34, %v3348_v31 }
 0x274   : > { %1692 = vmatmul.f32.gmra.mxu3 %v638_v19 }
 0x275   : > { %1962 = vst [vmem:[%s3449_s4 + $0x70] sm:$0xff] %v3573_v44 }
 0x276   : > { %v1532_v4 = vpop.f32.mrf.mxu2 }
 0x277   : > { %v1533_v11 = vadd.f32 %v1532_v4, %v1420_v36  ;;  %v1645_v46 = vpop.f32.mrf.mxu3  ;;  %v1764_v12 = vpop.f32.mrf.mxu0 }
 0x279   : > { %v1646_v17 = vadd.f32 %v1645_v46, %v1533_v11 }
 0x27a   : > { %v1425_v33 = vpop.f32.mrf.mxu1 }
 0x27b   : > { %v3578_v32 = vadd.f32 %v1758_v57, %v1646_v17  ;;  %v1426_v5 = vadd.f32 %v1425_v33, %v3354_v16 }
 0x27d   : > { %1963 = vst [vmem:[%s3449_s4 + $0x78] sm:$0xff] %v3578_v32 }
 0x27e   : > { %v1535_v63 = vpop.f32.mrf.mxu2 }
 0x27f   : > { %v1536_v50 = vadd.f32 %v1535_v63, %v1423_v49  ;;  %v1648_v29 = vpop.f32.mrf.mxu3  ;;  %v1767_v26 = vpop.f32.mrf.mxu0 }
 0x281   : > { %v1649_v21 = vadd.f32 %v1648_v29, %v1536_v50 }
 0x282   : > { %v1428_v43 = vpop.f32.mrf.mxu1 }
 0x283   : > { %v3583_v41 = vadd.f32 %v1761_v15, %v1649_v21  ;;  %v1429_v24 = vadd.f32 %v1428_v43, %v3360_v42 }
 0x285   : > { %1964 = vst [vmem:[%s3449_s4 + $0x80] sm:$0xff] %v3583_v41 }
 0x286   : > { %v1538_v23 = vpop.f32.mrf.mxu2 }
 0x287   : > { %v1539_v59 = vadd.f32 %v1538_v23, %v1426_v5  ;;  %v1651_v10 = vpop.f32.mrf.mxu3  ;;  %v1770_v60 = vpop.f32.mrf.mxu0 }
 0x289   : > { %v1652_v31 = vadd.f32 %v1651_v10, %v1539_v59 }
 0x28a   : > { %v1431_v58 = vpop.f32.mrf.mxu1 }
 0x28b   : > { %v3588_v57 = vadd.f32 %v1764_v12, %v1652_v31  ;;  %v1432_v19 = vadd.f32 %v1431_v58, %v3366_v9 }
 0x28d   : > { %1965 = vst [vmem:[%s3449_s4 + $0x88] sm:$0xff] %v3588_v57 }
 0x28e   : > { %v1541_v52 = vpop.f32.mrf.mxu2 }
 0x28f   : > { %v1542_v3 = vadd.f32 %v1541_v52, %v1429_v24  ;;  %v1654_v40 = vpop.f32.mrf.mxu3  ;;  %v1773_v27 = vpop.f32.mrf.mxu0 }
 0x291   : > { %v1655_v16 = vadd.f32 %v1654_v40, %v1542_v3 }
 0x292   : > { %v1434_v39 = vpop.f32.mrf.mxu1 }
 0x293   : > { %v3593_v56 = vadd.f32 %v1767_v26, %v1655_v16  ;;  %v1435_v17 = vadd.f32 %v1434_v39, %v3372_v62  ;;  %v1809_v62 = vadd.f32 %v3459_v61, %v3451_v7 }
 0x295   : > { %1966 = vst [vmem:[%s3449_s4 + $0x90] sm:$0xff] %v3593_v56  ;;  %v1810_v31 = vadd.f32 %v1809_v62, %v3467_v51 }
 0x296   : > { %v1544_v34 = vpop.f32.mrf.mxu2 }
 0x297   : > { %v1545_v15 = vadd.f32 %v1544_v34, %v1432_v19  ;;  %v1657_v36 = vpop.f32.mrf.mxu3  ;;  %v1776_v11 = vpop.f32.mrf.mxu0 }
 0x299   : > { %v1658_v42 = vadd.f32 %v1657_v36, %v1545_v15 }
 0x29a   : > { %v1437_v4 = vpop.f32.mrf.mxu1 }
 0x29b   : > { %v3598_v46 = vadd.f32 %v1770_v60, %v1658_v42  ;;  %v1438_v21 = vadd.f32 %v1437_v4, %v3378_v38  ;;  %v1811_v60 = vadd.f32 %v1810_v31, %v3475_v54 }
 0x29d   : > { %1967 = vst [vmem:[%s3449_s4 + $0x98] sm:$0xff] %v3598_v46  ;;  %v1812_v52 = vadd.f32 %v1811_v60, %v3484_v28 }
 0x29e   : > { %v1547_v33 = vpop.f32.mrf.mxu2 }
 0x29f   : > { %v1548_v12 = vadd.f32 %v1547_v33, %v1435_v17  ;;  %v1660_v49 = vpop.f32.mrf.mxu3  ;;  %v1779_v50 = vpop.f32.mrf.mxu0  ;;  %v1813_v16 = vadd.f32 %v1812_v52, %v3493_v8 }
 0x2a1   : > { %v1661_v63 = vadd.f32 %v1660_v49, %v1548_v12  ;;  %v1814_v34 = vadd.f32 %v1813_v16, %v3502_v48 }
 0x2a2   : > { %v1440_v9 = vpop.f32.mrf.mxu1 }
 0x2a3   : > { %v3603_v29 = vadd.f32 %v1773_v27, %v1661_v63  ;;  %v1441_v38 = vadd.f32 %v1440_v9, %v3384_v13  ;;  %v1815_v36 = vadd.f32 %v1814_v34, %v3511_v1 }
 0x2a5   : > { %1968 = vst [vmem:[%s3449_s4 + $0xa0] sm:$0xff] %v3603_v29  ;;  %v1816_v4 = vadd.f32 %v1815_v36, %v3520_v2 }
 0x2a6   : > { %v1550_v43 = vpop.f32.mrf.mxu2 }
 0x2a7   : > { %v1551_v26 = vadd.f32 %v1550_v43, %v1438_v21  ;;  %v1663_v5 = vpop.f32.mrf.mxu3  ;;  %v1782_v10 = vpop.f32.mrf.mxu0  ;;  %v1817_v33 = vadd.f32 %v1816_v4, %v3529_v0 }
 0x2a9   : > { %v1664_v23 = vadd.f32 %v1663_v5, %v1551_v26  ;;  %v1818_v63 = vadd.f32 %v1817_v33, %v3541_v45 }
 0x2aa   : > { %v1443_v59 = vpop.f32.mrf.mxu1 }
 0x2ab   : > { %v3611_v58 = vadd.f32 %v1776_v11, %v1664_v23  ;;  %v1444_v13 = vadd.f32 %v1443_v59, %v3390_v14  ;;  %v1819_v21 = vadd.f32 %v1818_v63, %v3551_v53 }
 0x2ad   : > { %1969 = vst [vmem:[%s3449_s4 + $0xa8] sm:$0xff] %v3611_v58  ;;  %v1820_v26 = vadd.f32 %v1819_v21, %v3559_v37 }
 0x2ae   : > { %v1553_v24 = vpop.f32.mrf.mxu2 }
 0x2af   : > { %v1554_v3 = vadd.f32 %v1553_v24, %v1441_v38  ;;  %v1666_v40 = vpop.f32.mrf.mxu3  ;;  %v1785_v19 = vpop.f32.mrf.mxu0  ;;  %v1821_v23 = vadd.f32 %v1820_v26, %v3567_v6 }
 0x2b1   : > { %v1667_v39 = vadd.f32 %v1666_v40, %v1554_v3 }
 0x2b2   : > { %v1446_v27 = vpop.f32.mrf.mxu1 }
 0x2b3   : > { %v3620_v15 = vadd.f32 %v1779_v50, %v1667_v39  ;;  %v1447_v14 = vadd.f32 %v1446_v27, %v3396_v20 }
 0x2b5   : > { %1970 = vst [vmem:[%s3449_s4 + $0xb0] sm:$0xff] %v3620_v15 }
 0x2b6   : > { %v1556_v42 = vpop.f32.mrf.mxu2 }
 0x2b7   : > { %v1557_v11 = vadd.f32 %v1556_v42, %v1444_v13  ;;  %v1669_v17 = vpop.f32.mrf.mxu3  ;;  %v1788_v50 = vpop.f32.mrf.mxu0 }
 0x2b9   : > { %v1670_v12 = vadd.f32 %v1669_v17, %v1557_v11 }
 0x2ba   : > { %v1449_v49 = vpop.f32.mrf.mxu1 }
 0x2bb   : > { %v3629_v9 = vadd.f32 %v1782_v10, %v1670_v12  ;;  %v1822_v10 = vadd.f32 %v1821_v23, %v3573_v44  ;;  %v1450_v20 = vadd.f32 %v1449_v49, %v3402_v18 }
 0x2bd   : > { %1971 = vst [vmem:[%s3449_s4 + $0xb8] sm:$0xff] %v3629_v9  ;;  %v1823_v38 = vadd.f32 %v1822_v10, %v3578_v32 }
 0x2be   : > { %v1559_v43 = vpop.f32.mrf.mxu2 }
 0x2bf   : > { %v1560_v5 = vadd.f32 %v1559_v43, %v1447_v14  ;;  %v1672_v62 = vpop.f32.mrf.mxu3  ;;  %v1791_v52 = vpop.f32.mrf.mxu0  ;;  %v1824_v3 = vadd.f32 %v1823_v38, %v3583_v41 }
 0x2c1   : > { %v1673_v59 = vadd.f32 %v1672_v62, %v1560_v5  ;;  %v1825_v39 = vadd.f32 %v1824_v3, %v3588_v57 }
 0x2c2   : > { %v1452_v31 = vpop.f32.mrf.mxu1 }
 0x2c3   : > { %v3638_v60 = vadd.f32 %v1785_v19, %v1673_v59  ;;  %v1826_v19 = vadd.f32 %v1825_v39, %v3593_v56  ;;  %v1453_v18 = vadd.f32 %v1452_v31, %v3408_v55 }
 0x2c5   : > { %1972 = vst [vmem:[%s3449_s4 + $0xc0] sm:$0xff] %v3638_v60  ;;  %v1827_v13 = vadd.f32 %v1826_v19, %v3598_v46 }
 0x2c6   : > { %v1562_v24 = vpop.f32.mrf.mxu2 }
 0x2c7   : > { %v1563_v40 = vadd.f32 %v1562_v24, %v1450_v20  ;;  %v1675_v16 = vpop.f32.mrf.mxu3  ;;  %v1828_v4 = vadd.f32 %v1827_v13, %v3603_v29  ;;  %v1794_v33 = vpop.f32.mrf.mxu0 }
 0x2c9   : > { %v1676_v27 = vadd.f32 %v1675_v16, %v1563_v40  ;;  %v1829_v12 = vadd.f32 %v1828_v4, %v3611_v58 }
 0x2ca   : > { %v1455_v34 = vpop.f32.mrf.mxu1 }
 0x2cb   : > { %v3647_v36 = vadd.f32 %v1788_v50, %v1676_v27  ;;  %v1830_v63 = vadd.f32 %v1829_v12, %v3620_v15  ;;  %v1456_v55 = vadd.f32 %v1455_v34, %v3414_v30 }
 0x2cd   : > { %1973 = vst [vmem:[%s3449_s4 + $0xc8] sm:$0xff] %v3647_v36  ;;  %v1831_v14 = vadd.f32 %v1830_v63, %v3629_v9 }
 0x2ce   : > { %v1565_v42 = vpop.f32.mrf.mxu2 }
 0x2cf   : > { %v1566_v11 = vadd.f32 %v1565_v42, %v1453_v18  ;;  %v1678_v17 = vpop.f32.mrf.mxu3  ;;  %v1832_v26 = vadd.f32 %v1831_v14, %v3638_v60  ;;  %v1797_v31 = vpop.f32.mrf.mxu0 }
 0x2d1   : > { %v1679_v49 = vadd.f32 %v1678_v17, %v1566_v11  ;;  %v1833_v23 = vadd.f32 %v1832_v26, %v3647_v36 }
 0x2d2   : > { %v1458_v21 = vpop.f32.mrf.mxu1 }
 0x2d3   : > { %v3656_v50 = vadd.f32 %v1791_v52, %v1679_v49  ;;  %v1459_v20 = vadd.f32 %v1458_v21, %v3420_v22 }
 0x2d5   : > { %1974 = vst [vmem:[%s3449_s4 + $0xd0] sm:$0xff] %v3656_v50  ;;  %v1834_v10 = vadd.f32 %v1833_v23, %v3656_v50 }
 0x2d6   : > { %v1568_v43 = vpop.f32.mrf.mxu2 }
 0x2d7   : > { %v1569_v5 = vadd.f32 %v1568_v43, %v1456_v55  ;;  %v1681_v62 = vpop.f32.mrf.mxu3  ;;  %v1800_v27 = vpop.f32.mrf.mxu0 }
 0x2d9   : > { %v1682_v59 = vadd.f32 %v1681_v62, %v1569_v5 }
 0x2da   : > { %v1461_v52 = vpop.f32.mrf.mxu1 }
 0x2db   : > { %v3665_v38 = vadd.f32 %v1794_v33, %v1682_v59  ;;  %v1462_v34 = vadd.f32 %v1461_v52, %v3426_v25 }
 0x2dd   : > { %v1835_v30 = vadd.f32 %v1834_v10, %v3665_v38  ;;  %1975 = vst [vmem:[%s3449_s4 + $0xd8] sm:$0xff] %v3665_v38 }
 0x2de   : > { %v1571_v24 = vpop.f32.mrf.mxu2 }
 0x2df   : > { %v1572_v3 = vadd.f32 %v1571_v24, %v1459_v20  ;;  %v1684_v40 = vpop.f32.mrf.mxu3  ;;  %v1803_v25 = vpop.f32.mrf.mxu0 }
 0x2e1   : > { %v1685_v16 = vadd.f32 %v1684_v40, %v1572_v3 }
 0x2e2   : > { %v1464_v42 = vpop.f32.mrf.mxu1 }
 0x2e3   : > { %v3671_v39 = vadd.f32 %v1797_v31, %v1685_v16  ;;  %v1465_v17 = vadd.f32 %v1464_v42, %v3432_v35 }
 0x2e5   : > { %v1836_v19 = vadd.f32 %v1835_v30, %v3671_v39  ;;  %1976 = vst [vmem:[%s3449_s4 + $0xe0] sm:$0xff] %v3671_v39 }
 0x2e6   : > { %v1574_v22 = vpop.f32.mrf.mxu2 }
 0x2e7   : > { %v1575_v13 = vadd.f32 %v1574_v22, %v1462_v34  ;;  %v1687_v18 = vpop.f32.mrf.mxu3  ;;  %v1806_v23 = vpop.f32.mrf.mxu0 }
 0x2e9   : > { %v1688_v4 = vadd.f32 %v1687_v18, %v1575_v13 }
 0x2ea   : > { %v1467_v14 = vpop.f32.mrf.mxu1 }
 0x2eb   : > { %v3677_v11 = vadd.f32 %v1800_v27, %v1688_v4  ;;  %v1468_v43 = vadd.f32 %v1467_v14, %v3438_v47 }
 0x2ed   : > { %v1837_v33 = vadd.f32 %v1836_v19, %v3677_v11  ;;  %1977 = vst [vmem:[%s3449_s4 + $0xe8] sm:$0xff] %v3677_v11 }
 0x2ee   : > { %v1577_v12 = vpop.f32.mrf.mxu2 }
 0x2ef   : > { %v1578_v49 = vadd.f32 %v1577_v12, %v1465_v17  ;;  %v1690_v63 = vpop.f32.mrf.mxu3 }
 0x2f1   : > { %v1691_v21 = vadd.f32 %v1690_v63, %v1578_v49 }
 0x2f3   : > { %v3683_v55 = vadd.f32 %v1803_v25, %v1691_v21 }
 0x2f5   : > { %v1838_v26 = vadd.f32 %v1837_v33, %v3683_v55  ;;  %1978 = vst [vmem:[%s3449_s4 + $0xf0] sm:$0xff] %v3683_v55 }
 0x2f6   : > { %v1580_v35 = vpop.f32.mrf.mxu2 }
 0x2f7   : > { %v1581_v5 = vadd.f32 %v1580_v35, %v1468_v43  ;;  %v1693_v62 = vpop.f32.mrf.mxu3 }
 0x2f9   : > { %v1694_v59 = vadd.f32 %v1693_v62, %v1581_v5 }
 0x2fb   : > { %v3689_v31 = vadd.f32 %v1806_v23, %v1694_v59 }
 0x2fd   : > { %v1839_v10 = vadd.f32 %v1838_v26, %v3689_v31  ;;  %1979 = vst [vmem:[%s3449_s4 + $0xf8] sm:$0xff] %v3689_v31 }
 0x2ff   : > { %v1840_v20 = vrot.slane %v1839_v10, 4 }
 0x301   : > { %v1841_v30 = vadd.f32 %v1840_v20, %v1839_v10 }
 0x303   : > { %v1842_v24 = vrot.slane %v1841_v30, 2 }
 0x305   : > { %v1843_v52 = vadd.f32 %v1842_v24, %v1841_v30 }
 0x307   : > { %v1844_v47 = vrot.slane %v1843_v52, 1 }
 0x309   : > { %v3694_v3 = vadd.f32 %v1844_v47, %v1843_v52 }
 0x30b   : > { %v3697_v40 = vmul.f32 0.00390625, %v3694_v3 }
 0x30d   : > { %v1847_v16 = vsub.f32 %v3451_v7, %v3697_v40  ;;  %v1848_v27 = vsub.f32 %v3459_v61, %v3697_v40  ;;  %v1849_v34 = vsub.f32 %v3467_v51, %v3697_v40  ;;  %v1850_v13 = vsub.f32 %v3475_v54, %v3697_v40 }
 0x30e   : > { %v1851_v18 = vsub.f32 %v3484_v28, %v3697_v40  ;;  %v1852_v17 = vsub.f32 %v3493_v8, %v3697_v40  ;;  %v1853_v61 = vsub.f32 %v3502_v48, %v3697_v40  ;;  %v1854_v25 = vsub.f32 %v3511_v1, %v3697_v40 }
 0x30f   : > { %v1879_v19 = vmul.f32 %v1847_v16, %v1847_v16  ;;  %v1880_v22 = vmul.f32 %v1848_v27, %v1848_v27  ;;  %v1881_v42 = vmul.f32 %v1849_v34, %v1849_v34  ;;  %v1882_v7 = vmul.f32 %v1850_v13, %v1850_v13 }
 0x310   : > { %v1883_v12 = vmul.f32 %v1851_v18, %v1851_v18  ;;  %v1884_v49 = vmul.f32 %v1852_v17, %v1852_v17  ;;  %v1855_v28 = vsub.f32 %v3520_v2, %v3697_v40  ;;  %v1885_v63 = vmul.f32 %v1853_v61, %v1853_v61 }
 0x311   : > { %v1911_v4 = vadd.f32 %v1880_v22, %v1879_v19  ;;  %v1856_v8 = vsub.f32 %v3529_v0, %v3697_v40  ;;  %v1886_v14 = vmul.f32 %v1854_v25, %v1854_v25  ;;  %v1857_v48 = vsub.f32 %v3541_v45, %v3697_v40 }
 0x312   : > { %v1887_v26 = vmul.f32 %v1855_v28, %v1855_v28  ;;  %v1858_v1 = vsub.f32 %v3551_v53, %v3697_v40  ;;  %v1859_v2 = vsub.f32 %v3559_v37, %v3697_v40  ;;  %v1860_v0 = vsub.f32 %v3567_v6, %v3697_v40 }
 0x313   : > { %v1912_v33 = vadd.f32 %v1911_v4, %v1881_v42  ;;  %v1888_v5 = vmul.f32 %v1856_v8, %v1856_v8  ;;  %v1889_v23 = vmul.f32 %v1857_v48, %v1857_v48  ;;  %v1861_v45 = vsub.f32 %v3573_v44, %v3697_v40 }
 0x314   : > { %v1890_v10 = vmul.f32 %v1858_v1, %v1858_v1  ;;  %v1891_v30 = vmul.f32 %v1859_v2, %v1859_v2  ;;  %v1862_v53 = vsub.f32 %v3578_v32, %v3697_v40  ;;  %v1892_v52 = vmul.f32 %v1860_v0, %v1860_v0 }
 0x315   : > { %v1913_v51 = vadd.f32 %v1912_v33, %v1882_v7  ;;  %v1863_v37 = vsub.f32 %v3583_v41, %v3697_v40  ;;  %v1893_v16 = vmul.f32 %v1861_v45, %v1861_v45  ;;  %v1864_v6 = vsub.f32 %v3588_v57, %v3697_v40 }
 0x316   : > { %v1894_v34 = vmul.f32 %v1862_v53, %v1862_v53  ;;  %v1865_v44 = vsub.f32 %v3593_v56, %v3697_v40  ;;  %v1866_v32 = vsub.f32 %v3598_v46, %v3697_v40  ;;  %v1867_v41 = vsub.f32 %v3603_v29, %v3697_v40 }
 0x317   : > { %v1914_v54 = vadd.f32 %v1913_v51, %v1883_v12  ;;  %v1895_v22 = vmul.f32 %v1863_v37, %v1863_v37  ;;  %v1896_v18 = vmul.f32 %v1864_v6, %v1864_v6  ;;  %v1868_v57 = vsub.f32 %v3611_v58, %v3697_v40 }
 0x318   : > { %v1897_v4 = vmul.f32 %v1865_v44, %v1865_v44  ;;  %v1898_v7 = vmul.f32 %v1866_v32, %v1866_v32  ;;  %v1869_v56 = vsub.f32 %v3620_v15, %v3697_v40  ;;  %v1899_v61 = vmul.f32 %v1867_v41, %v1867_v41 }
 0x319   : > { %v1915_v21 = vadd.f32 %v1914_v54, %v1884_v49  ;;  %v1870_v46 = vsub.f32 %v3629_v9, %v3697_v40  ;;  %v1900_v51 = vmul.f32 %v1868_v57, %v1868_v57  ;;  %v1871_v29 = vsub.f32 %v3638_v60, %v3697_v40 }
 0x31a   : > { %v1901_v49 = vmul.f32 %v1869_v56, %v1869_v56  ;;  %v1872_v58 = vsub.f32 %v3647_v36, %v3697_v40  ;;  %v1873_v15 = vsub.f32 %v3656_v50, %v3697_v40  ;;  %v1874_v9 = vsub.f32 %v3665_v38, %v3697_v40 }
 0x31b   : > { %v1916_v43 = vadd.f32 %v1915_v21, %v1885_v63  ;;  %v1902_v28 = vmul.f32 %v1870_v46, %v1870_v46  ;;  %v1903_v21 = vmul.f32 %v1871_v29, %v1871_v29  ;;  %v1875_v60 = vsub.f32 %v3671_v39, %v3697_v40 }
 0x31c   : > { %v1905_v48 = vmul.f32 %v1873_v15, %v1873_v15  ;;  %v1876_v36 = vsub.f32 %v3677_v11, %v3697_v40  ;;  %v1877_v50 = vsub.f32 %v3683_v55, %v3697_v40  ;;  %v1878_v38 = vsub.f32 %v3689_v31, %v3697_v40 }
 0x31d   : > { %v1917_v35 = vadd.f32 %v1916_v43, %v1886_v14  ;;  %v1904_v14 = vmul.f32 %v1872_v58, %v1872_v58 }
 0x31e   : > { %v1908_v2 = vmul.f32 %v1876_v36, %v1876_v36  ;;  %v1910_v0 = vmul.f32 %v1878_v38, %v1878_v38 }
 0x31f   : > { %v1918_v62 = vadd.f32 %v1917_v35, %v1887_v26  ;;  %v1906_v35 = vmul.f32 %v1874_v9, %v1874_v9 }
 0x321   : > { %v1919_v59 = vadd.f32 %v1918_v62, %v1888_v5  ;;  %v1907_v5 = vmul.f32 %v1875_v60, %v1875_v60 }
 0x323   : > { %v1920_v20 = vadd.f32 %v1919_v59, %v1889_v23  ;;  %v1909_v59 = vmul.f32 %v1877_v50, %v1877_v50 }
 0x325   : > { %v1921_v24 = vadd.f32 %v1920_v20, %v1890_v10 }
 0x327   : > { %v1922_v47 = vadd.f32 %v1921_v24, %v1891_v30 }
 0x329   : > { %v1923_v27 = vadd.f32 %v1922_v47, %v1892_v52 }
 0x32b   : > { %v1924_v19 = vadd.f32 %v1923_v27, %v1893_v16 }
 0x32d   : > { %v1925_v13 = vadd.f32 %v1924_v19, %v1894_v34 }
 0x32f   : > { %v1926_v42 = vadd.f32 %v1925_v13, %v1895_v22 }
 0x331   : > { %v1927_v17 = vadd.f32 %v1926_v42, %v1896_v18 }
 0x333   : > { %v1928_v33 = vadd.f32 %v1927_v17, %v1897_v4 }
 0x335   : > { %v1929_v12 = vadd.f32 %v1928_v33, %v1898_v7 }
 0x337   : > { %v1930_v25 = vadd.f32 %v1929_v12, %v1899_v61 }
 0x339   : > { %v1931_v54 = vadd.f32 %v1930_v25, %v1900_v51 }
 0x33b   : > { %v1932_v63 = vadd.f32 %v1931_v54, %v1901_v49 }
 0x33d   : > { %v1933_v8 = vadd.f32 %v1932_v63, %v1902_v28 }
 0x33f   : > { %v1934_v43 = vadd.f32 %v1933_v8, %v1903_v21 }
 0x341   : > { %v1935_v26 = vadd.f32 %v1934_v43, %v1904_v14 }
 0x343   : > { %v1936_v1 = vadd.f32 %v1935_v26, %v1905_v48 }
 0x345   : > { %v1937_v62 = vadd.f32 %v1936_v1, %v1906_v35 }
 0x347   : > { %v1938_v23 = vadd.f32 %v1937_v62, %v1907_v5 }
 0x349   : > { %v1939_v39 = vadd.f32 %v1938_v23, %v1908_v2 }
 0x34b   : > { %v1940_v10 = vadd.f32 %v1939_v39, %v1909_v59 }
 0x34d   : > { %v1941_v20 = vadd.f32 %v1940_v10, %v1910_v0 }
 0x34f   : > { %v1942_v45 = vrot.slane %v1941_v20, 4 }
 0x351   : > { %v1943_v11 = vadd.f32 %v1942_v45, %v1941_v20 }
 0x353   : > { %v1944_v30 = vrot.slane %v1943_v11, 2 }
 0x355   : > { %v1945_v24 = vadd.f32 %v1944_v30, %v1943_v11 }
 0x357   : > { %v1946_v53 = vrot.slane %v1945_v24, 1 }
 0x359   : > { %v1947_v55 = vadd.f32 %v1946_v53, %v1945_v24 }
 0x35b   : > { %v1981_v31 = vsel %vm1980_vm2, %v3694_v3, %v1947_v55 }
 0x35c   : > { %1982 = vst [vmem:[%s181_s7] sm:$0x3] %v1981_v31 }
 0x35d PF: > { %s14_s12 = sadd.s32 1, %s2175_s12  }
 0x35e   : > { %p11_p4 = scmp.ge.s32.totalorder %s14_s12, 4  }
 0x360   :  { %13 = sbr.rel (!%p11_p4) target bundleno = 1 (0x1), region = 72 }

// kernel: double_conv.4
= control target key start
LH: loop header
LB: loop body
LE: loop exit
PB: predicated region body
PF: predicated region fallthrough
CT: control target
= control target key end

     0   :  { %s2370_s18 = smov 0   ;;  %s4043_s0 = inlined_call_operand.vmem [shape: f32[2,16,16,128], index: 0, kind: input, shape index: {}]   ;;  %s4044_s1 = inlined_call_operand.vmem [shape: f32[1,128], index: 1, kind: input, shape index: {}]   ;;  %s4045_s2 = inlined_call_operand.vmem [shape: f32[1,128], index: 2, kind: input, shape index: {}]   ;;  %s4046_s3 = inlined_call_operand.vmem [shape: f32[1152,128], index: 3, kind: input, shape index: {}]   ;;  %s4047_s4 = inlined_call_operand.vmem [shape: f32[2,16,16,128], index: 4, kind: output, shape index: {0}]   ;;  %s4048_s5 = inlined_call_operand.vmem [shape: f32[2,2,128], index: 5, kind: output, shape index: {1}]  }
   0x1 LB: > { %s2227_s19 = sadd.s32 4294967295, %s2337_s18   ;;  %p2231_p0 = scmp.ge.s32.totalorder %s2337_s18, 1  ;;  %s2337_s18 = sphi %s2370_s18, %s16_s18  }
   0x2   : > { %p190_p1 = scmp.lt.s32.totalorder %s2337_s18, 3 }
   0x4   : > { %p191_p2 = pnand %p2231_p0, %p190_p1 }
   0x6   : > { %194 = sbr.rel (%p191_p2) target bundleno = 861 (0x35d), region = 36 }
   0xb   : > { %v821_v0 = vld [vmem:[%s4046_s3 + $0x78] sm:$0xff]  ;;  %v820_v1 = vld [vmem:[%s4046_s3 + $0x70] sm:$0xff]  ;;  %p222_p3 = scmp.lt.s32.totalorder %s2227_s19, 1  ;;  %v2339_v2 = vmov 0.0   ;;  %v819_v3 = vld [vmem:[%s4046_s3 + $0x68] sm:$0xff]  ;;  %vm546_vm0 = vcmask 1046528  }
   0xc   : > { %2241 = vmatpush.msra.mxu1 %v821_v0  ;;  %2242 = vmatpush.msra.mxu2 %v821_v0  ;;  %247 = vst [vmem:[#allocation2 + $0x60] sm:$0x1] %v2339_v2  ;;  %v818_v4 = vld [vmem:[%s4046_s3 + $0x60] sm:$0xff]  ;;  %v817_v5 = vld [vmem:[%s4046_s3 + $0x58] sm:$0xff]  ;;  %v816_v10 = vld [vmem:[%s4046_s3 + $0x50] sm:$0xff]  ;;  %vm659_vm1 = vcmask 1045504  }
   0xd   : > { %2243 = vmatpush.msra.mxu3 %v821_v0  ;;  %950 = vmatpush.msra.mxu0 %v821_v0  ;;  %s4201_s19 = smov (!%p222_p3, %s2227_s19), 1  ;;  %236 = vst [vmem:[#allocation2] sm:$0xff] %v2339_v2  ;;  %v2409_v6 = vld [vmem:[%s4044_s1] ss:$0 sm:$0xff]  ;;  %v815_v12 = vld [vmem:[%s4046_s3 + $0x48] sm:$0xff]  ;;  %v813_v15 = vld [vmem:[%s4046_s3 + $0x38] sm:$0xff] }
   0xe   : > { %2244 = vmatpush.msra.mxu1 %v820_v1  ;;  %2245 = vmatpush.msra.mxu2 %v820_v1  ;;  %s2239_s28 = sshll.u32 %s4201_s19, 8  ;;  %238 = vst [vmem:[#allocation2 + $0x10] sm:$0x3] %v2339_v2  ;;  %v2415_v8 = vld [vmem:[%s4045_s2] ss:$0 sm:$0xff]  ;;  %v812_v16 = vld [vmem:[%s4046_s3 + $0x30] sm:$0xff] }
   0xf   : > { %2246 = vmatpush.msra.mxu3 %v820_v1  ;;  %951 = vmatpush.msra.mxu0 %v820_v1  ;;  %s2404_s8 = scalar_lea.vmem %s4043_s0, %s2239_s28  ;;  %242 = vst [vmem:[#allocation2 + $0x1a8] sm:$0x3] %v2339_v2  ;;  %v814_v14 = vld [vmem:[%s4046_s3 + $0x40] sm:$0xff]  ;;  %v811_v17 = vld [vmem:[%s4046_s3 + $0x28] sm:$0xff]  ;;  %v809_v19 = vld [vmem:[%s4046_s3 + $0x18] sm:$0xff]  ;;  %s3721_s25 = scalar_lea.vmem %s4047_s4, %s2239_s28  ;;  %vm2138_vm2 = vcmask 1040384  }
  0x10   : > { %2247 = vmatpush.msra.mxu1 %v819_v3  ;;  %2248 = vmatpush.msra.mxu2 %v819_v3  ;;  %v282_v7 = vld [vmem:[%s2404_s8 + $0x30] sm:$0xff]  ;;  %244 = vst [vmem:[#allocation2 + $0x18] sm:$0x1] %v2339_v2  ;;  %v810_v18 = vld [vmem:[%s4046_s3 + $0x20] sm:$0xff]  ;;  %v807_v22 = vld [vmem:[%s4046_s3 + $0x8] sm:$0xff]  ;;  %s2236_s28 = sshll.u32 %s4201_s19, 1 }
  0x11   : > { %2249 = vmatpush.msra.mxu3 %v819_v3  ;;  %952 = vmatpush.msra.mxu0 %v819_v3  ;;  %v318_v9 = vmul.f32 %v2409_v6, %v282_v7  ;;  %245 = vst [vmem:[#allocation2 + $0x30] sm:$0x1] %v2339_v2  ;;  %v808_v20 = vld [vmem:[%s4046_s3 + $0x10] sm:$0xff]  ;;  %v283_v24 = vld [vmem:[%s2404_s8 + $0x38] sm:$0xff]  ;;  %v806_v25 = vld [vmem:[%s4046_s3] sm:$0xff]  ;;  %s235_s29 = scalar_lea.vmem %s4048_s5, %s2236_s28 }
  0x12   : > { %2250 = vmatpush.msra.mxu1 %v818_v4  ;;  %2251 = vmatpush.msra.mxu2 %v818_v4  ;;  %246 = vst [vmem:[#allocation2 + $0x48] sm:$0x1] %v2339_v2  ;;  %v290_v21 = vld [vmem:[%s2404_s8 + $0x70] sm:$0xff]  ;;  %v291_v27 = vld [vmem:[%s2404_s8 + $0x78] sm:$0xff]  ;;  %v319_v33 = vmul.f32 %v2409_v6, %v283_v24  ;;  %v284_v34 = vld [vmem:[%s2404_s8 + $0x40] sm:$0xff] }
  0x13   : > { %2252 = vmatpush.msra.mxu3 %v818_v4  ;;  %953 = vmatpush.msra.mxu0 %v818_v4  ;;  %v354_v11 = vadd.f32 %v2415_v8, %v318_v9  ;;  %248 = vst [vmem:[#allocation2 + $0x78] sm:$0x1] %v2339_v2  ;;  %v298_v23 = vld [vmem:[%s2404_s8 + $0xb0] sm:$0xff]  ;;  %v326_v26 = vmul.f32 %v2409_v6, %v290_v21  ;;  %v853_v29 = vld [vmem:[%s4046_s3 + $0x178] sm:$0xff]  ;;  %v292_v38 = vld [vmem:[%s2404_s8 + $0x80] sm:$0xff] }
  0x14   : > { %2253 = vmatpush.msra.mxu1 %v817_v5  ;;  %2254 = vmatpush.msra.mxu2 %v817_v5  ;;  %249 = vst [vmem:[#allocation2 + $0x90] sm:$0x1] %v2339_v2  ;;  %v334_v30 = vmul.f32 %v2409_v6, %v298_v23  ;;  %v299_v31 = vld [vmem:[%s2404_s8 + $0xb8] sm:$0xff]  ;;  %v852_v36 = vld [vmem:[%s4046_s3 + $0x170] sm:$0xff]  ;;  %v327_v37 = vmul.f32 %v2409_v6, %v291_v27  ;;  %v300_v42 = vld [vmem:[%s2404_s8 + $0xc0] sm:$0xff] }
  0x15   : > { %2255 = vmatpush.msra.mxu3 %v817_v5  ;;  %954 = vmatpush.msra.mxu0 %v817_v5  ;;  %v386_v13 = vmax.f32 %v354_v11, 0.0  ;;  %250 = vst [vmem:[#allocation2 + $0xa8] sm:$0x1] %v2339_v2  ;;  %v837_v32 = vld [vmem:[%s4046_s3 + $0xf8] sm:$0xff]  ;;  %v2504_v39 = vadd.f32 %v2415_v8, %v326_v26  ;;  %v836_v40 = vld [vmem:[%s4046_s3 + $0xf0] sm:$0xff]  ;;  %v335_v41 = vmul.f32 %v2409_v6, %v299_v31  ;;  %v851_v45 = vld [vmem:[%s4046_s3 + $0x168] sm:$0xff] }
  0x16   : > { %2256 = vmatpush.msra.mxu1 %v816_v10  ;;  %2257 = vmatpush.msra.mxu2 %v816_v10  ;;  %251 = vst [vmem:[#allocation2 + $0xc0] sm:$0x1] %v2339_v2  ;;  %v869_v35 = vld [vmem:[%s4046_s3 + $0x1f8] sm:$0xff]  ;;  %v2513_v43 = vadd.f32 %v2415_v8, %v334_v30  ;;  %v868_v44 = vld [vmem:[%s4046_s3 + $0x1f0] sm:$0xff]  ;;  %v320_v46 = vmul.f32 %v2409_v6, %v284_v34  ;;  %v285_v47 = vld [vmem:[%s2404_s8 + $0x48] sm:$0xff] }
  0x17   : > { %2258 = vmatpush.msra.mxu3 %v816_v10  ;;  %955 = vmatpush.msra.mxu0 %v816_v10  ;;  %418 = vst [vmem:[#allocation2 + $0x61] sm:$0xff] %v386_v13  ;;  %v2525_v48 = vadd.f32 %v2415_v8, %v319_v33  ;;  %v835_v49 = vld [vmem:[%s4046_s3 + $0xe8] sm:$0xff]  ;;  %v328_v50 = vmul.f32 %v2409_v6, %v292_v38  ;;  %v885_v54 = vld [vmem:[%s4046_s3 + $0x278] sm:$0xff]  ;;  %v276_v56 = vld [vmem:[%s2404_s8] sm:$0xff]  ;;  %v394_v57 = vmax.f32 %v2504_v39, 0.0 }
  0x18   : > { %2259 = vmatpush.msra.mxu1 %v815_v12  ;;  %2260 = vmatpush.msra.mxu2 %v815_v12  ;;  %252 = vst [vmem:[#allocation2 + $0xd8] sm:$0x1] %v2339_v2  ;;  %v293_v51 = vld [vmem:[%s2404_s8 + $0x88] sm:$0xff]  ;;  %v2534_v52 = vadd.f32 %v2415_v8, %v327_v37  ;;  %v336_v55 = vmul.f32 %v2409_v6, %v300_v42  ;;  %v850_v59 = vld [vmem:[%s4046_s3 + $0x160] sm:$0xff]  ;;  %v402_v63 = vmax.f32 %v2513_v43, 0.0  ;;  %v884_v1 = vld [vmem:[%s4046_s3 + $0x270] sm:$0xff] }
  0x19   : > { %2261 = vmatpush.msra.mxu3 %v815_v12  ;;  %956 = vmatpush.msra.mxu0 %v815_v12  ;;  %253 = vst [vmem:[#allocation2 + $0xf0] sm:$0x1] %v2339_v2  ;;  %v867_v53 = vld [vmem:[%s4046_s3 + $0x1e8] sm:$0xff]  ;;  %v2547_v58 = vadd.f32 %v2415_v8, %v335_v41  ;;  %v834_v60 = vld [vmem:[%s4046_s3 + $0xe0] sm:$0xff]  ;;  %v321_v61 = vmul.f32 %v2409_v6, %v285_v47  ;;  %v286_v5 = vld [vmem:[%s2404_s8 + $0x50] sm:$0xff]  ;;  %v387_v7 = vmax.f32 %v2525_v48, 0.0 }
  0x1a   : > { %2262 = vmatpush.msra.mxu1 %v814_v14  ;;  %2263 = vmatpush.msra.mxu2 %v814_v14  ;;  %254 = vst [vmem:[#allocation2 + $0x108] sm:$0x1] %v2339_v2  ;;  %v301_v62 = vld [vmem:[%s2404_s8 + $0xc8] sm:$0xff]  ;;  %v866_v0 = vld [vmem:[%s4046_s3 + $0x1e0] sm:$0xff]  ;;  %v2567_v3 = vadd.f32 %v2415_v8, %v320_v46  ;;  %v329_v4 = vmul.f32 %v2409_v6, %v293_v51  ;;  %v849_v10 = vld [vmem:[%s4046_s3 + $0x158] sm:$0xff] }
  0x1b   : > { %2264 = vmatpush.msra.mxu3 %v814_v14  ;;  %957 = vmatpush.msra.mxu0 %v814_v14  ;;  %255 = vst [vmem:[#allocation2 + $0x120] sm:$0x1] %v2339_v2  ;;  %v2574_v9 = vadd.f32 %v2415_v8, %v328_v50  ;;  %v833_v11 = vld [vmem:[%s4046_s3 + $0xd8] sm:$0xff]  ;;  %v312_v12 = vmul.f32 %v2409_v6, %v276_v56  ;;  %v294_v13 = vld [vmem:[%s2404_s8 + $0x90] sm:$0xff]  ;;  %v395_v14 = vmax.f32 %v2534_v52, 0.0  ;;  %v847_v33 = vld [vmem:[%s4046_s3 + $0x148] sm:$0xff] }
  0x1c   : > { %2265 = vmatpush.msra.mxu1 %v813_v15  ;;  %2266 = vmatpush.msra.mxu2 %v813_v15  ;;  %256 = vst [vmem:[#allocation2 + $0x138] sm:$0x1] %v2339_v2  ;;  %v848_v21 = vld [vmem:[%s4046_s3 + $0x150] sm:$0xff]  ;;  %v322_v24 = vmul.f32 %v2409_v6, %v286_v5  ;;  %v388_v26 = vmax.f32 %v2567_v3, 0.0  ;;  %v365_v30 = vadd.f32 %v2415_v8, %v329_v4  ;;  %v287_v41 = vld [vmem:[%s2404_s8 + $0x58] sm:$0xff]  ;;  %v846_v46 = vld [vmem:[%s4046_s3 + $0x140] sm:$0xff] }
  0x1d   : > { %2267 = vmatpush.msra.mxu3 %v813_v15  ;;  %958 = vmatpush.msra.mxu0 %v813_v15  ;;  %257 = vst [vmem:[#allocation2 + $0x150] sm:$0x1] %v2339_v2  ;;  %v2587_v15 = vadd.f32 %v2415_v8, %v336_v55  ;;  %v832_v23 = vld [vmem:[%s4046_s3 + $0xd0] sm:$0xff]  ;;  %v330_v31 = vmul.f32 %v2409_v6, %v294_v13  ;;  %v295_v42 = vld [vmem:[%s2404_s8 + $0x98] sm:$0xff]  ;;  %v862_v51 = vld [vmem:[%s4046_s3 + $0x1c0] sm:$0xff] }
  0x1e   : > { %2268 = vmatpush.msra.mxu1 %v812_v16  ;;  %2269 = vmatpush.msra.mxu2 %v812_v16  ;;  %258 = vst [vmem:[#allocation2 + $0x168] sm:$0x1] %v2339_v2  ;;  %v2478_v28 = vld [vmem:[#allocation2 + $0x60] sm:$0xff]  ;;  %v864_v27 = vld [vmem:[%s4046_s3 + $0x1d0] sm:$0xff]  ;;  %v348_v34 = vadd.f32 %v2415_v8, %v312_v12  ;;  %v358_v47 = vadd.f32 %v2415_v8, %v322_v24  ;;  %v397_v50 = vmax.f32 %v365_v30, 0.0  ;;  %v829_v12 = vld [vmem:[%s4046_s3 + $0xb8] sm:$0xff] }
  0x1f   : > { %2270 = vmatpush.msra.mxu3 %v812_v16  ;;  %959 = vmatpush.msra.mxu0 %v812_v16  ;;  %259 = vst [vmem:[#allocation2 + $0x180] sm:$0x1] %v2339_v2  ;;  %v865_v16 = vld [vmem:[%s4046_s3 + $0x1d8] sm:$0xff]  ;;  %v404_v38 = vmax.f32 %v2587_v15, 0.0  ;;  %v278_v43 = vld [vmem:[%s2404_s8 + $0x10] sm:$0xff]  ;;  %v323_v48 = vmul.f32 %v2409_v6, %v287_v41  ;;  %v366_v52 = vadd.f32 %v2415_v8, %v330_v31 }
  0x20   : > { %2271 = vmatpush.msra.mxu1 %v811_v17  ;;  %2272 = vmatpush.msra.mxu2 %v811_v17  ;;  %260 = vst [vmem:[#allocation2 + $0x29] sm:$0x1] %v2339_v2  ;;  %v880_v55 = vld [vmem:[%s4046_s3 + $0x250] sm:$0xff] }
  0x21   : > { %2273 = vmatpush.msra.mxu3 %v811_v17  ;;  %960 = vmatpush.msra.mxu0 %v811_v17  ;;  %261 = vst [vmem:[#allocation2 + $0x41] sm:$0x1] %v2339_v2  ;;  %v883_v17 = vld [vmem:[%s4046_s3 + $0x268] sm:$0xff]  ;;  %v359_v3 = vadd.f32 %v2415_v8, %v323_v48  ;;  %v398_v5 = vmax.f32 %v366_v52, 0.0  ;;  %v844_v13 = vld [vmem:[%s4046_s3 + $0x130] sm:$0xff] }
  0x22   : > { %2274 = vmatpush.msra.mxu1 %v810_v18  ;;  %2275 = vmatpush.msra.mxu2 %v810_v18  ;;  %262 = vst [vmem:[#allocation2 + $0x59] sm:$0x1] %v2339_v2  ;;  %v289_v52 = vld [vmem:[%s2404_s8 + $0x68] sm:$0xff] }
  0x23   : > { %2276 = vmatpush.msra.mxu3 %v810_v18  ;;  %961 = vmatpush.msra.mxu0 %v810_v18  ;;  %263 = vst [vmem:[#allocation2 + $0x71] sm:$0x1] %v2339_v2  ;;  %v337_v18 = vmul.f32 %v2409_v6, %v301_v62 }
  0x24   : > { %2277 = vmatpush.msra.mxu1 %v809_v19  ;;  %2278 = vmatpush.msra.mxu2 %v809_v19  ;;  %264 = vst [vmem:[#allocation2 + $0x89] sm:$0x1] %v2339_v2 }
  0x25   : > { %2279 = vmatpush.msra.mxu3 %v809_v19  ;;  %962 = vmatpush.msra.mxu0 %v809_v19  ;;  %265 = vst [vmem:[#allocation2 + $0xa1] sm:$0x1] %v2339_v2  ;;  %v277_v19 = vld [vmem:[%s2404_s8 + $0x8] sm:$0xff]  ;;  %v373_v39 = vadd.f32 %v2415_v8, %v337_v18 }
  0x26   : > { %2280 = vmatpush.msra.mxu1 %v808_v20  ;;  %2281 = vmatpush.msra.mxu2 %v808_v20  ;;  %266 = vst [vmem:[#allocation2 + $0xb9] sm:$0x1] %v2339_v2  ;;  %v313_v37 = vmul.f32 %v2409_v6, %v277_v19  ;;  %v391_v19 = vmax.f32 %v359_v3, 0.0 }
  0x27   : > { %2282 = vmatpush.msra.mxu3 %v808_v20  ;;  %963 = vmatpush.msra.mxu0 %v808_v20  ;;  %267 = vst [vmem:[#allocation2 + $0xd1] sm:$0x1] %v2339_v2  ;;  %v403_v20 = vmax.f32 %v2547_v58, 0.0 }
  0x28   : > { %2283 = vmatpush.msra.mxu1 %v807_v22  ;;  %2284 = vmatpush.msra.mxu2 %v807_v22  ;;  %268 = vst [vmem:[#allocation2 + $0xe9] sm:$0x1] %v2339_v2  ;;  %v349_v56 = vadd.f32 %v2415_v8, %v313_v37  ;;  %v828_v37 = vld [vmem:[%s4046_s3 + $0xb0] sm:$0xff] }
  0x29   : > { %2285 = vmatpush.msra.mxu3 %v807_v22  ;;  %964 = vmatpush.msra.mxu0 %v807_v22  ;;  %269 = vst [vmem:[#allocation2 + $0x101] sm:$0x1] %v2339_v2  ;;  %v357_v22 = vadd.f32 %v2415_v8, %v321_v61 }
  0x2a   : > { %2286 = vmatpush.msra.mxu1 %v806_v25  ;;  %2287 = vmatpush.msra.mxu2 %v806_v25  ;;  %270 = vst [vmem:[#allocation2 + $0x119] sm:$0x1] %v2339_v2 }
  0x2b   : > { %990 = vmatmul.f32.vlgmr.msra.gmra.mxu1 %v2478_v28  ;;  %2288 = vmatpush.msra.mxu3 %v806_v25  ;;  %271 = vst [vmem:[#allocation2 + $0x131] sm:$0x1] %v2339_v2 }
  0x2c   : > { %1176 = vmatpush.msrb.mxu2 %v853_v29  ;;  %1063 = vmatpush.msrb.mxu1 %v837_v32  ;;  %272 = vst [vmem:[#allocation2 + $0x149] sm:$0x1] %v2339_v2  ;;  %v882_v29 = vld [vmem:[%s4046_s3 + $0x260] sm:$0xff]  ;;  %v396_v32 = vmax.f32 %v2574_v9, 0.0  ;;  %v879_v9 = vld [vmem:[%s4046_s3 + $0x248] sm:$0xff] }
  0x2d   : > { %1289 = vmatpush.msrb.mxu3 %v869_v35  ;;  %965 = vmatpush.msra.mxu0 %v806_v25  ;;  %273 = vst [vmem:[#allocation2 + $0x161] sm:$0x1] %v2339_v2  ;;  %v302_v25 = vld [vmem:[%s2404_s8 + $0xd0] sm:$0xff]  ;;  %v863_v35 = vld [vmem:[%s4046_s3 + $0x1c8] sm:$0xff] }
  0x2e   : > { %1177 = vmatpush.msrb.mxu2 %v852_v36  ;;  %1064 = vmatpush.msrb.mxu1 %v836_v40  ;;  %274 = vst [vmem:[#allocation2 + $0x179] sm:$0x1] %v2339_v2  ;;  %v881_v36 = vld [vmem:[%s4046_s3 + $0x258] sm:$0xff]  ;;  %v338_v40 = vmul.f32 %v2409_v6, %v302_v25 }
  0x2f   : > { %1290 = vmatpush.msrb.mxu3 %v868_v44  ;;  %966 = vmatmul.f32.vlgmr.msra.gmra.mxu0 %v2339_v2  ;;  %275 = vst [vmem:[#allocation2 + $0x191] sm:$0x1] %v2339_v2  ;;  %v389_v44 = vmax.f32 %v357_v22, 0.0 }
  0x30   : > { %1178 = vmatpush.msrb.mxu2 %v851_v45  ;;  %1065 = vmatpush.msrb.mxu1 %v835_v49  ;;  %426 = vst [vmem:[#allocation2 + $0xc1] sm:$0xff] %v394_v57  ;;  %v831_v45 = vld [vmem:[%s4046_s3 + $0xc8] sm:$0xff]  ;;  %v303_v49 = vld [vmem:[%s2404_s8 + $0xd8] sm:$0xff]  ;;  %v314_v57 = vmul.f32 %v2409_v6, %v278_v43 }
  0x31   : > { %1291 = vmatpush.msrb.mxu3 %v867_v53  ;;  %1402 = vmatpush.msrb.mxu0 %v885_v54  ;;  %434 = vst [vmem:[#allocation2 + $0x121] sm:$0xff] %v402_v63  ;;  %v331_v53 = vmul.f32 %v2409_v6, %v295_v42  ;;  %v380_v54 = vmax.f32 %v348_v34, 0.0  ;;  %v339_v61 = vmul.f32 %v2409_v6, %v303_v49  ;;  %v390_v63 = vmax.f32 %v358_v47, 0.0  ;;  %v859_v42 = vld [vmem:[%s4046_s3 + $0x1a8] sm:$0xff]  ;;  %v877_v43 = vld [vmem:[%s4046_s3 + $0x238] sm:$0xff]  ;;  %v842_v47 = vld [vmem:[%s4046_s3 + $0x120] sm:$0xff] }
  0x32   : > { %1179 = vmatpush.msrb.mxu2 %v850_v59  ;;  %1066 = vmatpush.msrb.mxu1 %v834_v60  ;;  %419 = vst [vmem:[#allocation2 + $0x69] sm:$0xff] %v387_v7  ;;  %v405_v59 = vmax.f32 %v373_v39, 0.0  ;;  %v374_v60 = vadd.f32 %v2415_v8, %v338_v40  ;;  %v861_v7 = vld [vmem:[%s4046_s3 + $0x1b8] sm:$0xff]  ;;  %v858_v49 = vld [vmem:[%s4046_s3 + $0x1a0] sm:$0xff] }
  0x33   : > { %1292 = vmatpush.msrb.mxu3 %v866_v0  ;;  %1403 = vmatpush.msrb.mxu0 %v884_v1  ;;  %427 = vst [vmem:[#allocation2 + $0xc9] sm:$0xff] %v395_v14  ;;  %v830_v0 = vld [vmem:[%s4046_s3 + $0xc0] sm:$0xff]  ;;  %v845_v1 = vld [vmem:[%s4046_s3 + $0x138] sm:$0xff]  ;;  %v350_v14 = vadd.f32 %v2415_v8, %v314_v57  ;;  %v375_v18 = vadd.f32 %v2415_v8, %v339_v61 }
  0x34   : > { %1180 = vmatpush.msrb.mxu2 %v849_v10  ;;  %1067 = vmatpush.msrb.mxu1 %v833_v11  ;;  %435 = vst [vmem:[#allocation2 + $0x129] sm:$0xff] %v403_v20  ;;  %v367_v10 = vadd.f32 %v2415_v8, %v331_v53  ;;  %v381_v11 = vmax.f32 %v349_v56, 0.0  ;;  %v406_v15 = vmax.f32 %v374_v60, 0.0  ;;  %v288_v20 = vld [vmem:[%s2404_s8 + $0x60] sm:$0xff]  ;;  %v297_v53 = vld [vmem:[%s2404_s8 + $0xa8] sm:$0xff] }
  0x35   : > { %1293 = vmatpush.msrb.mxu3 %v865_v16  ;;  %1404 = vmatpush.msrb.mxu0 %v883_v17  ;;  %420 = vst [vmem:[#allocation2 + $0x79] sm:$0xff] %v388_v26  ;;  %v860_v16 = vld [vmem:[%s4046_s3 + $0x1b0] sm:$0xff]  ;;  %v878_v17 = vld [vmem:[%s4046_s3 + $0x240] sm:$0xff]  ;;  %v324_v24 = vmul.f32 %v2409_v6, %v288_v20  ;;  %v279_v26 = vld [vmem:[%s2404_s8 + $0x18] sm:$0xff]  ;;  %v382_v30 = vmax.f32 %v350_v14, 0.0  ;;  %v407_v34 = vmax.f32 %v375_v18, 0.0  ;;  %v333_v56 = vmul.f32 %v2409_v6, %v297_v53 }
  0x36   : > { %1181 = vmatpush.msrb.mxu2 %v848_v21  ;;  %1068 = vmatpush.msrb.mxu1 %v832_v23  ;;  %428 = vst [vmem:[#allocation2 + $0xd9] sm:$0xff] %v396_v32  ;;  %v296_v21 = vld [vmem:[%s2404_s8 + $0xa0] sm:$0xff]  ;;  %v399_v23 = vmax.f32 %v367_v10, 0.0  ;;  %v315_v31 = vmul.f32 %v2409_v6, %v279_v26  ;;  %v949_v53 = vld [vmem:[%s4046_s3 + $0x478] sm:$0xff] }
  0x37   : > { %1294 = vmatpush.msrb.mxu3 %v864_v27  ;;  %1405 = vmatpush.msrb.mxu0 %v882_v29  ;;  %v2654_v58 = vld [vmem:[#allocation2 + $0xc0] sm:$0xff]  ;;  %436 = vst [vmem:[#allocation2 + $0x139] sm:$0xff] %v404_v38  ;;  %v332_v25 = vmul.f32 %v2409_v6, %v296_v21  ;;  %v843_v38 = vld [vmem:[%s4046_s3 + $0x128] sm:$0xff]  ;;  %v369_v3 = vadd.f32 %v2415_v8, %v333_v56 }
  0x38   : > { %969 = vmatmul.f32.gmra.mxu0 %v2339_v2  ;;  %1182 = vmatpush.msrb.mxu2 %v847_v33  ;;  %v480_v62 = vld [vmem:[#allocation2 + $0x120] sm:$0xff]  ;;  %421 = vst [vmem:[#allocation2 + $0x81] sm:$0xff] %v389_v44  ;;  %v351_v39 = vadd.f32 %v2415_v8, %v315_v31  ;;  %v281_v21 = vld [vmem:[%s2404_s8 + $0x28] sm:$0xff] }
  0x39   : > { %1295 = vmatpush.msrb.mxu3 %v863_v35  ;;  %1406 = vmatpush.msrb.mxu0 %v881_v36  ;;  %v2666_v4 = vld [vmem:[#allocation2 + $0x68] sm:$0xff]  ;;  %429 = vst [vmem:[#allocation2 + $0xe1] sm:$0xff] %v397_v50  ;;  %v304_v27 = vld [vmem:[%s2404_s8 + $0xe0] sm:$0xff]  ;;  %v360_v35 = vadd.f32 %v2415_v8, %v324_v24  ;;  %v368_v36 = vadd.f32 %v2415_v8, %v332_v25  ;;  %v876_v50 = vld [vmem:[%s4046_s3 + $0x230] sm:$0xff]  ;;  %v401_v14 = vmax.f32 %v369_v3, 0.0 }
  0x3a   : > { %1069 = vmatpush.msrb.mxu1 %v831_v45  ;;  %1183 = vmatpush.msrb.mxu2 %v846_v46  ;;  %412 = vst [vmem:[#allocation2 + $0x19] sm:$0xff] %v380_v54  ;;  %v2692_v22 = vld [vmem:[#allocation2 + $0xc8] sm:$0xff]  ;;  %v340_v32 = vmul.f32 %v2409_v6, %v304_v27  ;;  %v383_v48 = vmax.f32 %v351_v39, 0.0  ;;  %v280_v57 = vld [vmem:[%s2404_s8 + $0x20] sm:$0xff]  ;;  %v317_v24 = vmul.f32 %v2409_v6, %v281_v21 }
  0x3b   : > { %1014 = vmatmul.f32.vlgmr.msra.gmra.mxu2 %v2654_v58  ;;  %1296 = vmatpush.msrb.mxu3 %v862_v51  ;;  %437 = vst [vmem:[#allocation2 + $0x141] sm:$0xff] %v405_v59  ;;  %v481_v29 = vld [vmem:[#allocation2 + $0x128] sm:$0xff]  ;;  %v392_v44 = vmax.f32 %v360_v35, 0.0  ;;  %v400_v45 = vmax.f32 %v368_v36, 0.0  ;;  %v316_v61 = vmul.f32 %v2409_v6, %v280_v57  ;;  %v874_v20 = vld [vmem:[%s4046_s3 + $0x220] sm:$0xff] }
  0x3c   : > { %1038 = vmatmul.f32.vlgmr.msra.gmra.mxu3 %v480_v62  ;;  %1407 = vmatpush.msrb.mxu0 %v880_v55  ;;  %422 = vst [vmem:[#allocation2 + $0x91] sm:$0xff] %v390_v63  ;;  %v2700_v33 = vld [vmem:[#allocation2 + $0x78] sm:$0xff]  ;;  %v376_v40 = vadd.f32 %v2415_v8, %v340_v32  ;;  %v827_v46 = vld [vmem:[%s4046_s3 + $0xa8] sm:$0xff]  ;;  %v325_v55 = vmul.f32 %v2409_v6, %v289_v52  ;;  %v838_v35 = vld [vmem:[%s4046_s3 + $0x100] sm:$0xff] }
  0x3d   : > { %993 = vmatmul.f32.gmra.mxu1 %v2666_v4  ;;  %1184 = vmatpush.msrb.mxu2 %v845_v1  ;;  %430 = vst [vmem:[#allocation2 + $0xf1] sm:$0xff] %v398_v5  ;;  %v2737_v54 = vld [vmem:[#allocation2 + $0xd8] sm:$0xff]  ;;  %v305_v59 = vld [vmem:[%s2404_s8 + $0xe8] sm:$0xff]  ;;  %v826_v5 = vld [vmem:[%s4046_s3 + $0xa0] sm:$0xff] }
  0x3e   : > { %1070 = vmatpush.msrb.mxu1 %v830_v0  ;;  %1297 = vmatpush.msrb.mxu3 %v861_v7  ;;  %413 = vst [vmem:[#allocation2 + $0x21] sm:$0xff] %v381_v11  ;;  %v408_v51 = vmax.f32 %v376_v40, 0.0  ;;  %v483_v60 = vld [vmem:[#allocation2 + $0x138] sm:$0xff]  ;;  %v341_v62 = vmul.f32 %v2409_v6, %v305_v59  ;;  %v361_v1 = vadd.f32 %v2415_v8, %v325_v55  ;;  %v839_v6 = vld [vmem:[%s4046_s3 + $0x108] sm:$0xff]  ;;  %v854_v36 = vld [vmem:[%s4046_s3 + $0x180] sm:$0xff] }
  0x3f   : > { %1408 = vmatpush.msrb.mxu0 %v879_v9  ;;  %1185 = vmatpush.msrb.mxu2 %v844_v13  ;;  %438 = vst [vmem:[#allocation2 + $0x151] sm:$0xff] %v406_v15  ;;  %v2745_v63 = vld [vmem:[#allocation2 + $0x80] sm:$0xff]  ;;  %v841_v7 = vld [vmem:[%s4046_s3 + $0x118] sm:$0xff]  ;;  %v352_v9 = vadd.f32 %v2415_v8, %v316_v61  ;;  %v855_v31 = vld [vmem:[%s4046_s3 + $0x188] sm:$0xff] }
  0x40   : > { %1071 = vmatpush.msrb.mxu1 %v829_v12  ;;  %1298 = vmatpush.msrb.mxu3 %v860_v16  ;;  %423 = vst [vmem:[#allocation2 + $0x99] sm:$0xff] %v391_v19  ;;  %v377_v10 = vadd.f32 %v2415_v8, %v341_v62  ;;  %v857_v11 = vld [vmem:[%s4046_s3 + $0x198] sm:$0xff]  ;;  %v875_v12 = vld [vmem:[%s4046_s3 + $0x228] sm:$0xff]  ;;  %v393_v13 = vmax.f32 %v361_v1, 0.0  ;;  %v840_v16 = vld [vmem:[%s4046_s3 + $0x110] sm:$0xff]  ;;  %v547_v1 = vrot.slane %v2339_v2, 1 }
  0x41   : > { %1409 = vmatpush.msrb.mxu0 %v878_v17  ;;  %v2713_v41 = vld [vmem:[#allocation2 + $0x18] sm:$0xff]  ;;  %431 = vst [vmem:[#allocation2 + $0xf9] sm:$0xff] %v399_v23  ;;  %1186 = vmatpush.msrb.mxu2 %v843_v38  ;;  %v384_v17 = vmax.f32 %v352_v9, 0.0  ;;  %v856_v19 = vld [vmem:[%s4046_s3 + $0x190] sm:$0xff]  ;;  %v2781_v23 = vld [vmem:[#allocation2 + $0xe0] sm:$0xff] }
  0x42   : > { %1072 = vmatpush.msrb.mxu1 %v828_v37  ;;  %972 = vmatmul.f32.gmra.mxu0 %v2713_v41  ;;  %414 = vst [vmem:[#allocation2 + $0x31] sm:$0xff] %v382_v30  ;;  %v825_v15 = vld [vmem:[%s4046_s3 + $0x98] sm:$0xff]  ;;  %v409_v18 = vmax.f32 %v377_v10, 0.0  ;;  %v2784_v25 = vld [vmem:[#allocation2 + $0x140] sm:$0xff]  ;;  %v824_v30 = vld [vmem:[%s4046_s3 + $0x90] sm:$0xff]  ;;  %v552_v3 = vrot.slane %v2713_v41, 1 }
  0x43   : > { %1017 = vmatmul.f32.gmra.mxu2 %v2692_v22  ;;  %439 = vst [vmem:[#allocation2 + $0x159] sm:$0xff] %v407_v34  ;;  %1299 = vmatpush.msrb.mxu3 %v859_v42  ;;  %v2786_v26 = vld [vmem:[#allocation2 + $0x90] sm:$0xff]  ;;  %v823_v32 = vld [vmem:[%s4046_s3 + $0x88] sm:$0xff]  ;;  %v822_v38 = vld [vmem:[%s4046_s3 + $0x80] sm:$0xff] }
  0x44   : > { %1041 = vmatmul.f32.gmra.mxu3 %v481_v29  ;;  %1410 = vmatpush.msrb.mxu0 %v877_v43  ;;  %424 = vst [vmem:[#allocation2 + $0xa9] sm:$0xff] %v392_v44  ;;  %v353_v29 = vadd.f32 %v2415_v8, %v317_v24  ;;  %v873_v8 = vld [vmem:[%s4046_s3 + $0x218] sm:$0xff]  ;;  %v872_v37 = vld [vmem:[%s4046_s3 + $0x210] sm:$0xff]  ;;  %v899_v21 = vld [vmem:[%s4046_s3 + $0x2e8] sm:$0xff] }
  0x45   : > { %996 = vmatmul.f32.gmra.mxu1 %v2700_v33  ;;  %1187 = vmatpush.msrb.mxu2 %v842_v47  ;;  %432 = vst [vmem:[#allocation2 + $0x109] sm:$0xff] %v400_v45  ;;  %v2747_v0 = vld [vmem:[#allocation2 + $0x20] sm:$0xff]  ;;  %v2822_v39 = vld [vmem:[#allocation2 + $0xf0] sm:$0xff]  ;;  %v917_v44 = vld [vmem:[%s4046_s3 + $0x378] sm:$0xff] }
  0x46   : > { %1073 = vmatpush.msrb.mxu1 %v827_v46  ;;  %1300 = vmatpush.msrb.mxu3 %v858_v49  ;;  %415 = vst [vmem:[#allocation2 + $0x39] sm:$0xff] %v383_v48  ;;  %v385_v34 = vmax.f32 %v353_v29, 0.0  ;;  %v2824_v40 = vld [vmem:[#allocation2 + $0x150] sm:$0xff]  ;;  %v871_v45 = vld [vmem:[%s4046_s3 + $0x208] sm:$0xff]  ;;  %v933_v46 = vld [vmem:[%s4046_s3 + $0x3f8] sm:$0xff] }
  0x47   : > { %1411 = vmatpush.msrb.mxu0 %v876_v50  ;;  %440 = vst [vmem:[#allocation2 + $0x169] sm:$0xff] %v408_v51  ;;  %1188 = vmatpush.msrb.mxu2 %v841_v7  ;;  %v2826_v42 = vld [vmem:[#allocation2 + $0x98] sm:$0xff]  ;;  %v870_v48 = vld [vmem:[%s4046_s3 + $0x200] sm:$0xff]  ;;  %v932_v61 = vld [vmem:[%s4046_s3 + $0x3f0] sm:$0xff] }
  0x48   : > { %1074 = vmatpush.msrb.mxu1 %v826_v5  ;;  %1301 = vmatpush.msrb.mxu3 %v857_v11  ;;  %425 = vst [vmem:[#allocation2 + $0xb1] sm:$0xff] %v393_v13  ;;  %v901_v47 = vld [vmem:[%s4046_s3 + $0x2f8] sm:$0xff]  ;;  %v900_v62 = vld [vmem:[%s4046_s3 + $0x2f0] sm:$0xff]  ;;  %v553_v5 = vrot.slane %v2747_v0, 1  ;;  %v660_v13 = vrot.slane %v2339_v2, 2  ;;  %v915_v2 = vld [vmem:[%s4046_s3 + $0x368] sm:$0xff] }
  0x49   : > { %1412 = vmatpush.msrb.mxu0 %v875_v12  ;;  %433 = vst [vmem:[#allocation2 + $0x111] sm:$0xff] %v401_v14  ;;  %1189 = vmatpush.msrb.mxu2 %v840_v16  ;;  %v2788_v27 = vld [vmem:[#allocation2 + $0x30] sm:$0xff]  ;;  %v2849_v49 = vld [vmem:[#allocation2 + $0xf8] sm:$0xff]  ;;  %v449_v12 = vld [vmem:[#allocation2 + $0x28] sm:$0x3] }
  0x4a   : > { %975 = vmatmul.f32.gmra.mxu0 %v2747_v0  ;;  %1075 = vmatpush.msrb.mxu1 %v825_v15  ;;  %416 = vst [vmem:[#allocation2 + $0x49] sm:$0xff] %v384_v17  ;;  %v2851_v50 = vld [vmem:[#allocation2 + $0x158] sm:$0xff]  ;;  %v554_v10 = vsel %vm546_vm0, %v552_v3, %v553_v5  ;;  %v446_v11 = vld [vmem:[#allocation2 + $0x10] sm:$0x3]  ;;  %v555_v16 = vrot.slane %v449_v12, 1  ;;  %v557_v24 = vrot.slane %v2788_v27, 1 }
  0x4b   : > { %1020 = vmatmul.f32.gmra.mxu2 %v2737_v54  ;;  %1302 = vmatpush.msrb.mxu3 %v856_v19  ;;  %441 = vst [vmem:[#allocation2 + $0x171] sm:$0xff] %v409_v18  ;;  %v2853_v51 = vld [vmem:[#allocation2 + $0xa8] sm:$0xff]  ;;  %v948_v14 = vld [vmem:[%s4046_s3 + $0x470] sm:$0xff]  ;;  %v550_v15 = vrot.slane %v446_v11, 1  ;;  %v663_v19 = vrot.slane %v446_v11, 2  ;;  %v568_v11 = vrot.slane %v2666_v4, 1 }
  0x4c   : > { %1044 = vmatmul.f32.gmra.mxu3 %v483_v60  ;;  %1413 = vmatpush.msrb.mxu0 %v874_v20  ;;  %417 = vst [vmem:[#allocation2 + $0x51] sm:$0xff] %v385_v34  ;;  %v2864_v55 = vld [vmem:[#allocation2 + $0x108] sm:$0xff]  ;;  %v916_v60 = vld [vmem:[%s4046_s3 + $0x370] sm:$0xff]  ;;  %v556_v18 = vsel %vm546_vm0, %v553_v5, %v555_v16  ;;  %v929_v5 = vld [vmem:[%s4046_s3 + $0x3d8] sm:$0xff] }
  0x4d   : > { %999 = vmatmul.f32.gmra.mxu1 %v2745_v63  ;;  %1190 = vmatpush.msrb.mxu2 %v839_v6  ;;  %v2828_v43 = vld [vmem:[#allocation2 + $0x38] sm:$0xff]  ;;  %v551_v17 = vsel %vm546_vm0, %v547_v1, %v550_v15  ;;  %v931_v20 = vld [vmem:[%s4046_s3 + $0x3e8] sm:$0xff]  ;;  %v458_v15 = vld [vmem:[#allocation2 + $0x70] sm:$0x3] }
  0x4e   : > { %1076 = vmatpush.msrb.mxu1 %v824_v30  ;;  %1303 = vmatpush.msrb.mxu3 %v855_v31  ;;  %v489_v56 = vld [vmem:[#allocation2 + $0x168] sm:$0xff]  ;;  %v558_v29 = vrot.slane %v2828_v43, 1  ;;  %v664_v30 = vsel %vm659_vm1, %v660_v13, %v663_v19  ;;  %v452_v31 = vld [vmem:[#allocation2 + $0x40] sm:$0x3] }
  0x4f   : > { %1414 = vmatpush.msrb.mxu0 %v873_v8  ;;  %1191 = vmatpush.msrb.mxu2 %v838_v35  ;;  %v2866_v57 = vld [vmem:[#allocation2 + $0xb0] sm:$0xff]  ;;  %v665_v8 = vrot.slane %v2713_v41, 2  ;;  %v947_v34 = vld [vmem:[%s4046_s3 + $0x468] sm:$0xff]  ;;  %v560_v35 = vrot.slane %v452_v31, 1 }
  0x50   : > { %1077 = vmatpush.msrb.mxu1 %v823_v32  ;;  %1304 = vmatpush.msrb.mxu3 %v854_v36  ;;  %v2885_v7 = vld [vmem:[#allocation2 + $0x110] sm:$0xff]  ;;  %v2912_v6 = vsel %vm546_vm0, %v557_v24, %v558_v29  ;;  %v666_v32 = vrot.slane %v2747_v0, 2 }
  0x51   : > { %1415 = vmatpush.msrb.mxu0 %v872_v37  ;;  %1628 = vmatpush.msra.mxu2 %v917_v44  ;;  %v2855_v52 = vld [vmem:[#allocation2 + $0x48] sm:$0xff]  ;;  %v2925_v37 = vsel %vm546_vm0, %v558_v29, %v560_v35  ;;  %v898_v44 = vld [vmem:[%s4046_s3 + $0x2e0] sm:$0xff]  ;;  %v572_v29 = vrot.slane %v2700_v33, 1 }
  0x52   : > { %978 = vmatmul.f32.gmra.mxu0 %v2788_v27  ;;  %1078 = vmatpush.msrb.mxu1 %v822_v38  ;;  %v2887_v9 = vld [vmem:[#allocation2 + $0x170] sm:$0xff]  ;;  %v2922_v36 = vsel %vm659_vm1, %v665_v8, %v666_v32  ;;  %v930_v38 = vld [vmem:[%s4046_s3 + $0x3e0] sm:$0xff]  ;;  %v675_v16 = vrot.slane %v2855_v52, 2  ;;  %v3024_v35 = vld [vmem:[#allocation2 + $0x88] sm:$0x3] }
  0x53   : > { %1023 = vmatmul.f32.gmra.mxu2 %v2781_v23  ;;  %1416 = vmatpush.msrb.mxu0 %v871_v45  ;;  %v2868_v59 = vld [vmem:[#allocation2 + $0x50] sm:$0xff]  ;;  %v562_v45 = vrot.slane %v2855_v52, 1 }
  0x54   : > { %1047 = vmatmul.f32.gmra.mxu3 %v2784_v25  ;;  %1515 = vmatpush.msra.mxu1 %v901_v47 }
  0x55   : > { %1002 = vmatmul.f32.gmra.mxu1 %v2786_v26  ;;  %1741 = vmatpush.msra.mxu3 %v933_v46  ;;  %v563_v46 = vrot.slane %v2868_v59, 1 }
  0x56   : > { %1417 = vmatpush.msrb.mxu0 %v870_v48  ;;  %1629 = vmatpush.msra.mxu2 %v916_v60  ;;  %v671_v60 = vrot.slane %v2828_v43, 2 }
  0x57   : > { %1742 = vmatpush.msra.mxu3 %v932_v61  ;;  %1516 = vmatpush.msra.mxu1 %v900_v62  ;;  %v2945_v48 = vsel %vm546_vm0, %v562_v45, %v563_v46  ;;  %v946_v61 = vld [vmem:[%s4046_s3 + $0x460] sm:$0xff] }
  0x58   : > { %1854 = vmatpush.msra.mxu0 %v949_v53  ;;  %1630 = vmatpush.msra.mxu2 %v915_v2  ;;  %v455_v53 = vld [vmem:[#allocation2 + $0x58] sm:$0x3]  ;;  %v570_v2 = vrot.slane %v458_v15, 1 }
  0x59   : > { %1743 = vmatpush.msra.mxu3 %v931_v20  ;;  %1517 = vmatpush.msra.mxu1 %v899_v21  ;;  %v565_v62 = vrot.slane %v455_v53, 1  ;;  %v928_v21 = vld [vmem:[%s4046_s3 + $0x3d0] sm:$0xff] }
  0x5a   : > { %981 = vmatmul.f32.gmra.mxu0 %v2828_v43  ;;  %v2996_v20 = vsel %vm546_vm0, %v568_v11, %v570_v2  ;;  %v943_v2 = vld [vmem:[%s4046_s3 + $0x448] sm:$0xff] }
  0x5b   : > { %1026 = vmatmul.f32.gmra.mxu2 %v2822_v39  ;;  %1855 = vmatpush.msra.mxu0 %v948_v14  ;;  %v2960_v3 = vsel %vm546_vm0, %v563_v46, %v565_v62  ;;  %4090 = vst [vmem:[#allocation3_spill] sm:$0xff] %v2996_v20  ;;  %v577_v62 = vrot.slane %v2786_v26, 1 }
  0x5c   : > { %1050 = vmatmul.f32.gmra.mxu3 %v2824_v40  ;;  %1518 = vmatpush.msra.mxu1 %v898_v44  ;;  %v575_v44 = vrot.slane %v3024_v35, 1 }
  0x5d   : > { %1005 = vmatmul.f32.gmra.mxu1 %v2826_v42  ;;  %1856 = vmatpush.msra.mxu0 %v947_v34 }
  0x5e   : > { %1744 = vmatpush.msra.mxu3 %v930_v38  ;;  %v944_v38 = vld [vmem:[%s4046_s3 + $0x450] sm:$0xff] }
  0x5f   : > { %1857 = vmatpush.msra.mxu0 %v946_v61 }
  0x60   : > { %1745 = vmatpush.msra.mxu3 %v929_v5 }
  0x62   : > { %984 = vmatmul.f32.gmra.mxu0 %v2855_v52  ;;  %1746 = vmatpush.msra.mxu3 %v928_v21 }
  0x63   : > { %1029 = vmatmul.f32.gmra.mxu2 %v2849_v49 }
  0x64   : > { %1053 = vmatmul.f32.gmra.mxu3 %v2851_v50 }
  0x65   : > { %1008 = vmatmul.f32.gmra.mxu1 %v2853_v51 }
  0x6a   : > { %987 = vmatmul.f32.gmra.mxu0 %v2868_v59 }
  0x6b   : > { %1032 = vmatmul.f32.gmra.mxu2 %v2864_v55 }
  0x6c   : > { %1056 = vmatmul.f32.gmra.mxu3 %v489_v56  ;;  %v670_v56 = vrot.slane %v2788_v27, 2 }
  0x6d   : > { %1011 = vmatmul.f32.gmra.mxu1 %v2866_v57 }
  0x72   : > { %1418 = vmatmul.f32.vlgmr.msrb.gmra.mxu0 %v554_v10 }
  0x73   : > { %1035 = vmatmul.f32.gmra.mxu2 %v2885_v7 }
  0x74   : > { %1059 = vmatmul.f32.gmra.mxu3 %v2887_v9 }
  0x75   : > { %1079 = vmatmul.f32.vlgmr.msrb.gmra.mxu1 %v547_v1  ;;  %v2957_v1 = vsel %vm659_vm1, %v670_v56, %v671_v60  ;;  %v683_v56 = vrot.slane %v458_v15, 2 }
  0x7a   : > { %1421 = vmatmul.f32.gmra.mxu0 %v556_v18 }
  0x7b   : > { %1192 = vmatmul.f32.vlgmr.msrb.gmra.mxu2 %v660_v13 }
  0x7c   : > { %1305 = vmatmul.f32.vlgmr.msrb.gmra.mxu3 %v2713_v41  ;;  %v914_v41 = vld [vmem:[%s4046_s3 + $0x360] sm:$0xff] }
  0x7d   : > { %1082 = vmatmul.f32.gmra.mxu1 %v551_v17  ;;  %1631 = vmatpush.msra.mxu2 %v914_v41  ;;  %v676_v17 = vrot.slane %v2868_v59, 2  ;;  %v680_v41 = vrot.slane %v2478_v28, 2 }
  0x7f   : > { %v2993_v19 = vsel %vm659_vm1, %v675_v16, %v676_v17  ;;  %v3075_v16 = vld [vmem:[#allocation2 + $0xa0] sm:$0x3] }
  0x82   : > { %1424 = vmatmul.f32.gmra.mxu0 %v2912_v6 }
  0x83   : > { %1195 = vmatmul.f32.gmra.mxu2 %v664_v30  ;;  %v573_v30 = vrot.slane %v2745_v63, 1 }
  0x84   : > { %1308 = vmatmul.f32.gmra.mxu3 %v2747_v0  ;;  %v668_v0 = vrot.slane %v449_v12, 2  ;;  %v897_v12 = vld [vmem:[%s4046_s3 + $0x2d8] sm:$0xff] }
  0x85   : > { %1085 = vmatmul.f32.gmra.mxu1 %v554_v10  ;;  %v567_v10 = vrot.slane %v2478_v28, 1  ;;  %v3021_v34 = vsel %vm546_vm0, %v572_v29, %v573_v30 }
  0x86   : > { %v2942_v47 = vsel %vm659_vm1, %v666_v32, %v668_v0  ;;  %1519 = vmatpush.msra.mxu1 %v897_v12  ;;  %4091 = vst [vmem:[#allocation4_spill] sm:$0xff] %v3021_v34  ;;  %v681_v0 = vrot.slane %v2666_v4, 2 }
  0x87   : > { %v2981_v14 = vsel %vm546_vm0, %v567_v10, %v568_v11 }
  0x88   : > { %v3036_v45 = vsel %vm659_vm1, %v680_v41, %v681_v0  ;;  %v3065_v10 = vsel %vm659_vm1, %v681_v0, %v683_v56  ;;  %v688_v41 = vrot.slane %v3024_v35, 2  ;;  %v926_v0 = vld [vmem:[%s4046_s3 + $0x3c0] sm:$0xff] }
  0x89   : > { %4094 = vst [vmem:[#allocation7_spill] sm:$0xff] %v3065_v10  ;;  %v894_v35 = vld [vmem:[%s4046_s3 + $0x2c0] sm:$0xff] }
  0x8a   : > { %1427 = vmatmul.f32.gmra.mxu0 %v2925_v37 }
  0x8b   : > { %1198 = vmatmul.f32.gmra.mxu2 %v2922_v36 }
  0x8c   : > { %1311 = vmatmul.f32.gmra.mxu3 %v2788_v27  ;;  %v913_v27 = vld [vmem:[%s4046_s3 + $0x358] sm:$0xff] }
  0x8d   : > { %1088 = vmatmul.f32.gmra.mxu1 %v556_v18  ;;  %1632 = vmatpush.msra.mxu2 %v913_v27  ;;  %v945_v18 = vld [vmem:[%s4046_s3 + $0x458] sm:$0xff]  ;;  %v578_v27 = vrot.slane %v2826_v42, 1 }
  0x8e   : > { %1858 = vmatpush.msra.mxu0 %v945_v18  ;;  %v686_v18 = vrot.slane %v2745_v63, 2 }
  0x8f   : > { %v3072_v15 = vsel %vm546_vm0, %v577_v62, %v578_v27 }
  0x90   : > { %1859 = vmatpush.msra.mxu0 %v944_v38  ;;  %4095 = vst [vmem:[#allocation8_spill] sm:$0xff] %v3072_v15 }
  0x92   : > { %1430 = vmatmul.f32.gmra.mxu0 %v2945_v48 }
  0x93   : > { %1201 = vmatmul.f32.gmra.mxu2 %v2942_v47  ;;  %1860 = vmatpush.msra.mxu0 %v943_v2  ;;  %v690_v2 = vrot.slane %v2786_v26, 2 }
  0x94   : > { %1314 = vmatmul.f32.gmra.mxu3 %v2828_v43  ;;  %v673_v43 = vrot.slane %v452_v31, 2  ;;  %v896_v31 = vld [vmem:[%s4046_s3 + $0x2d0] sm:$0xff] }
  0x95   : > { %1091 = vmatmul.f32.gmra.mxu1 %v2912_v6 }
  0x96   : > { %v2978_v13 = vsel %vm659_vm1, %v671_v60, %v673_v43  ;;  %1520 = vmatpush.msra.mxu1 %v896_v31  ;;  %v927_v60 = vld [vmem:[%s4046_s3 + $0x3c8] sm:$0xff]  ;;  %v910_v31 = vld [vmem:[%s4046_s3 + $0x340] sm:$0xff] }
  0x97   : > { %1747 = vmatpush.msra.mxu3 %v927_v60  ;;  %v895_v43 = vld [vmem:[%s4046_s3 + $0x2c8] sm:$0xff]  ;;  %v3121_v60 = vsel %vm659_vm1, %v686_v18, %v688_v41 }
  0x98   : > { %1521 = vmatpush.msra.mxu1 %v895_v43  ;;  %4100 = vst [vmem:[#allocation13_spill] sm:$0xff] %v3121_v60 }
  0x99   : > { %1748 = vmatpush.msra.mxu3 %v926_v0 }
  0x9a   : > { %1433 = vmatmul.f32.gmra.mxu0 %v2960_v3  ;;  %1522 = vmatpush.msra.mxu1 %v894_v35 }
  0x9b   : > { %1204 = vmatmul.f32.gmra.mxu2 %v2957_v1 }
  0x9c   : > { %1317 = vmatmul.f32.gmra.mxu3 %v2855_v52  ;;  %v912_v52 = vld [vmem:[%s4046_s3 + $0x350] sm:$0xff] }
  0x9d   : > { %1094 = vmatmul.f32.gmra.mxu1 %v2925_v37  ;;  %1633 = vmatpush.msra.mxu2 %v912_v52 }
  0xa2   : > { %1436 = vmatmul.f32.gmra.mxu0 %v2981_v14 }
  0xa3   : > { %1207 = vmatmul.f32.gmra.mxu2 %v2978_v13 }
  0xa4   : > { %1320 = vmatmul.f32.gmra.mxu3 %v2868_v59  ;;  %v678_v59 = vrot.slane %v455_v53, 2 }
  0xa5   : > { %1097 = vmatmul.f32.gmra.mxu1 %v2945_v48 }
  0xa6   : > { %v3016_v8 = vsel %vm659_vm1, %v676_v17, %v678_v59  ;;  %v685_v17 = vrot.slane %v2700_v33, 2  ;;  %v580_v59 = vrot.slane %v3075_v16, 1 }
  0xa8   : > { %v3018_v32 = vpop.f32.mrf.mxu1  ;;  %v3091_v29 = vsel %vm659_vm1, %v685_v17, %v686_v18  ;;  %v3131_v17 = vld [vmem:[#allocation2 + $0xb8] sm:$0x3]  ;;  %v942_v18 = vld [vmem:[%s4046_s3 + $0x440] sm:$0xff] }
  0xa9   : > { %4097 = vst [vmem:[#allocation10_spill] sm:$0xff] %v3091_v29  ;;  %v585_v41 = vrot.slane %v3131_v17, 1  ;;  %1861 = vmatpush.msra.mxu0 %v942_v18  ;;  %v693_v18 = vrot.slane %v3075_v16, 2  ;;  %v893_v16 = vld [vmem:[%s4046_s3 + $0x2b8] sm:$0xff] }
  0xaa   : > { %1439 = vmatmul.f32.gmra.mxu0 %v2996_v20  ;;  %1523 = vmatpush.msra.mxu1 %v893_v16 }
  0xab   : > { %1210 = vmatmul.f32.gmra.mxu2 %v2993_v19 }
  0xac   : > { %1323 = vmatmul.f32.gmra.mxu3 %v2478_v28  ;;  %v3008_v24 = vpop.f32.mrf.mxu0  ;;  %v3043_v28 = vsel %vm546_vm0, %v573_v30, %v575_v44  ;;  %v3098_v30 = vsel %vm546_vm0, %v578_v27, %v580_v59  ;;  %v582_v44 = vrot.slane %v2853_v51, 1  ;;  %v691_v59 = vrot.slane %v2826_v42, 2 }
  0xad   : > { %1100 = vmatmul.f32.gmra.mxu1 %v2960_v3  ;;  %4092 = vst [vmem:[#allocation5_spill] sm:$0xff] %v3043_v28 }
  0xae   : > { %4098 = vst [vmem:[#allocation11_spill] sm:$0xff] %v3098_v30 }
  0xb2   : > { %1442 = vmatmul.f32.gmra.mxu0 %v3021_v34 }
  0xb3   : > { %1213 = vmatmul.f32.gmra.mxu2 %v3016_v8 }
  0xb4   : > { %1326 = vmatmul.f32.gmra.mxu3 %v2666_v4  ;;  %v911_v4 = vld [vmem:[%s4046_s3 + $0x348] sm:$0xff] }
  0xb5   : > { %1103 = vmatmul.f32.gmra.mxu1 %v2981_v14  ;;  %v3038_v46 = vpop.f32.mrf.mxu0  ;;  %1634 = vmatpush.msra.mxu2 %v911_v4  ;;  %v583_v4 = vrot.slane %v2866_v57, 1 }
  0xb7   : > { %1635 = vmatpush.msra.mxu2 %v910_v31  ;;  %v3128_v43 = vsel %vm546_vm0, %v582_v44, %v583_v4  ;;  %v3147_v44 = vsel %vm659_vm1, %v690_v2, %v691_v59  ;;  %v3154_v35 = vsel %vm546_vm0, %v583_v4, %v585_v41  ;;  %v925_v2 = vld [vmem:[%s4046_s3 + $0x3b8] sm:$0xff]  ;;  %v587_v41 = vrot.slane %v2654_v58, 1 }
  0xb8   : > { %4101 = vst [vmem:[#allocation14_spill] sm:$0xff] %v3128_v43  ;;  %1749 = vmatpush.msra.mxu3 %v925_v2  ;;  %v3187_v2 = vld [vmem:[#allocation2 + $0xd0] sm:$0x3] }
  0xb9   : > { %4103 = vst [vmem:[#allocation16_spill] sm:$0xff] %v3147_v44 }
  0xba   : > { %v3040_v53 = vpop.f32.mrf.mxu1  ;;  %1445 = vmatmul.f32.gmra.mxu0 %v3043_v28  ;;  %4104 = vst [vmem:[#allocation17_spill] sm:$0xff] %v3154_v35 }
  0xbb   : > { %1216 = vmatmul.f32.gmra.mxu2 %v3036_v45 }
  0xbc   : > { %1329 = vmatmul.f32.gmra.mxu3 %v2700_v33 }
  0xbd   : > { %1106 = vmatmul.f32.gmra.mxu1 %v2996_v20 }
  0xbe   : > { %v3055_v61 = vpop.f32.mrf.mxu2 }
  0xbf   : > { %v3062_v5 = vpop.f32.mrf.mxu3  ;;  %v3069_v12 = vpop.f32.mrf.mxu0 }
  0xc0   : > { %4093 = vst [vmem:[#allocation6_spill] sm:$0xff] %v3062_v5 }
  0xc2   : > { %v3067_v11 = vpop.f32.mrf.mxu1  ;;  %1448 = vmatmul.f32.gmra.mxu0 %v3072_v15 }
  0xc3   : > { %1219 = vmatmul.f32.gmra.mxu2 %v3065_v10 }
  0xc4   : > { %1332 = vmatmul.f32.gmra.mxu3 %v2745_v63 }
  0xc5   : > { %1109 = vmatmul.f32.gmra.mxu1 %v3021_v34 }
  0xc6   : > { %v3085_v52 = vpop.f32.mrf.mxu2 }
  0xc7   : > { %v3088_v21 = vpop.f32.mrf.mxu3  ;;  %v3095_v63 = vpop.f32.mrf.mxu0 }
  0xc8   : > { %4096 = vst [vmem:[#allocation9_spill] sm:$0xff] %v3088_v21 }
  0xca   : > { %v3093_v33 = vpop.f32.mrf.mxu1  ;;  %1451 = vmatmul.f32.gmra.mxu0 %v3098_v30 }
  0xcb   : > { %1222 = vmatmul.f32.gmra.mxu2 %v3091_v29 }
  0xcc   : > { %1335 = vmatmul.f32.gmra.mxu3 %v2786_v26 }
  0xcd   : > { %1112 = vmatmul.f32.gmra.mxu1 %v3043_v28 }
  0xce   : > { %v3111_v38 = vpop.f32.mrf.mxu2 }
  0xcf   : > { %v3118_v56 = vpop.f32.mrf.mxu3  ;;  %v3125_v27 = vpop.f32.mrf.mxu0 }
  0xd0   : > { %4099 = vst [vmem:[#allocation12_spill] sm:$0xff] %v3118_v56  ;;  %v909_v56 = vld [vmem:[%s4046_s3 + $0x338] sm:$0xff] }
  0xd1   : > { %1636 = vmatpush.msra.mxu2 %v909_v56  ;;  %v3177_v56 = vsel %vm659_vm1, %v691_v59, %v693_v18  ;;  %v941_v59 = vld [vmem:[%s4046_s3 + $0x438] sm:$0xff] }
  0xd2   : > { %v3123_v62 = vpop.f32.mrf.mxu1  ;;  %1454 = vmatmul.f32.gmra.mxu0 %v3128_v43  ;;  %4106 = vst [vmem:[#allocation19_spill] sm:$0xff] %v3177_v56 }
  0xd3   : > { %1225 = vmatmul.f32.gmra.mxu2 %v3121_v60  ;;  %1862 = vmatpush.msra.mxu0 %v941_v59  ;;  %v698_v59 = vrot.slane %v3131_v17, 2 }
  0xd4   : > { %1338 = vmatmul.f32.gmra.mxu3 %v2826_v42 }
  0xd5   : > { %1115 = vmatmul.f32.gmra.mxu1 %v3072_v15 }
  0xd6   : > { %v3141_v31 = vpop.f32.mrf.mxu2 }
  0xd7   : > { %v3144_v0 = vpop.f32.mrf.mxu3  ;;  %v3151_v42 = vpop.f32.mrf.mxu0 }
  0xd8   : > { %4102 = vst [vmem:[#allocation15_spill] sm:$0xff] %v3144_v0  ;;  %v588_v0 = vrot.slane %v2692_v22, 1 }
  0xda   : > { %v3149_v26 = vpop.f32.mrf.mxu1  ;;  %1457 = vmatmul.f32.gmra.mxu0 %v3154_v35  ;;  %v3184_v15 = vsel %vm546_vm0, %v587_v41, %v588_v0  ;;  %v590_v41 = vrot.slane %v3187_v2, 1 }
  0xdb   : > { %1228 = vmatmul.f32.gmra.mxu2 %v3147_v44  ;;  %4107 = vst [vmem:[#allocation20_spill] sm:$0xff] %v3184_v15  ;;  %v696_v44 = vrot.slane %v2866_v57, 2 }
  0xdc   : > { %1341 = vmatmul.f32.gmra.mxu3 %v2853_v51  ;;  %v3210_v28 = vsel %vm546_vm0, %v588_v0, %v590_v41  ;;  %v592_v41 = vrot.slane %v2737_v54, 1 }
  0xdd   : > { %1118 = vmatmul.f32.gmra.mxu1 %v3098_v30  ;;  %4111 = vst [vmem:[#allocation24_spill] sm:$0xff] %v3210_v28  ;;  %v3233_v17 = vsel %vm659_vm1, %v696_v44, %v698_v59 }
  0xde   : > { %v3167_v4 = vpop.f32.mrf.mxu2  ;;  %4114 = vst [vmem:[#allocation27_spill] sm:$0xff] %v3233_v17 }
  0xdf   : > { %v3171_v21 = vpop.f32.mrf.mxu3  ;;  %v3181_v5 = vpop.f32.mrf.mxu0 }
  0xe0   : > { %4105 = vst [vmem:[#allocation18_spill] sm:$0xff] %v3171_v21  ;;  %v695_v21 = vrot.slane %v2853_v51, 2 }
  0xe2   : > { %v3179_v30 = vpop.f32.mrf.mxu1  ;;  %1460 = vmatmul.f32.gmra.mxu0 %v3184_v15 }
  0xe3   : > { %1231 = vmatmul.f32.gmra.mxu2 %v3177_v56  ;;  %v3203_v56 = vsel %vm659_vm1, %v695_v21, %v696_v44  ;;  %v924_v21 = vld [vmem:[%s4046_s3 + $0x3b0] sm:$0xff] }
  0xe4   : > { %1344 = vmatmul.f32.gmra.mxu3 %v2866_v57  ;;  %4110 = vst [vmem:[#allocation23_spill] sm:$0xff] %v3203_v56  ;;  %v940_v44 = vld [vmem:[%s4046_s3 + $0x430] sm:$0xff] }
  0xe5   : > { %1121 = vmatmul.f32.gmra.mxu1 %v3128_v43  ;;  %v908_v43 = vld [vmem:[%s4046_s3 + $0x330] sm:$0xff]  ;;  %1750 = vmatpush.msra.mxu3 %v924_v21  ;;  %v700_v21 = vrot.slane %v2654_v58, 2 }
  0xe6   : > { %v3197_v18 = vpop.f32.mrf.mxu2  ;;  %1637 = vmatpush.msra.mxu2 %v908_v43  ;;  %v892_v43 = vld [vmem:[%s4046_s3 + $0x2b0] sm:$0xff]  ;;  %1863 = vmatpush.msra.mxu0 %v940_v44  ;;  %v703_v44 = vrot.slane %v3187_v2, 2 }
  0xe7   : > { %4108 = vst [vmem:[#allocation21_spill] sm:$0xff] %v3197_v18  ;;  %v3200_v16 = vpop.f32.mrf.mxu3  ;;  %v3207_v57 = vpop.f32.mrf.mxu0  ;;  %1524 = vmatpush.msra.mxu1 %v892_v43 }
  0xe8   : > { %4109 = vst [vmem:[#allocation22_spill] sm:$0xff] %v3200_v16  ;;  %v593_v16 = vrot.slane %v2781_v23, 1 }
  0xea   : > { %v3205_v51 = vpop.f32.mrf.mxu1  ;;  %1463 = vmatmul.f32.gmra.mxu0 %v3210_v28  ;;  %v3236_v34 = vsel %vm546_vm0, %v592_v41, %v593_v16 }
  0xeb   : > { %1234 = vmatmul.f32.gmra.mxu2 %v3203_v56 }
  0xec   : > { %1347 = vmatmul.f32.gmra.mxu3 %v2654_v58 }
  0xed   : > { %1124 = vmatmul.f32.gmra.mxu1 %v3154_v35 }
  0xee   : > { %v3223_v0 = vpop.f32.mrf.mxu2 }
  0xef   : > { %4112 = vst [vmem:[#allocation25_spill] sm:$0xff] %v3223_v0  ;;  %v3227_v56 = vpop.f32.mrf.mxu3  ;;  %v1419_v60 = vpop.f32.mrf.mxu0  ;;  %v3239_v0 = vld [vmem:[#allocation2 + $0xe8] sm:$0x3] }
  0xf0   : > { %4113 = vst [vmem:[#allocation26_spill] sm:$0xff] %v3227_v56  ;;  %v701_v56 = vrot.slane %v2692_v22, 2  ;;  %v595_v41 = vrot.slane %v3239_v0, 1 }
  0xf2   : > { %v1080_v35 = vpop.f32.mrf.mxu1  ;;  %1466 = vmatmul.f32.gmra.mxu0 %v3236_v34  ;;  %v3258_v29 = vsel %vm546_vm0, %v593_v16, %v595_v41  ;;  %v597_v41 = vrot.slane %v2822_v39, 1  ;;  %v3278_v2 = vsel %vm659_vm1, %v701_v56, %v703_v44 }
  0xf3   : > { %1237 = vmatmul.f32.gmra.mxu2 %v3233_v17  ;;  %v3255_v17 = vsel %vm659_vm1, %v700_v21, %v701_v56  ;;  %v923_v21 = vld [vmem:[%s4046_s3 + $0x3a8] sm:$0xff]  ;;  %v706_v56 = vrot.slane %v2781_v23, 2 }
  0xf4   : > { %1350 = vmatmul.f32.gmra.mxu3 %v2692_v22  ;;  %4117 = vst [vmem:[#allocation30_spill] sm:$0xff] %v3255_v17 }
  0xf5   : > { %1127 = vmatmul.f32.gmra.mxu1 %v3184_v15  ;;  %v907_v15 = vld [vmem:[%s4046_s3 + $0x328] sm:$0xff]  ;;  %1751 = vmatpush.msra.mxu3 %v923_v21  ;;  %v705_v21 = vrot.slane %v2737_v54, 2 }
  0xf6   : > { %v3249_v59 = vpop.f32.mrf.mxu2  ;;  %1638 = vmatpush.msra.mxu2 %v907_v15  ;;  %v891_v15 = vld [vmem:[%s4046_s3 + $0x2a8] sm:$0xff] }
  0xf7   : > { %4115 = vst [vmem:[#allocation28_spill] sm:$0xff] %v3249_v59  ;;  %v3252_v43 = vpop.f32.mrf.mxu3  ;;  %v1422_v22 = vpop.f32.mrf.mxu0  ;;  %1525 = vmatpush.msra.mxu1 %v891_v15 }
  0xf8   : > { %4116 = vst [vmem:[#allocation29_spill] sm:$0xff] %v3252_v43  ;;  %v1081_v43 = vadd.f32 %v1080_v35, %v3008_v24 }
  0xfa   : > { %v1083_v58 = vpop.f32.mrf.mxu1  ;;  %1469 = vmatmul.f32.gmra.mxu0 %v3258_v29 }
  0xfb   : > { %1240 = vmatmul.f32.gmra.mxu2 %v3255_v17  ;;  %v598_v17 = vrot.slane %v2849_v49, 1 }
  0xfc   : > { %1353 = vmatmul.f32.gmra.mxu3 %v2737_v54  ;;  %v3299_v54 = vsel %vm659_vm1, %v705_v21, %v706_v56  ;;  %v922_v21 = vld [vmem:[%s4046_s3 + $0x3a0] sm:$0xff] }
  0xfd   : > { %1130 = vmatmul.f32.gmra.mxu1 %v3210_v28  ;;  %v3281_v20 = vsel %vm546_vm0, %v597_v41, %v598_v17  ;;  %1752 = vmatpush.msra.mxu3 %v922_v21  ;;  %v3332_v21 = vld [vmem:[#allocation2 + $0x118] sm:$0x3] }
  0xfe   : > { %v1193_v16 = vpop.f32.mrf.mxu2  ;;  %4118 = vst [vmem:[#allocation31_spill] sm:$0xff] %v3281_v20 }
  0xff   : > { %v1194_v59 = vadd.f32 %v1193_v16, %v1081_v43  ;;  %v1306_v18 = vpop.f32.mrf.mxu3  ;;  %v1425_v28 = vpop.f32.mrf.mxu0  ;;  %v3286_v43 = vld [vmem:[#allocation2 + $0x100] sm:$0x3] }
 0x100   : > { %v600_v44 = vrot.slane %v3286_v43, 1 }
 0x101   : > { %v1307_v24 = vadd.f32 %v1306_v18, %v1194_v59  ;;  %v939_v18 = vld [vmem:[%s4046_s3 + $0x428] sm:$0xff]  ;;  %v1084_v59 = vadd.f32 %v1083_v58, %v3038_v46  ;;  %v906_v58 = vld [vmem:[%s4046_s3 + $0x320] sm:$0xff] }
 0x102   : > { %v1086_v35 = vpop.f32.mrf.mxu1  ;;  %1472 = vmatmul.f32.gmra.mxu0 %v3281_v20  ;;  %1639 = vmatpush.msra.mxu2 %v906_v58 }
 0x103   : > { %v3283_v10 = vadd.f32 %v1419_v60, %v1307_v24  ;;  %1243 = vmatmul.f32.gmra.mxu2 %v3278_v2  ;;  %1864 = vmatpush.msra.mxu0 %v939_v18  ;;  %v708_v18 = vrot.slane %v3239_v0, 2  ;;  %v890_v0 = vld [vmem:[%s4046_s3 + $0x2a0] sm:$0xff] }
 0x104   : > { %1356 = vmatmul.f32.gmra.mxu3 %v2781_v23  ;;  %1526 = vmatpush.msra.mxu1 %v890_v0 }
 0x105   : > { %4119 = vst [vmem:[#allocation32_spill] sm:$0xff] %v3283_v10  ;;  %1133 = vmatmul.f32.gmra.mxu1 %v3236_v34  ;;  %v3302_v10 = vsel %vm546_vm0, %v598_v17, %v600_v44  ;;  %v1087_v17 = vadd.f32 %v1086_v35, %v3069_v12 }
 0x106   : > { %v1196_v60 = vpop.f32.mrf.mxu2  ;;  %4120 = vst [vmem:[#allocation33_spill] sm:$0xff] %v3302_v10 }
 0x107   : > { %v1197_v16 = vadd.f32 %v1196_v60, %v1084_v59  ;;  %v1309_v41 = vpop.f32.mrf.mxu3  ;;  %v1428_v24 = vpop.f32.mrf.mxu0  ;;  %v602_v59 = vrot.slane %v2864_v55, 1  ;;  %v603_v60 = vrot.slane %v2885_v7, 1 }
 0x109   : > { %v1310_v23 = vadd.f32 %v1309_v41, %v1197_v16  ;;  %v3324_v41 = vsel %vm659_vm1, %v706_v56, %v708_v18  ;;  %v3327_v58 = vsel %vm546_vm0, %v602_v59, %v603_v60  ;;  %v711_v56 = vrot.slane %v2849_v49, 2  ;;  %v938_v18 = vld [vmem:[%s4046_s3 + $0x420] sm:$0xff] }
 0x10a   : > { %v1089_v15 = vpop.f32.mrf.mxu1  ;;  %1475 = vmatmul.f32.gmra.mxu0 %v3302_v10  ;;  %v605_v59 = vrot.slane %v3332_v21, 1 }
 0x10b   : > { %v3304_v46 = vadd.f32 %v1422_v22, %v1310_v23  ;;  %1246 = vmatmul.f32.gmra.mxu2 %v3299_v54  ;;  %1865 = vmatpush.msra.mxu0 %v938_v18  ;;  %v713_v18 = vrot.slane %v3286_v43, 2 }
 0x10c   : > { %1359 = vmatmul.f32.gmra.mxu3 %v2822_v39 }
 0x10d   : > { %4121 = vst [vmem:[#allocation34_spill] sm:$0xff] %v3304_v46  ;;  %1136 = vmatmul.f32.gmra.mxu1 %v3258_v29 }
 0x10e   : > { %v1199_v22 = vpop.f32.mrf.mxu2 }
 0x10f   : > { %v1200_v44 = vadd.f32 %v1199_v22, %v1087_v17  ;;  %v1312_v16 = vpop.f32.mrf.mxu3  ;;  %v1431_v23 = vpop.f32.mrf.mxu0  ;;  %v710_v17 = vrot.slane %v2822_v39, 2  ;;  %v1090_v22 = vadd.f32 %v1089_v15, %v3095_v63  ;;  %v905_v15 = vld [vmem:[%s4046_s3 + $0x318] sm:$0xff] }
 0x110   : > { %1640 = vmatpush.msra.mxu2 %v905_v15 }
 0x111   : > { %v1313_v12 = vadd.f32 %v1312_v16, %v1200_v44  ;;  %v3345_v39 = vsel %vm659_vm1, %v710_v17, %v711_v56  ;;  %v921_v17 = vld [vmem:[%s4046_s3 + $0x398] sm:$0xff] }
 0x112   : > { %v1092_v35 = vpop.f32.mrf.mxu1  ;;  %1478 = vmatmul.f32.gmra.mxu0 %v3327_v58  ;;  %1753 = vmatpush.msra.mxu3 %v921_v17  ;;  %v3382_v17 = vld [vmem:[#allocation2 + $0x130] sm:$0x3] }
 0x113   : > { %v3329_v46 = vadd.f32 %v1425_v28, %v1313_v12  ;;  %1249 = vmatmul.f32.gmra.mxu2 %v3324_v41 }
 0x114   : > { %1362 = vmatmul.f32.gmra.mxu3 %v2849_v49 }
 0x115   : > { %4122 = vst [vmem:[#allocation35_spill] sm:$0xff] %v3329_v46  ;;  %1139 = vmatmul.f32.gmra.mxu1 %v3281_v20  ;;  %v3348_v46 = vsel %vm546_vm0, %v603_v60, %v605_v59  ;;  %v1093_v60 = vadd.f32 %v1092_v35, %v3125_v27  ;;  %v3367_v59 = vld [vmem:[#allocation2 + $0x128] sm:$0xff]  ;;  %v889_v27 = vld [vmem:[%s4046_s3 + $0x298] sm:$0xff]  ;;  %v3374_v35 = vsel %vm659_vm1, %v711_v56, %v713_v18  ;;  %v716_v56 = vrot.slane %v2885_v7, 2 }
 0x116   : > { %v1202_v28 = vpop.f32.mrf.mxu2  ;;  %4123 = vst [vmem:[#allocation36_spill] sm:$0xff] %v3348_v46  ;;  %v608_v43 = vrot.slane %v3367_v59, 1  ;;  %1527 = vmatpush.msra.mxu1 %v889_v27  ;;  %v937_v18 = vld [vmem:[%s4046_s3 + $0x418] sm:$0xff] }
 0x117   : > { %v1203_v44 = vadd.f32 %v1202_v28, %v1090_v22  ;;  %v1315_v16 = vpop.f32.mrf.mxu3  ;;  %v1434_v12 = vpop.f32.mrf.mxu0  ;;  %v3364_v22 = vld [vmem:[#allocation2 + $0x120] sm:$0xff]  ;;  %4125 = vst [vmem:[#allocation38_spill] sm:$0xff] %v3367_v59  ;;  %1866 = vmatpush.msra.mxu0 %v937_v18  ;;  %v718_v18 = vrot.slane %v3332_v21, 2 }
 0x118   : > { %v607_v28 = vrot.slane %v3364_v22, 1 }
 0x119   : > { %v1316_v49 = vadd.f32 %v1315_v16, %v1203_v44 }
 0x11a   : > { %v1095_v0 = vpop.f32.mrf.mxu1  ;;  %1481 = vmatmul.f32.gmra.mxu0 %v3348_v46 }
 0x11b   : > { %v3350_v63 = vadd.f32 %v1428_v24, %v1316_v49  ;;  %1252 = vmatmul.f32.gmra.mxu2 %v3345_v39 }
 0x11c   : > { %1365 = vmatmul.f32.gmra.mxu3 %v2864_v55 }
 0x11d   : > { %4124 = vst [vmem:[#allocation37_spill] sm:$0xff] %v3350_v63  ;;  %1142 = vmatmul.f32.gmra.mxu1 %v3302_v10  ;;  %v3377_v10 = vsel %vm546_vm0, %v607_v28, %v608_v43  ;;  %v610_v28 = vrot.slane %v3382_v17, 1 }
 0x11e   : > { %v1205_v24 = vpop.f32.mrf.mxu2  ;;  %4126 = vst [vmem:[#allocation39_spill] sm:$0xff] %v3377_v10 }
 0x11f   : > { %v1206_v44 = vadd.f32 %v1205_v24, %v1093_v60  ;;  %v1318_v16 = vpop.f32.mrf.mxu3  ;;  %v1437_v63 = vpop.f32.mrf.mxu0  ;;  %v715_v60 = vrot.slane %v2864_v55, 2  ;;  %v1096_v24 = vadd.f32 %v1095_v0, %v3151_v42  ;;  %v904_v0 = vld [vmem:[%s4046_s3 + $0x310] sm:$0xff] }
 0x120   : > { %1641 = vmatpush.msra.mxu2 %v904_v0 }
 0x121   : > { %v1319_v49 = vadd.f32 %v1318_v16, %v1206_v44  ;;  %v3395_v55 = vsel %vm659_vm1, %v715_v60, %v716_v56  ;;  %v920_v60 = vld [vmem:[%s4046_s3 + $0x390] sm:$0xff] }
 0x122   : > { %v1098_v15 = vpop.f32.mrf.mxu1  ;;  %1484 = vmatmul.f32.gmra.mxu0 %v3377_v10  ;;  %1754 = vmatpush.msra.mxu3 %v920_v60  ;;  %v720_v60 = vrot.slane %v3364_v22, 2 }
 0x123   : > { %v3379_v20 = vadd.f32 %v1431_v23, %v1319_v49  ;;  %1255 = vmatmul.f32.gmra.mxu2 %v3374_v35 }
 0x124   : > { %1368 = vmatmul.f32.gmra.mxu3 %v2885_v7 }
 0x125   : > { %4127 = vst [vmem:[#allocation40_spill] sm:$0xff] %v3379_v20  ;;  %1145 = vmatmul.f32.gmra.mxu1 %v3327_v58  ;;  %v3398_v20 = vsel %vm546_vm0, %v608_v43, %v610_v28  ;;  %v1099_v43 = vadd.f32 %v1098_v15, %v3181_v5  ;;  %v613_v28 = vrot.slane %v2784_v25, 1  ;;  %v3422_v5 = vsel %vm659_vm1, %v716_v56, %v718_v18  ;;  %v3430_v25 = vld [vmem:[#allocation2 + $0x148] sm:$0x3]  ;;  %v936_v18 = vld [vmem:[%s4046_s3 + $0x410] sm:$0xff] }
 0x126   : > { %v1208_v23 = vpop.f32.mrf.mxu2  ;;  %4128 = vst [vmem:[#allocation41_spill] sm:$0xff] %v3398_v20  ;;  %v721_v56 = vrot.slane %v3367_v59, 2  ;;  %1867 = vmatpush.msra.mxu0 %v936_v18  ;;  %v919_v18 = vld [vmem:[%s4046_s3 + $0x388] sm:$0xff] }
 0x127   : > { %v1209_v44 = vadd.f32 %v1208_v23, %v1096_v24  ;;  %v1321_v16 = vpop.f32.mrf.mxu3  ;;  %v1440_v49 = vpop.f32.mrf.mxu0  ;;  %v3414_v24 = vld [vmem:[#allocation2 + $0x138] sm:$0xff]  ;;  %1755 = vmatpush.msra.mxu3 %v919_v18 }
 0x128   : > { %4130 = vst [vmem:[#allocation43_spill] sm:$0xff] %v3414_v24  ;;  %v612_v23 = vrot.slane %v3414_v24, 1 }
 0x129   : > { %v1322_v7 = vadd.f32 %v1321_v16, %v1209_v44  ;;  %v888_v16 = vld [vmem:[%s4046_s3 + $0x290] sm:$0xff] }
 0x12a   : > { %v1101_v27 = vpop.f32.mrf.mxu1  ;;  %1487 = vmatmul.f32.gmra.mxu0 %v3398_v20  ;;  %1528 = vmatpush.msra.mxu1 %v888_v16 }
 0x12b   : > { %v3400_v42 = vadd.f32 %v1434_v12, %v1322_v7  ;;  %1258 = vmatmul.f32.gmra.mxu2 %v3395_v55 }
 0x12c   : > { %1371 = vmatmul.f32.gmra.mxu3 %v3364_v22 }
 0x12d   : > { %4129 = vst [vmem:[#allocation42_spill] sm:$0xff] %v3400_v42  ;;  %1148 = vmatmul.f32.gmra.mxu1 %v3348_v46  ;;  %v3425_v42 = vsel %vm546_vm0, %v612_v23, %v613_v28 }
 0x12e   : > { %v1211_v12 = vpop.f32.mrf.mxu2 }
 0x12f   : > { %v1212_v21 = vadd.f32 %v1211_v12, %v1099_v43  ;;  %v1324_v44 = vpop.f32.mrf.mxu3  ;;  %v1443_v0 = vpop.f32.mrf.mxu0  ;;  %v1102_v43 = vadd.f32 %v1101_v27, %v3207_v57  ;;  %v615_v12 = vrot.slane %v3430_v25, 1  ;;  %v903_v27 = vld [vmem:[%s4046_s3 + $0x308] sm:$0xff] }
 0x130   : > { %1642 = vmatpush.msra.mxu2 %v903_v27 }
 0x131   : > { %v1325_v15 = vadd.f32 %v1324_v44, %v1212_v21  ;;  %v3443_v44 = vsel %vm659_vm1, %v720_v60, %v721_v56  ;;  %v723_v60 = vrot.slane %v3382_v17, 2 }
 0x132   : > { %v1104_v7 = vpop.f32.mrf.mxu1  ;;  %1490 = vmatmul.f32.gmra.mxu0 %v3425_v42 }
 0x133   : > { %v3427_v46 = vadd.f32 %v1437_v63, %v1325_v15  ;;  %1261 = vmatmul.f32.gmra.mxu2 %v3422_v5 }
 0x134   : > { %1374 = vmatmul.f32.gmra.mxu3 %v3367_v59  ;;  %v3446_v59 = vsel %vm546_vm0, %v613_v28, %v615_v12  ;;  %v1105_v28 = vadd.f32 %v1104_v7, %v3018_v32  ;;  %v306_v12 = vld [vmem:[%s2404_s8 + $0xf0] sm:$0xff]  ;;  %v2303_v32 = vld [vmem:[%s4044_s1] ss:$0 sm:$0xff] }
 0x135   : > { %4131 = vst [vmem:[#allocation44_spill] sm:$0xff] %v3427_v46  ;;  %1151 = vmatmul.f32.gmra.mxu1 %v3377_v10  ;;  %v342_v7 = vmul.f32 %v2303_v32, %v306_v12  ;;  %v3483_v12 = vld [vmem:[#allocation2 + $0x160] sm:$0x3] }
 0x136   : > { %v1214_v63 = vpop.f32.mrf.mxu2 }
 0x137   : > { %v1215_v23 = vadd.f32 %v1214_v63, %v1102_v43  ;;  %v1327_v21 = vpop.f32.mrf.mxu3  ;;  %v1446_v46 = vpop.f32.mrf.mxu0  ;;  %v617_v43 = vrot.slane %v2824_v40, 1  ;;  %v618_v63 = vrot.slane %v2851_v50, 1  ;;  %v2304_v50 = vld [vmem:[%s4045_s2] ss:$0 sm:$0xff] }
 0x138   : > { %v378_v27 = vadd.f32 %v2304_v50, %v342_v7 }
 0x139   : > { %v1328_v16 = vadd.f32 %v1327_v21, %v1215_v23  ;;  %v887_v21 = vld [vmem:[%s4046_s3 + $0x288] sm:$0xff] }
 0x13a   : > { %v1107_v15 = vpop.f32.mrf.mxu1  ;;  %1493 = vmatmul.f32.gmra.mxu0 %v3446_v59  ;;  %1529 = vmatpush.msra.mxu1 %v887_v21  ;;  %v3486_v21 = vld [vmem:[#allocation2 + $0x140] sm:$0xff] }
 0x13b   : > { %v3448_v57 = vadd.f32 %v1440_v49, %v1328_v16  ;;  %1264 = vmatmul.f32.gmra.mxu2 %v3443_v44  ;;  %v3472_v16 = vsel %vm659_vm1, %v721_v56, %v723_v60  ;;  %v410_v56 = vmax.f32 %v378_v27, 0.0  ;;  %v307_v60 = vld [vmem:[%s2404_s8 + $0xf8] sm:$0xff]  ;;  %4135 = vst [vmem:[#allocation48_spill] sm:$0xff] %v3486_v21  ;;  %v1108_v7 = vadd.f32 %v1107_v15, %v3040_v53 }
 0x13c   : > { %1377 = vmatmul.f32.gmra.mxu3 %v3414_v24  ;;  %4133 = vst [vmem:[#allocation46_spill] sm:$0xff] %v3472_v16  ;;  %v620_v27 = vrot.slane %v3483_v12, 1 }
 0x13d   : > { %4132 = vst [vmem:[#allocation45_spill] sm:$0xff] %v3448_v57  ;;  %1154 = vmatmul.f32.gmra.mxu1 %v3398_v20 }
 0x13e   : > { %v1217_v49 = vpop.f32.mrf.mxu2  ;;  %442 = vst [vmem:[#allocation2 + $0x181] sm:$0xff] %v410_v56  ;;  %v3502_v53 = vsel %vm546_vm0, %v618_v63, %v620_v27  ;;  %v3510_v56 = vld [vmem:[#allocation2 + $0x150] sm:$0xff] }
 0x13f   : > { %v1218_v23 = vadd.f32 %v1217_v49, %v1105_v28  ;;  %v1330_v17 = vpop.f32.mrf.mxu3  ;;  %v1449_v28 = vpop.f32.mrf.mxu0  ;;  %v3478_v49 = vsel %vm546_vm0, %v617_v43, %v618_v63  ;;  %v935_v43 = vld [vmem:[%s4046_s3 + $0x408] sm:$0xff]  ;;  %4136 = vst [vmem:[#allocation49_spill] sm:$0xff] %v3502_v53 }
 0x140   : > { %1868 = vmatpush.msra.mxu0 %v935_v43  ;;  %v886_v43 = vld [vmem:[%s4046_s3 + $0x280] sm:$0xff] }
 0x141   : > { %v1331_v40 = vadd.f32 %v1330_v17, %v1218_v23  ;;  %v725_v23 = vrot.slane %v3414_v24, 2  ;;  %v726_v17 = vrot.slane %v3486_v21, 2  ;;  %1530 = vmatpush.msra.mxu1 %v886_v43 }
 0x142   : > { %v1110_v18 = vpop.f32.mrf.mxu1  ;;  %1496 = vmatmul.f32.gmra.mxu0 %v3478_v49 }
 0x143   : > { %v3480_v57 = vadd.f32 %v1443_v0, %v1331_v40  ;;  %1267 = vmatmul.f32.gmra.mxu2 %v3472_v16  ;;  %v343_v0 = vmul.f32 %v2303_v32, %v307_v60 }
 0x144   : > { %1380 = vmatmul.f32.gmra.mxu3 %v3486_v21  ;;  %v3499_v21 = vsel %vm659_vm1, %v725_v23, %v726_v17 }
 0x145   : > { %4134 = vst [vmem:[#allocation47_spill] sm:$0xff] %v3480_v57  ;;  %1157 = vmatmul.f32.gmra.mxu1 %v3425_v42  ;;  %v379_v57 = vadd.f32 %v2304_v50, %v343_v0  ;;  %v902_v50 = vld [vmem:[%s4046_s3 + $0x300] sm:$0xff] }
 0x146   : > { %v1220_v40 = vpop.f32.mrf.mxu2  ;;  %1643 = vmatpush.msra.mxu2 %v902_v50  ;;  %v3538_v50 = vld [vmem:[#allocation2 + $0x158] sm:$0xff] }
 0x147   : > { %v1221_v24 = vadd.f32 %v1220_v40, %v1108_v7  ;;  %v1333_v20 = vpop.f32.mrf.mxu3  ;;  %v411_v16 = vmax.f32 %v379_v57, 0.0  ;;  %v1452_v60 = vpop.f32.mrf.mxu0  ;;  %v3520_v57 = vld [vmem:[#allocation2 + $0x168] sm:$0xff]  ;;  %4140 = vst [vmem:[#allocation53_spill] sm:$0xff] %v3538_v50 }
 0x148   : > { %4138 = vst [vmem:[#allocation51_spill] sm:$0xff] %v3520_v57  ;;  %v622_v63 = vrot.slane %v3520_v57, 1 }
 0x149   : > { %v1334_v10 = vadd.f32 %v1333_v20, %v1221_v24  ;;  %443 = vst [vmem:[#allocation2 + $0x189] sm:$0xff] %v411_v16  ;;  %v728_v20 = vrot.slane %v3430_v25, 2  ;;  %v918_v24 = vld [vmem:[%s4046_s3 + $0x380] sm:$0xff]  ;;  %v623_v16 = vrot.slane %v2887_v9, 1  ;;  %v3536_v9 = vld [vmem:[#allocation2 + $0x178] sm:$0x3] }
 0x14a   : > { %v1113_v32 = vpop.f32.mrf.mxu1  ;;  %1499 = vmatmul.f32.gmra.mxu0 %v3502_v53  ;;  %1756 = vmatpush.msra.mxu3 %v918_v24  ;;  %v934_v24 = vld [vmem:[%s4046_s3 + $0x400] sm:$0xff] }
 0x14b   : > { %v3504_v15 = vadd.f32 %v1446_v46, %v1334_v10  ;;  %1270 = vmatmul.f32.gmra.mxu2 %v3499_v21  ;;  %v1111_v10 = vadd.f32 %v1110_v18, %v3067_v11  ;;  %v3528_v11 = vsel %vm659_vm1, %v726_v17, %v728_v20  ;;  %v3531_v40 = vsel %vm546_vm0, %v622_v63, %v623_v16 }
 0x14c   : > { %1383 = vmatmul.f32.gmra.mxu3 %v3510_v56  ;;  %v730_v17 = vrot.slane %v3510_v56, 2  ;;  %v731_v20 = vrot.slane %v3538_v50, 2  ;;  %1869 = vmatpush.msra.mxu0 %v934_v24  ;;  %v733_v24 = vrot.slane %v3483_v12, 2 }
 0x14d   : > { %4137 = vst [vmem:[#allocation50_spill] sm:$0xff] %v3504_v15  ;;  %1160 = vmatmul.f32.gmra.mxu1 %v3446_v59 }
 0x14e   : > { %v1223_v46 = vpop.f32.mrf.mxu2 }
 0x14f   : > { %v1224_v25 = vadd.f32 %v1223_v46, %v1111_v10  ;;  %v1336_v23 = vpop.f32.mrf.mxu3  ;;  %v1455_v7 = vpop.f32.mrf.mxu0  ;;  %v1114_v10 = vadd.f32 %v1113_v32, %v3093_v33  ;;  %v625_v46 = vrot.slane %v3536_v9, 1 }
 0x150   : > { %v3559_v32 = vld [vmem:[#allocation2 + $0x188] sm:$0xff] }
 0x151   : > { %v1337_v18 = vadd.f32 %v1336_v23, %v1224_v25  ;;  %v3551_v23 = vsel %vm659_vm1, %v730_v17, %v731_v20  ;;  %v3554_v15 = vsel %vm546_vm0, %v623_v16, %v625_v46  ;;  %v3565_v17 = vld [vmem:[#allocation2 + $0x180] sm:$0xff] }
 0x152   : > { %v1116_v0 = vpop.f32.mrf.mxu1  ;;  %1502 = vmatmul.f32.gmra.mxu0 %v3531_v40 }
 0x153   : > { %v3533_v27 = vadd.f32 %v1449_v28, %v1337_v18  ;;  %1273 = vmatmul.f32.gmra.mxu2 %v3528_v11 }
 0x154   : > { %1386 = vmatmul.f32.gmra.mxu3 %v3538_v50  ;;  %v3581_v50 = vld [vmem:[#allocation2 + $0x170] sm:$0xff] }
 0x155   : > { %4139 = vst [vmem:[#allocation52_spill] sm:$0xff] %v3533_v27  ;;  %1163 = vmatmul.f32.gmra.mxu1 %v3478_v49 }
 0x156   : > { %v1226_v28 = vpop.f32.mrf.mxu2  ;;  %4144 = vst [vmem:[#allocation57_spill] sm:$0xff] %v3581_v50 }
 0x157   : > { %v1227_v63 = vadd.f32 %v1226_v28, %v1114_v10  ;;  %v1339_v25 = vpop.f32.mrf.mxu3  ;;  %v1458_v27 = vpop.f32.mrf.mxu0  ;;  %v1117_v10 = vadd.f32 %v1116_v0, %v3123_v62  ;;  %v776_v28 = vrot.slane %v3559_v32, 1 }
 0x159   : > { %v1340_v43 = vadd.f32 %v1339_v25, %v1227_v63  ;;  %v3571_v25 = vsel %vm659_vm1, %v731_v20, %v733_v24  ;;  %v736_v20 = vrot.slane %v3581_v50, 2 }
 0x15a   : > { %v1119_v18 = vpop.f32.mrf.mxu1  ;;  %1505 = vmatmul.f32.gmra.mxu0 %v3554_v15  ;;  %4142 = vst [vmem:[#allocation55_spill] sm:$0xff] %v3571_v25 }
 0x15b   : > { %v3556_v33 = vadd.f32 %v1452_v60, %v1340_v43  ;;  %1276 = vmatmul.f32.gmra.mxu2 %v3551_v23  ;;  %v775_v60 = vrot.slane %v3565_v17, 1  ;;  %v1120_v24 = vadd.f32 %v1119_v18, %v3149_v26  ;;  %v738_v26 = vrot.slane %v3536_v9, 2 }
 0x15c   : > { %1389 = vmatmul.f32.gmra.mxu3 %v3520_v57 }
 0x15d   : > { %4141 = vst [vmem:[#allocation54_spill] sm:$0xff] %v3556_v33  ;;  %1166 = vmatmul.f32.gmra.mxu1 %v3502_v53  ;;  %v3574_v62 = vsel %vm546_vm0, %v775_v60, %v776_v28  ;;  %v3579_v53 = vld [vmem:[#allocation2 + $0x190] sm:$0x3] }
 0x15e   : > { %v1229_v16 = vpop.f32.mrf.mxu2 }
 0x15f   : > { %v1230_v46 = vadd.f32 %v1229_v16, %v1117_v10  ;;  %v1342_v63 = vpop.f32.mrf.mxu3  ;;  %v1461_v33 = vpop.f32.mrf.mxu0  ;;  %v735_v10 = vrot.slane %v3520_v57, 2  ;;  %v778_v16 = vrot.slane %v3579_v53, 1 }
 0x161   : > { %v1343_v43 = vadd.f32 %v1342_v63, %v1230_v46  ;;  %v3591_v63 = vsel %vm659_vm1, %v735_v10, %v736_v20  ;;  %v3594_v57 = vsel %vm546_vm0, %v776_v28, %v778_v16  ;;  %v3605_v28 = vsel %vm659_vm1, %v736_v20, %v738_v26 }
 0x162   : > { %v1122_v12 = vpop.f32.mrf.mxu1  ;;  %1508 = vmatmul.f32.gmra.mxu0 %v3574_v62 }
 0x163   : > { %v3576_v0 = vadd.f32 %v1455_v7, %v1343_v43  ;;  %1279 = vmatmul.f32.gmra.mxu2 %v3571_v25  ;;  %v1123_v18 = vadd.f32 %v1122_v12, %v3179_v30 }
 0x164   : > { %1392 = vmatmul.f32.gmra.mxu3 %v3581_v50 }
 0x165   : > { %4143 = vst [vmem:[#allocation56_spill] sm:$0xff] %v3576_v0  ;;  %1169 = vmatmul.f32.gmra.mxu1 %v3531_v40 }
 0x166   : > { %v1232_v7 = vpop.f32.mrf.mxu2 }
 0x167   : > { %v1233_v60 = vadd.f32 %v1232_v7, %v1120_v24  ;;  %v1345_v46 = vpop.f32.mrf.mxu3  ;;  %v1464_v25 = vpop.f32.mrf.mxu0 }
 0x169   : > { %v1346_v43 = vadd.f32 %v1345_v46, %v1233_v60 }
 0x16a   : > { %v1125_v0 = vpop.f32.mrf.mxu1  ;;  %1511 = vmatmul.f32.gmra.mxu0 %v3594_v57 }
 0x16b   : > { %v3596_v50 = vadd.f32 %v1458_v27, %v1346_v43  ;;  %1282 = vmatmul.f32.gmra.mxu2 %v3591_v63  ;;  %v1126_v30 = vadd.f32 %v1125_v0, %v3205_v51 }
 0x16c   : > { %1395 = vmatmul.f32.gmra.mxu3 %v3565_v17 }
 0x16d   : > { %1172 = vmatmul.f32.gmra.mxu1 %v3554_v15 }
 0x16e   : > { %v1235_v10 = vpop.f32.mrf.mxu2 }
 0x16f   : > { %v1236_v24 = vadd.f32 %v1235_v10, %v1123_v18  ;;  %v1348_v7 = vpop.f32.mrf.mxu3  ;;  %v1467_v60 = vpop.f32.mrf.mxu0 }
 0x171   : > { %v1349_v27 = vadd.f32 %v1348_v7, %v1236_v24 }
 0x172   : > { %v1128_v16 = vpop.f32.mrf.mxu1  ;;  %1870 = vmatmul.f32.vlgmr.msra.gmra.mxu0 %v2957_v1 }
 0x173   : > { %v3607_v46 = vadd.f32 %v1461_v33, %v1349_v27  ;;  %1285 = vmatmul.f32.gmra.mxu2 %v3605_v28  ;;  %v2310_v33 = vld [vmem:[#allocation2 + $0x30] sm:$0xff]  ;;  %v1129_v24 = vadd.f32 %v1128_v16, %v3055_v61 }
 0x174   : > { %1398 = vmatmul.f32.gmra.mxu3 %v3559_v32 }
 0x175   : > { %1531 = vmatmul.f32.vlgmr.msra.gmra.mxu1 %v2922_v36 }
 0x176   : > { %v1238_v9 = vpop.f32.mrf.mxu2 }
 0x177   : > { %v1239_v12 = vadd.f32 %v1238_v9, %v1126_v30  ;;  %v1351_v43 = vpop.f32.mrf.mxu3  ;;  %v1470_v18 = vpop.f32.mrf.mxu0 }
 0x179   : > { %v1352_v20 = vadd.f32 %v1351_v43, %v1239_v12 }
 0x17a   : > { %v1131_v26 = vpop.f32.mrf.mxu1  ;;  %1873 = vmatmul.f32.gmra.mxu0 %v2978_v13 }
 0x17b   : > { %v3614_v10 = vadd.f32 %v1464_v25, %v1352_v20  ;;  %1644 = vmatmul.f32.vlgmr.msra.gmra.mxu2 %v2310_v33  ;;  %v2311_v25 = vld [vmem:[#allocation2 + $0x38] sm:$0xff] }
 0x17c   : > { %1757 = vmatmul.f32.vlgmr.msra.gmra.mxu3 %v2912_v6  ;;  %v1132_v6 = vadd.f32 %v1131_v26, %v3085_v52 }
 0x17d   : > { %1534 = vmatmul.f32.gmra.mxu1 %v2942_v47 }
 0x17e   : > { %v1241_v36 = vpop.f32.mrf.mxu2 }
 0x17f   : > { %v1242_v51 = vadd.f32 %v1241_v36, %v1129_v24  ;;  %v1354_v0 = vpop.f32.mrf.mxu3  ;;  %v1473_v30 = vpop.f32.mrf.mxu0 }
 0x181   : > { %v1355_v7 = vadd.f32 %v1354_v0, %v1242_v51 }
 0x182   : > { %v1134_v27 = vpop.f32.mrf.mxu1  ;;  %1876 = vmatmul.f32.gmra.mxu0 %v2993_v19 }
 0x183   : > { %v3620_v9 = vadd.f32 %v1467_v60, %v1355_v7  ;;  %1647 = vmatmul.f32.gmra.mxu2 %v2311_v25  ;;  %v2312_v60 = vld [vmem:[#allocation2 + $0x48] sm:$0xff] }
 0x184   : > { %1760 = vmatmul.f32.gmra.mxu3 %v2925_v37  ;;  %v1135_v37 = vadd.f32 %v1134_v27, %v3111_v38 }
 0x185   : > { %1537 = vmatmul.f32.gmra.mxu1 %v2957_v1 }
 0x186   : > { %v1244_v47 = vpop.f32.mrf.mxu2 }
 0x187   : > { %v1245_v61 = vadd.f32 %v1244_v47, %v1132_v6  ;;  %v1357_v16 = vpop.f32.mrf.mxu3  ;;  %v1476_v20 = vpop.f32.mrf.mxu0 }
 0x189   : > { %v1358_v12 = vadd.f32 %v1357_v16, %v1245_v61 }
 0x18a   : > { %v1137_v43 = vpop.f32.mrf.mxu1  ;;  %1879 = vmatmul.f32.gmra.mxu0 %v3016_v8 }
 0x18b   : > { %v3626_v33 = vadd.f32 %v1470_v18, %v1358_v12  ;;  %1650 = vmatmul.f32.gmra.mxu2 %v2312_v60  ;;  %v2313_v18 = vld [vmem:[#allocation2 + $0x50] sm:$0xff] }
 0x18c   : > { %1763 = vmatmul.f32.gmra.mxu3 %v2945_v48  ;;  %v1138_v48 = vadd.f32 %v1137_v43, %v3141_v31  ;;  %v4145_v31 = vld [vmem:[#allocation7_spill] sm:$0xff] }
 0x18d   : > { %1540 = vmatmul.f32.gmra.mxu1 %v2978_v13 }
 0x18e   : > { %v1247_v1 = vpop.f32.mrf.mxu2 }
 0x18f   : > { %v1248_v52 = vadd.f32 %v1247_v1, %v1135_v37  ;;  %v1360_v26 = vpop.f32.mrf.mxu3  ;;  %v1479_v51 = vpop.f32.mrf.mxu0  ;;  %v4146_v1 = vld [vmem:[#allocation3_spill] sm:$0xff] }
 0x191   : > { %v1361_v24 = vadd.f32 %v1360_v26, %v1248_v52  ;;  %v4147_v52 = vld [vmem:[#allocation21_spill] sm:$0xff] }
 0x192   : > { %v1140_v36 = vpop.f32.mrf.mxu1  ;;  %1882 = vmatmul.f32.gmra.mxu0 %v3036_v45 }
 0x193   : > { %v3632_v0 = vadd.f32 %v1473_v30, %v1361_v24  ;;  %1653 = vmatmul.f32.gmra.mxu2 %v2313_v18  ;;  %v2314_v30 = vld [vmem:[#allocation2 + $0x60] sm:$0xff] }
 0x194   : > { %1766 = vmatmul.f32.gmra.mxu3 %v2960_v3  ;;  %v1141_v3 = vadd.f32 %v1140_v36, %v3167_v4  ;;  %v4148_v4 = vld [vmem:[#allocation10_spill] sm:$0xff] }
 0x195   : > { %1543 = vmatmul.f32.gmra.mxu1 %v2993_v19 }
 0x196   : > { %v1250_v13 = vpop.f32.mrf.mxu2 }
 0x197   : > { %v1251_v38 = vadd.f32 %v1250_v13, %v1138_v48  ;;  %v1363_v7 = vpop.f32.mrf.mxu3  ;;  %v1482_v6 = vpop.f32.mrf.mxu0 }
 0x199   : > { %v1364_v27 = vadd.f32 %v1363_v7, %v1251_v38  ;;  %v4149_v38 = vld [vmem:[#allocation4_spill] sm:$0xff]  ;;  %v4150_v7 = vld [vmem:[#allocation25_spill] sm:$0xff] }
 0x19a   : > { %v1143_v25 = vpop.f32.mrf.mxu1  ;;  %1885 = vmatmul.f32.gmra.mxu0 %v4145_v31 }
 0x19b   : > { %v3638_v47 = vadd.f32 %v1476_v20, %v1364_v27  ;;  %1656 = vmatmul.f32.gmra.mxu2 %v2314_v30  ;;  %v2315_v20 = vld [vmem:[#allocation2 + $0x68] sm:$0xff] }
 0x19c   : > { %1769 = vmatmul.f32.gmra.mxu3 %v2981_v14  ;;  %v1144_v14 = vadd.f32 %v1143_v25, %v4147_v52  ;;  %v4151_v25 = vld [vmem:[#allocation13_spill] sm:$0xff] }
 0x19d   : > { %1546 = vmatmul.f32.gmra.mxu1 %v3016_v8 }
 0x19e   : > { %v1253_v19 = vpop.f32.mrf.mxu2 }
 0x19f   : > { %v1254_v61 = vadd.f32 %v1253_v19, %v1141_v3  ;;  %v1366_v16 = vpop.f32.mrf.mxu3  ;;  %v1485_v60 = vpop.f32.mrf.mxu0 }
 0x1a1   : > { %v1367_v12 = vadd.f32 %v1366_v16, %v1254_v61 }
 0x1a2   : > { %v1146_v43 = vpop.f32.mrf.mxu1  ;;  %1888 = vmatmul.f32.gmra.mxu0 %v4148_v4 }
 0x1a3   : > { %v3644_v37 = vadd.f32 %v1479_v51, %v1367_v12  ;;  %1659 = vmatmul.f32.gmra.mxu2 %v2315_v20  ;;  %v2316_v51 = vld [vmem:[#allocation2 + $0x78] sm:$0xff]  ;;  %v1147_v27 = vadd.f32 %v1146_v43, %v4150_v7  ;;  %v4152_v20 = vld [vmem:[#allocation5_spill] sm:$0xff]  ;;  %v4156_v7 = vld [vmem:[#allocation6_spill] sm:$0xff] }
 0x1a4   : > { %1772 = vmatmul.f32.gmra.mxu3 %v4146_v1  ;;  %v4153_v1 = vld [vmem:[#allocation28_spill] sm:$0xff] }
 0x1a5   : > { %1549 = vmatmul.f32.gmra.mxu1 %v3036_v45  ;;  %v4154_v43 = vld [vmem:[#allocation16_spill] sm:$0xff] }
 0x1a6   : > { %v1256_v8 = vpop.f32.mrf.mxu2 }
 0x1a7   : > { %v1257_v26 = vadd.f32 %v1256_v8, %v1144_v14  ;;  %v1369_v24 = vpop.f32.mrf.mxu3  ;;  %v1488_v48 = vpop.f32.mrf.mxu0 }
 0x1a9   : > { %v1370_v36 = vadd.f32 %v1369_v24, %v1257_v26 }
 0x1aa   : > { %v1149_v18 = vpop.f32.mrf.mxu1  ;;  %1891 = vmatmul.f32.gmra.mxu0 %v4151_v25 }
 0x1ab   : > { %v3650_v13 = vadd.f32 %v1482_v6, %v1370_v36  ;;  %1662 = vmatmul.f32.gmra.mxu2 %v2316_v51  ;;  %v2317_v6 = vld [vmem:[#allocation2 + $0x80] sm:$0xff]  ;;  %v1150_v52 = vadd.f32 %v1149_v18, %v4153_v1  ;;  %v4157_v18 = vld [vmem:[#allocation19_spill] sm:$0xff] }
 0x1ac   : > { %1775 = vmatmul.f32.gmra.mxu3 %v4149_v38  ;;  %v4155_v38 = vld [vmem:[#allocation8_spill] sm:$0xff]  ;;  %v4158_v1 = vld [vmem:[#allocation11_spill] sm:$0xff] }
 0x1ad   : > { %1552 = vmatmul.f32.gmra.mxu1 %v4145_v31 }
 0x1ae   : > { %v1259_v45 = vpop.f32.mrf.mxu2 }
 0x1af   : > { %v1260_v30 = vadd.f32 %v1259_v45, %v1147_v27  ;;  %v1372_v3 = vpop.f32.mrf.mxu3  ;;  %v1491_v16 = vpop.f32.mrf.mxu0 }
 0x1b1   : > { %v1373_v19 = vadd.f32 %v1372_v3, %v1260_v30 }
 0x1b2   : > { %v1152_v61 = vpop.f32.mrf.mxu1  ;;  %1894 = vmatmul.f32.gmra.mxu0 %v4154_v43 }
 0x1b3   : > { %v3656_v12 = vadd.f32 %v1485_v60, %v1373_v19  ;;  %1665 = vmatmul.f32.gmra.mxu2 %v2317_v6  ;;  %v2318_v60 = vld [vmem:[#allocation2 + $0x90] sm:$0xff]  ;;  %v1153_v27 = vadd.f32 %v1152_v61, %v4156_v7 }
 0x1b4   : > { %1778 = vmatmul.f32.gmra.mxu3 %v4152_v20  ;;  %v4160_v61 = vld [vmem:[#allocation23_spill] sm:$0xff] }
 0x1b5   : > { %1555 = vmatmul.f32.gmra.mxu1 %v4148_v4 }
 0x1b6   : > { %v1262_v31 = vpop.f32.mrf.mxu2 }
 0x1b7   : > { %v1263_v14 = vadd.f32 %v1262_v31, %v1150_v52  ;;  %v1375_v8 = vpop.f32.mrf.mxu3  ;;  %v1494_v36 = vpop.f32.mrf.mxu0  ;;  %v4159_v52 = vld [vmem:[#allocation9_spill] sm:$0xff] }
 0x1b9   : > { %v1376_v26 = vadd.f32 %v1375_v8, %v1263_v14 }
 0x1ba   : > { %v1155_v24 = vpop.f32.mrf.mxu1  ;;  %1897 = vmatmul.f32.gmra.mxu0 %v4157_v18 }
 0x1bb   : > { %v3662_v51 = vadd.f32 %v1488_v48, %v1376_v26  ;;  %1668 = vmatmul.f32.gmra.mxu2 %v2318_v60  ;;  %v2319_v48 = vld [vmem:[#allocation2 + $0x98] sm:$0xff]  ;;  %v1156_v31 = vadd.f32 %v1155_v24, %v4159_v52  ;;  %v4163_v24 = vld [vmem:[#allocation27_spill] sm:$0xff] }
 0x1bc   : > { %1781 = vmatmul.f32.gmra.mxu3 %v4155_v38 }
 0x1bd   : > { %1558 = vmatmul.f32.gmra.mxu1 %v4151_v25 }
 0x1be   : > { %v1265_v4 = vpop.f32.mrf.mxu2 }
 0x1bf   : > { %v1266_v45 = vadd.f32 %v1265_v4, %v1153_v27  ;;  %v1378_v30 = vpop.f32.mrf.mxu3  ;;  %v1497_v6 = vpop.f32.mrf.mxu0  ;;  %v4161_v27 = vld [vmem:[#allocation14_spill] sm:$0xff]  ;;  %v4162_v4 = vld [vmem:[#allocation12_spill] sm:$0xff] }
 0x1c1   : > { %v1379_v3 = vadd.f32 %v1378_v30, %v1266_v45 }
 0x1c2   : > { %v1158_v19 = vpop.f32.mrf.mxu1  ;;  %1900 = vmatmul.f32.gmra.mxu0 %v4160_v61 }
 0x1c3   : > { %v3668_v20 = vadd.f32 %v1491_v16, %v1379_v3  ;;  %1671 = vmatmul.f32.gmra.mxu2 %v2319_v48  ;;  %v2320_v16 = vld [vmem:[#allocation2 + $0xa8] sm:$0xff]  ;;  %v1159_v45 = vadd.f32 %v1158_v19, %v4162_v4 }
 0x1c4   : > { %1784 = vmatmul.f32.gmra.mxu3 %v4158_v1  ;;  %v4166_v19 = vld [vmem:[#allocation30_spill] sm:$0xff] }
 0x1c5   : > { %1561 = vmatmul.f32.gmra.mxu1 %v4154_v43 }
 0x1c6   : > { %v1268_v25 = vpop.f32.mrf.mxu2 }
 0x1c7   : > { %v1269_v14 = vadd.f32 %v1268_v25, %v1156_v31  ;;  %v1381_v8 = vpop.f32.mrf.mxu3  ;;  %v1500_v38 = vpop.f32.mrf.mxu0  ;;  %v4164_v25 = vld [vmem:[#allocation17_spill] sm:$0xff] }
 0x1c9   : > { %v1382_v26 = vadd.f32 %v1381_v8, %v1269_v14  ;;  %v4165_v14 = vld [vmem:[#allocation15_spill] sm:$0xff] }
 0x1ca   : > { %v1161_v60 = vpop.f32.mrf.mxu1  ;;  %1903 = vmatmul.f32.gmra.mxu0 %v4163_v24 }
 0x1cb   : > { %v3674_v7 = vadd.f32 %v1494_v36, %v1382_v26  ;;  %1674 = vmatmul.f32.gmra.mxu2 %v2320_v16  ;;  %v2321_v36 = vld [vmem:[#allocation2 + $0xb0] sm:$0xff]  ;;  %v1162_v8 = vadd.f32 %v1161_v60, %v4165_v14 }
 0x1cc   : > { %1787 = vmatmul.f32.gmra.mxu3 %v4161_v27 }
 0x1cd   : > { %1564 = vmatmul.f32.gmra.mxu1 %v4157_v18 }
 0x1ce   : > { %v1271_v43 = vpop.f32.mrf.mxu2 }
 0x1cf   : > { %v1272_v30 = vadd.f32 %v1271_v43, %v1159_v45  ;;  %v1384_v3 = vpop.f32.mrf.mxu3  ;;  %v1503_v52 = vpop.f32.mrf.mxu0 }
 0x1d1   : > { %v1385_v48 = vadd.f32 %v1384_v3, %v1272_v30  ;;  %v4167_v30 = vld [vmem:[#allocation20_spill] sm:$0xff]  ;;  %v4168_v3 = vld [vmem:[#allocation18_spill] sm:$0xff] }
 0x1d2   : > { %v1164_v1 = vpop.f32.mrf.mxu1  ;;  %1906 = vmatmul.f32.gmra.mxu0 %v4166_v19 }
 0x1d3   : > { %v3680_v31 = vadd.f32 %v1497_v6, %v1385_v48  ;;  %1677 = vmatmul.f32.gmra.mxu2 %v2321_v36  ;;  %v2322_v6 = vld [vmem:[#allocation2 + $0xc0] sm:$0xff]  ;;  %v1165_v48 = vadd.f32 %v1164_v1, %v4168_v3 }
 0x1d4   : > { %1790 = vmatmul.f32.gmra.mxu3 %v4164_v25 }
 0x1d5   : > { %1567 = vmatmul.f32.gmra.mxu1 %v4160_v61 }
 0x1d6   : > { %v1274_v18 = vpop.f32.mrf.mxu2 }
 0x1d7   : > { %v1275_v26 = vadd.f32 %v1274_v18, %v1162_v8  ;;  %v1387_v16 = vpop.f32.mrf.mxu3  ;;  %v1506_v45 = vpop.f32.mrf.mxu0 }
 0x1d9   : > { %v1388_v27 = vadd.f32 %v1387_v16, %v1275_v26  ;;  %v4169_v26 = vld [vmem:[#allocation24_spill] sm:$0xff]  ;;  %v4170_v16 = vld [vmem:[#allocation22_spill] sm:$0xff] }
 0x1da   : > { %v1167_v4 = vpop.f32.mrf.mxu1  ;;  %1909 = vmatmul.f32.gmra.mxu0 %v3278_v2 }
 0x1db   : > { %v3686_v43 = vadd.f32 %v1500_v38, %v1388_v27  ;;  %1680 = vmatmul.f32.gmra.mxu2 %v2322_v6  ;;  %v2323_v38 = vld [vmem:[#allocation2 + $0xc8] sm:$0xff]  ;;  %v1168_v27 = vadd.f32 %v1167_v4, %v4170_v16 }
 0x1dc   : > { %1793 = vmatmul.f32.gmra.mxu3 %v4167_v30 }
 0x1dd   : > { %1570 = vmatmul.f32.gmra.mxu1 %v4163_v24 }
 0x1de   : > { %v1277_v61 = vpop.f32.mrf.mxu2 }
 0x1df   : > { %v1278_v60 = vadd.f32 %v1277_v61, %v1165_v48  ;;  %v1390_v36 = vpop.f32.mrf.mxu3  ;;  %v1509_v8 = vpop.f32.mrf.mxu0 }
 0x1e1   : > { %v1391_v25 = vadd.f32 %v1390_v36, %v1278_v60  ;;  %v4171_v60 = vld [vmem:[#allocation26_spill] sm:$0xff] }
 0x1e2   : > { %v1170_v14 = vpop.f32.mrf.mxu1  ;;  %1912 = vmatmul.f32.gmra.mxu0 %v3299_v54 }
 0x1e3   : > { %v3692_v18 = vadd.f32 %v1503_v52, %v1391_v25  ;;  %1683 = vmatmul.f32.gmra.mxu2 %v2323_v38  ;;  %v2324_v52 = vld [vmem:[#allocation2 + $0xd8] sm:$0xff]  ;;  %v1171_v36 = vadd.f32 %v1170_v14, %v4171_v60 }
 0x1e4   : > { %1796 = vmatmul.f32.gmra.mxu3 %v4169_v26 }
 0x1e5   : > { %1573 = vmatmul.f32.gmra.mxu1 %v4166_v19 }
 0x1e6   : > { %v1280_v24 = vpop.f32.mrf.mxu2 }
 0x1e7   : > { %v1281_v1 = vadd.f32 %v1280_v24, %v1168_v27  ;;  %v1393_v6 = vpop.f32.mrf.mxu3  ;;  %v1512_v48 = vpop.f32.mrf.mxu0  ;;  %v4172_v24 = vld [vmem:[#allocation29_spill] sm:$0xff] }
 0x1e9   : > { %v1394_v30 = vadd.f32 %v1393_v6, %v1281_v1 }
 0x1ea   : > { %v1173_v3 = vpop.f32.mrf.mxu1  ;;  %1915 = vmatmul.f32.gmra.mxu0 %v3324_v41 }
 0x1eb   : > { %v3698_v61 = vadd.f32 %v1506_v45, %v1394_v30  ;;  %1686 = vmatmul.f32.gmra.mxu2 %v2324_v52  ;;  %v2325_v45 = vld [vmem:[#allocation2 + $0xe0] sm:$0xff] }
 0x1ec   : > { %1799 = vmatmul.f32.gmra.mxu3 %v3236_v34  ;;  %v1174_v34 = vadd.f32 %v1173_v3, %v4172_v24  ;;  %v4176_v24 = vld [vmem:[#allocation34_spill] sm:$0xff] }
 0x1ed   : > { %1576 = vmatmul.f32.gmra.mxu1 %v3278_v2 }
 0x1ee   : > { %v1283_v19 = vpop.f32.mrf.mxu2 }
 0x1ef   : > { %v1284_v4 = vadd.f32 %v1283_v19, %v1171_v36  ;;  %v1396_v25 = vpop.f32.mrf.mxu3  ;;  %v1871_v16 = vpop.f32.mrf.mxu0  ;;  %v4173_v36 = vld [vmem:[#allocation31_spill] sm:$0xff] }
 0x1f1   : > { %v1397_v38 = vadd.f32 %v1396_v25, %v1284_v4 }
 0x1f2   : > { %v1532_v26 = vpop.f32.mrf.mxu1  ;;  %1918 = vmatmul.f32.gmra.mxu0 %v3345_v39 }
 0x1f3   : > { %v3704_v27 = vadd.f32 %v1509_v8, %v1397_v38  ;;  %1689 = vmatmul.f32.gmra.mxu2 %v2325_v45  ;;  %v2326_v8 = vld [vmem:[#allocation2 + $0xf0] sm:$0xff] }
 0x1f4   : > { %1802 = vmatmul.f32.gmra.mxu3 %v3258_v29  ;;  %v4174_v29 = vld [vmem:[#allocation32_spill] sm:$0xff] }
 0x1f5   : > { %1579 = vmatmul.f32.gmra.mxu1 %v3299_v54  ;;  %v1533_v19 = vadd.f32 %v1532_v26, %v4174_v29  ;;  %v2327_v26 = vld [vmem:[#allocation2 + $0xf8] sm:$0xff]  ;;  %v2328_v29 = vld [vmem:[#allocation2 + $0x108] sm:$0xff] }
 0x1f6   : > { %v1286_v2 = vpop.f32.mrf.mxu2 }
 0x1f7   : > { %v1287_v14 = vadd.f32 %v1286_v2, %v1174_v34  ;;  %v1399_v1 = vpop.f32.mrf.mxu3  ;;  %v1874_v52 = vpop.f32.mrf.mxu0 }
 0x1f9   : > { %v1400_v6 = vadd.f32 %v1399_v1, %v1287_v14 }
 0x1fa   : > { %v1535_v30 = vpop.f32.mrf.mxu1  ;;  %1921 = vmatmul.f32.gmra.mxu0 %v3374_v35 }
 0x1fb   : > { %v3710_v60 = vadd.f32 %v1512_v48, %v1400_v6  ;;  %1692 = vmatmul.f32.gmra.mxu2 %v2326_v8  ;;  %v1536_v34 = vadd.f32 %v1535_v30, %v4176_v24 }
 0x1fc   : > { %1805 = vmatmul.f32.gmra.mxu3 %v4173_v36 }
 0x1fd   : > { %1582 = vmatmul.f32.gmra.mxu1 %v3324_v41  ;;  %v4175_v41 = vld [vmem:[#allocation33_spill] sm:$0xff] }
 0x1fe   : > { %v1645_v54 = vpop.f32.mrf.mxu2 }
 0x1ff   : > { %v1646_v3 = vadd.f32 %v1645_v54, %v1533_v19  ;;  %v1758_v4 = vpop.f32.mrf.mxu3  ;;  %v1877_v38 = vpop.f32.mrf.mxu0  ;;  %v4177_v19 = vld [vmem:[#allocation35_spill] sm:$0xff] }
 0x201   : > { %v1759_v25 = vadd.f32 %v1758_v4, %v1646_v3 }
 0x202   : > { %v1538_v48 = vpop.f32.mrf.mxu1  ;;  %1924 = vmatmul.f32.gmra.mxu0 %v3395_v55 }
 0x203   : > { %v3723_v45 = vadd.f32 %v1871_v16, %v1759_v25  ;;  %1695 = vmatmul.f32.gmra.mxu2 %v2327_v26  ;;  %v1539_v30 = vadd.f32 %v1538_v48, %v4177_v19  ;;  %v4179_v48 = vld [vmem:[#allocation37_spill] sm:$0xff] }
 0x204   : > { %1808 = vmatmul.f32.gmra.mxu3 %v4175_v41  ;;  %v2329_v41 = vld [vmem:[#allocation2 + $0x110] sm:$0xff] }
 0x205   : > { %2106 = vst [vmem:[%s3721_s25] sm:$0xff] %v3723_v45  ;;  %1585 = vmatmul.f32.gmra.mxu1 %v3345_v39 }
 0x206   : > { %v1648_v2 = vpop.f32.mrf.mxu2 }
 0x207   : > { %v1649_v14 = vadd.f32 %v1648_v2, %v1536_v34  ;;  %v1761_v1 = vpop.f32.mrf.mxu3  ;;  %v1880_v16 = vpop.f32.mrf.mxu0 }
 0x209   : > { %v1762_v6 = vadd.f32 %v1761_v1, %v1649_v14 }
 0x20a   : > { %v1541_v8 = vpop.f32.mrf.mxu1  ;;  %1927 = vmatmul.f32.gmra.mxu0 %v3422_v5 }
 0x20b   : > { %v3731_v36 = vadd.f32 %v1874_v52, %v1762_v6  ;;  %1698 = vmatmul.f32.gmra.mxu2 %v2328_v29  ;;  %v1542_v24 = vadd.f32 %v1541_v8, %v4179_v48  ;;  %v4180_v29 = vld [vmem:[#allocation39_spill] sm:$0xff]  ;;  %v4181_v8 = vld [vmem:[#allocation40_spill] sm:$0xff] }
 0x20c   : > { %1811 = vmatmul.f32.gmra.mxu3 %v3327_v58  ;;  %v4178_v58 = vld [vmem:[#allocation36_spill] sm:$0xff] }
 0x20d   : > { %2107 = vst [vmem:[%s3721_s25 + $0x8] sm:$0xff] %v3731_v36  ;;  %1588 = vmatmul.f32.gmra.mxu1 %v3374_v35 }
 0x20e   : > { %v1651_v39 = vpop.f32.mrf.mxu2 }
 0x20f   : > { %v1652_v54 = vadd.f32 %v1651_v39, %v1539_v30  ;;  %v1764_v3 = vpop.f32.mrf.mxu3  ;;  %v1883_v52 = vpop.f32.mrf.mxu0 }
 0x211   : > { %v1765_v4 = vadd.f32 %v1764_v3, %v1652_v54 }
 0x212   : > { %v1544_v25 = vpop.f32.mrf.mxu1  ;;  %1930 = vmatmul.f32.gmra.mxu0 %v3443_v44 }
 0x213   : > { %v3739_v26 = vadd.f32 %v1877_v38, %v1765_v4  ;;  %1701 = vmatmul.f32.gmra.mxu2 %v2329_v41  ;;  %v1545_v19 = vadd.f32 %v1544_v25, %v4181_v8  ;;  %v4185_v25 = vld [vmem:[#allocation42_spill] sm:$0xff] }
 0x214   : > { %1814 = vmatmul.f32.gmra.mxu3 %v4178_v58  ;;  %v4184_v58 = vld [vmem:[#allocation41_spill] sm:$0xff] }
 0x215   : > { %2108 = vst [vmem:[%s3721_s25 + $0x10] sm:$0xff] %v3739_v26  ;;  %1591 = vmatmul.f32.gmra.mxu1 %v3395_v55  ;;  %v4182_v55 = vld [vmem:[#allocation46_spill] sm:$0xff] }
 0x216   : > { %v1654_v35 = vpop.f32.mrf.mxu2 }
 0x217   : > { %v1655_v34 = vadd.f32 %v1654_v35, %v1542_v24  ;;  %v1767_v2 = vpop.f32.mrf.mxu3  ;;  %v1886_v38 = vpop.f32.mrf.mxu0 }
 0x219   : > { %v1768_v14 = vadd.f32 %v1767_v2, %v1655_v34 }
 0x21a   : > { %v1547_v1 = vpop.f32.mrf.mxu1  ;;  %1933 = vmatmul.f32.gmra.mxu0 %v4182_v55 }
 0x21b   : > { %v3747_v6 = vadd.f32 %v1880_v16, %v1768_v14  ;;  %1704 = vmatmul.f32.gmra.mxu2 %v3364_v22  ;;  %v4183_v22 = vld [vmem:[#allocation38_spill] sm:$0xff]  ;;  %v1548_v48 = vadd.f32 %v1547_v1, %v4185_v25  ;;  %v4187_v1 = vld [vmem:[#allocation44_spill] sm:$0xff] }
 0x21c   : > { %1817 = vmatmul.f32.gmra.mxu3 %v4180_v29  ;;  %v4186_v29 = vld [vmem:[#allocation43_spill] sm:$0xff] }
 0x21d   : > { %2109 = vst [vmem:[%s3721_s25 + $0x18] sm:$0xff] %v3747_v6  ;;  %1594 = vmatmul.f32.gmra.mxu1 %v3422_v5 }
 0x21e   : > { %v1657_v30 = vpop.f32.mrf.mxu2 }
 0x21f   : > { %v1658_v39 = vadd.f32 %v1657_v30, %v1545_v19  ;;  %v1770_v54 = vpop.f32.mrf.mxu3  ;;  %v1889_v16 = vpop.f32.mrf.mxu0 }
 0x221   : > { %v1771_v3 = vadd.f32 %v1770_v54, %v1658_v39 }
 0x222   : > { %v1550_v4 = vpop.f32.mrf.mxu1  ;;  %1936 = vmatmul.f32.gmra.mxu0 %v3499_v21 }
 0x223   : > { %v3756_v41 = vadd.f32 %v1883_v52, %v1771_v3  ;;  %1707 = vmatmul.f32.gmra.mxu2 %v4183_v22  ;;  %v1551_v8 = vadd.f32 %v1550_v4, %v4187_v1  ;;  %v4188_v22 = vld [vmem:[#allocation48_spill] sm:$0xff] }
 0x224   : > { %1820 = vmatmul.f32.gmra.mxu3 %v4184_v58 }
 0x225   : > { %2110 = vst [vmem:[%s3721_s25 + $0x20] sm:$0xff] %v3756_v41  ;;  %1597 = vmatmul.f32.gmra.mxu1 %v3443_v44 }
 0x226   : > { %v1660_v5 = vpop.f32.mrf.mxu2 }
 0x227   : > { %v1661_v24 = vadd.f32 %v1660_v5, %v1548_v48  ;;  %v1773_v35 = vpop.f32.mrf.mxu3  ;;  %v1892_v52 = vpop.f32.mrf.mxu0 }
 0x229   : > { %v1774_v34 = vadd.f32 %v1773_v35, %v1661_v24 }
 0x22a   : > { %v1553_v2 = vpop.f32.mrf.mxu1  ;;  %1939 = vmatmul.f32.gmra.mxu0 %v3528_v11 }
 0x22b   : > { %v3765_v14 = vadd.f32 %v1886_v38, %v1774_v34  ;;  %1710 = vmatmul.f32.gmra.mxu2 %v4186_v29 }
 0x22c   : > { %1823 = vmatmul.f32.gmra.mxu3 %v3425_v42  ;;  %v4189_v42 = vld [vmem:[#allocation45_spill] sm:$0xff] }
 0x22d   : > { %2111 = vst [vmem:[%s3721_s25 + $0x28] sm:$0xff] %v3765_v14  ;;  %1600 = vmatmul.f32.gmra.mxu1 %v4182_v55  ;;  %v1554_v4 = vadd.f32 %v1553_v2, %v4189_v42 }
 0x22e   : > { %v1663_v44 = vpop.f32.mrf.mxu2 }
 0x22f   : > { %v1664_v19 = vadd.f32 %v1663_v44, %v1551_v8  ;;  %v1776_v30 = vpop.f32.mrf.mxu3  ;;  %v1895_v38 = vpop.f32.mrf.mxu0 }
 0x231   : > { %v1777_v39 = vadd.f32 %v1776_v30, %v1664_v19  ;;  %v4193_v19 = vld [vmem:[#allocation49_spill] sm:$0xff] }
 0x232   : > { %v1556_v54 = vpop.f32.mrf.mxu1  ;;  %1942 = vmatmul.f32.gmra.mxu0 %v3551_v23 }
 0x233   : > { %v3774_v3 = vadd.f32 %v1889_v16, %v1777_v39  ;;  %1713 = vmatmul.f32.gmra.mxu2 %v4188_v22 }
 0x234   : > { %1826 = vmatmul.f32.gmra.mxu3 %v3446_v59  ;;  %v4190_v59 = vld [vmem:[#allocation47_spill] sm:$0xff] }
 0x235   : > { %2112 = vst [vmem:[%s3721_s25 + $0x30] sm:$0xff] %v3774_v3  ;;  %1603 = vmatmul.f32.gmra.mxu1 %v3499_v21  ;;  %v1557_v35 = vadd.f32 %v1556_v54, %v4190_v59  ;;  %v4191_v21 = vld [vmem:[#allocation55_spill] sm:$0xff] }
 0x236   : > { %v1666_v55 = vpop.f32.mrf.mxu2 }
 0x237   : > { %v1667_v58 = vadd.f32 %v1666_v55, %v1554_v4  ;;  %v1779_v25 = vpop.f32.mrf.mxu3  ;;  %v1898_v16 = vpop.f32.mrf.mxu0  ;;  %v4195_v55 = vld [vmem:[#allocation51_spill] sm:$0xff] }
 0x239   : > { %v1780_v48 = vadd.f32 %v1779_v25, %v1667_v58  ;;  %v4196_v58 = vld [vmem:[#allocation52_spill] sm:$0xff] }
 0x23a   : > { %v1559_v5 = vpop.f32.mrf.mxu1  ;;  %1945 = vmatmul.f32.gmra.mxu0 %v4191_v21 }
 0x23b   : > { %v3783_v24 = vadd.f32 %v1892_v52, %v1780_v48  ;;  %1716 = vmatmul.f32.gmra.mxu2 %v3510_v56  ;;  %v4192_v56 = vld [vmem:[#allocation53_spill] sm:$0xff]  ;;  %v782_v48 = vrot.slane %v3565_v17, 2 }
 0x23c   : > { %1829 = vmatmul.f32.gmra.mxu3 %v3478_v49  ;;  %v4194_v49 = vld [vmem:[#allocation50_spill] sm:$0xff] }
 0x23d   : > { %2113 = vst [vmem:[%s3721_s25 + $0x38] sm:$0xff] %v3783_v24  ;;  %1606 = vmatmul.f32.gmra.mxu1 %v3528_v11  ;;  %v1560_v30 = vadd.f32 %v1559_v5, %v4194_v49  ;;  %v783_v5 = vrot.slane %v3559_v32, 2 }
 0x23e   : > { %v1669_v34 = vpop.f32.mrf.mxu2 }
 0x23f   : > { %v1670_v2 = vadd.f32 %v1669_v34, %v1557_v35  ;;  %v1782_v29 = vpop.f32.mrf.mxu3  ;;  %v1901_v52 = vpop.f32.mrf.mxu0 }
 0x241   : > { %v1783_v1 = vadd.f32 %v1782_v29, %v1670_v2 }
 0x242   : > { %v1562_v8 = vpop.f32.mrf.mxu1  ;;  %1948 = vmatmul.f32.gmra.mxu0 %v3591_v63 }
 0x243   : > { %v3792_v44 = vadd.f32 %v1895_v38, %v1783_v1  ;;  %1719 = vmatmul.f32.gmra.mxu2 %v4192_v56  ;;  %v1563_v25 = vadd.f32 %v1562_v8, %v4196_v58  ;;  %v4197_v1 = vld [vmem:[#allocation57_spill] sm:$0xff] }
 0x244   : > { %1832 = vmatmul.f32.gmra.mxu3 %v4193_v19  ;;  %v785_v19 = vrot.slane %v3579_v53, 2 }
 0x245   : > { %2114 = vst [vmem:[%s3721_s25 + $0x40] sm:$0xff] %v3792_v44  ;;  %1609 = vmatmul.f32.gmra.mxu1 %v3551_v23 }
 0x246   : > { %v1672_v11 = vpop.f32.mrf.mxu2 }
 0x247   : > { %v1673_v39 = vadd.f32 %v1672_v11, %v1560_v30  ;;  %v1785_v54 = vpop.f32.mrf.mxu3  ;;  %v1904_v38 = vpop.f32.mrf.mxu0 }
 0x249   : > { %v1786_v22 = vadd.f32 %v1785_v54, %v1673_v39  ;;  %v786_v54 = vsel %vm659_vm1, %v783_v5, %v785_v19 }
 0x24a   : > { %v1565_v42 = vpop.f32.mrf.mxu1  ;;  %1951 = vmatmul.f32.gmra.mxu0 %v3605_v28 }
 0x24b   : > { %v3801_v4 = vadd.f32 %v1898_v16, %v1786_v22  ;;  %1722 = vmatmul.f32.gmra.mxu2 %v4195_v55 }
 0x24c   : > { %1835 = vmatmul.f32.gmra.mxu3 %v3531_v40  ;;  %v784_v40 = vsel %vm659_vm1, %v782_v48, %v783_v5 }
 0x24d   : > { %2115 = vst [vmem:[%s3721_s25 + $0x48] sm:$0xff] %v3801_v4  ;;  %1612 = vmatmul.f32.gmra.mxu1 %v4191_v21  ;;  %v4198_v21 = vld [vmem:[#allocation54_spill] sm:$0xff] }
 0x24e   : > { %v1675_v23 = vpop.f32.mrf.mxu2  ;;  %v1566_v8 = vadd.f32 %v1565_v42, %v4198_v21 }
 0x24f   : > { %v1676_v16 = vadd.f32 %v1675_v23, %v1563_v25  ;;  %v1788_v59 = vpop.f32.mrf.mxu3  ;;  %v1907_v2 = vpop.f32.mrf.mxu0 }
 0x251   : > { %v1789_v35 = vadd.f32 %v1788_v59, %v1676_v16 }
 0x252   : > { %v1568_v34 = vpop.f32.mrf.mxu1  ;;  %1954 = vmatmul.f32.gmra.mxu0 %v784_v40 }
 0x253   : > { %v3813_v29 = vadd.f32 %v1901_v52, %v1789_v35  ;;  %1725 = vmatmul.f32.gmra.mxu2 %v4197_v1 }
 0x254   : > { %1838 = vmatmul.f32.gmra.mxu3 %v3554_v15  ;;  %v4199_v15 = vld [vmem:[#allocation56_spill] sm:$0xff] }
 0x255   : > { %2116 = vst [vmem:[%s3721_s25 + $0x50] sm:$0xff] %v3813_v29  ;;  %1615 = vmatmul.f32.gmra.mxu1 %v3591_v63  ;;  %v1569_v42 = vadd.f32 %v1568_v34, %v4199_v15  ;;  %v2330_v63 = vld [vmem:[#allocation2] sm:$0xff] }
 0x256   : > { %v1678_v56 = vpop.f32.mrf.mxu2  ;;  %v799_v55 = vrot.slane %v2330_v63, 2 }
 0x257   : > { %v1679_v49 = vadd.f32 %v1678_v56, %v1566_v8  ;;  %v1791_v30 = vpop.f32.mrf.mxu3  ;;  %v1910_v39 = vpop.f32.mrf.mxu0 }
 0x259   : > { %v1792_v11 = vadd.f32 %v1791_v30, %v1679_v49 }
 0x25a   : > { %v1571_v52 = vpop.f32.mrf.mxu1  ;;  %1957 = vmatmul.f32.gmra.mxu0 %v786_v54 }
 0x25b   : > { %v3823_v22 = vadd.f32 %v1904_v38, %v1792_v11  ;;  %1728 = vmatmul.f32.gmra.mxu2 %v3565_v17  ;;  %v1572_v17 = vadd.f32 %v1571_v52, %v3596_v50 }
 0x25c   : > { %1841 = vmatmul.f32.gmra.mxu3 %v3574_v62  ;;  %v792_v62 = vrot.slane %v2330_v63, 1 }
 0x25d   : > { %2117 = vst [vmem:[%s3721_s25 + $0x58] sm:$0xff] %v3823_v22  ;;  %1618 = vmatmul.f32.gmra.mxu1 %v3605_v28  ;;  %v497_v28 = vld [vmem:[#allocation2 + $0x1a8] sm:$0x3] }
 0x25e   : > { %v1681_v53 = vpop.f32.mrf.mxu2  ;;  %v802_v59 = vrot.slane %v497_v28, 2  ;;  %v795_v50 = vrot.slane %v497_v28, 1 }
 0x25f   : > { %v1682_v58 = vadd.f32 %v1681_v53, %v1569_v42  ;;  %v1794_v25 = vpop.f32.mrf.mxu3  ;;  %v1913_v48 = vpop.f32.mrf.mxu0 }
 0x260   : > { %v796_v30 = vsel %vm546_vm0, %v792_v62, %v795_v50 }
 0x261   : > { %v1795_v23 = vadd.f32 %v1794_v25, %v1682_v58 }
 0x262   : > { %v1574_v38 = vpop.f32.mrf.mxu1  ;;  %1960 = vmatmul.f32.gmra.mxu0 %v799_v55 }
 0x263   : > { %v3831_v5 = vadd.f32 %v1907_v2, %v1795_v23  ;;  %1731 = vmatmul.f32.gmra.mxu2 %v3559_v32  ;;  %v803_v32 = vsel %vm659_vm1, %v799_v55, %v802_v59 }
 0x264   : > { %1844 = vmatmul.f32.gmra.mxu3 %v3594_v57  ;;  %v1575_v57 = vadd.f32 %v1574_v38, %v3607_v46 }
 0x265   : > { %2118 = vst [vmem:[%s3721_s25 + $0x60] sm:$0xff] %v3831_v5  ;;  %1621 = vmatmul.f32.gmra.mxu1 %v784_v40 }
 0x266   : > { %v1684_v16 = vpop.f32.mrf.mxu2 }
 0x267   : > { %v1685_v35 = vadd.f32 %v1684_v16, %v1572_v17  ;;  %v1797_v34 = vpop.f32.mrf.mxu3  ;;  %v1916_v21 = vpop.f32.mrf.mxu0 }
 0x269   : > { %v1798_v1 = vadd.f32 %v1797_v34, %v1685_v35 }
 0x26a   : > { %v1577_v2 = vpop.f32.mrf.mxu1  ;;  %1963 = vmatmul.f32.gmra.mxu0 %v803_v32 }
 0x26b   : > { %v3839_v8 = vadd.f32 %v1910_v39, %v1798_v1  ;;  %1734 = vmatmul.f32.gmra.mxu2 %v2330_v63  ;;  %v1578_v46 = vadd.f32 %v1577_v2, %v3614_v10 }
 0x26c   : > { %1847 = vmatmul.f32.gmra.mxu3 %v792_v62 }
 0x26d   : > { %2119 = vst [vmem:[%s3721_s25 + $0x68] sm:$0xff] %v3839_v8  ;;  %1624 = vmatmul.f32.gmra.mxu1 %v786_v54 }
 0x26e   : > { %v1687_v40 = vpop.f32.mrf.mxu2 }
 0x26f   : > { %v1688_v56 = vadd.f32 %v1687_v40, %v1575_v57  ;;  %v1800_v19 = vpop.f32.mrf.mxu3  ;;  %v1919_v52 = vpop.f32.mrf.mxu0 }
 0x271   : > { %v1801_v49 = vadd.f32 %v1800_v19, %v1688_v56 }
 0x272   : > { %v1580_v11 = vpop.f32.mrf.mxu1 }
 0x273   : > { %v3845_v39 = vadd.f32 %v1913_v48, %v1801_v49  ;;  %1737 = vmatmul.f32.gmra.mxu2 %v2330_v63  ;;  %v1581_v23 = vadd.f32 %v1580_v11, %v3620_v9 }
 0x274   : > { %1850 = vmatmul.f32.gmra.mxu3 %v796_v30 }
 0x275   : > { %2120 = vst [vmem:[%s3721_s25 + $0x70] sm:$0xff] %v3845_v39 }
 0x276   : > { %v1690_v54 = vpop.f32.mrf.mxu2 }
 0x277   : > { %v1691_v15 = vadd.f32 %v1690_v54, %v1578_v46  ;;  %v1803_v42 = vpop.f32.mrf.mxu3  ;;  %v1922_v58 = vpop.f32.mrf.mxu0 }
 0x279   : > { %v1804_v53 = vadd.f32 %v1803_v42, %v1691_v15 }
 0x27a   : > { %v1583_v55 = vpop.f32.mrf.mxu1 }
 0x27b   : > { %v3850_v25 = vadd.f32 %v1916_v21, %v1804_v53  ;;  %v1584_v16 = vadd.f32 %v1583_v55, %v3626_v33 }
 0x27d   : > { %2121 = vst [vmem:[%s3721_s25 + $0x78] sm:$0xff] %v3850_v25 }
 0x27e   : > { %v1693_v38 = vpop.f32.mrf.mxu2 }
 0x27f   : > { %v1694_v63 = vadd.f32 %v1693_v38, %v1581_v23  ;;  %v1806_v48 = vpop.f32.mrf.mxu3  ;;  %v1925_v62 = vpop.f32.mrf.mxu0 }
 0x281   : > { %v1807_v10 = vadd.f32 %v1806_v48, %v1694_v63 }
 0x282   : > { %v1586_v17 = vpop.f32.mrf.mxu1 }
 0x283   : > { %v3855_v28 = vadd.f32 %v1919_v52, %v1807_v10  ;;  %v1587_v32 = vadd.f32 %v1586_v17, %v3632_v0 }
 0x285   : > { %2122 = vst [vmem:[%s3721_s25 + $0x80] sm:$0xff] %v3855_v28 }
 0x286   : > { %v1696_v59 = vpop.f32.mrf.mxu2 }
 0x287   : > { %v1697_v35 = vadd.f32 %v1696_v59, %v1584_v16  ;;  %v1809_v34 = vpop.f32.mrf.mxu3  ;;  %v1928_v2 = vpop.f32.mrf.mxu0 }
 0x289   : > { %v1810_v9 = vadd.f32 %v1809_v34, %v1697_v35 }
 0x28a   : > { %v1589_v1 = vpop.f32.mrf.mxu1 }
 0x28b   : > { %v3860_v21 = vadd.f32 %v1922_v58, %v1810_v9  ;;  %v1590_v30 = vadd.f32 %v1589_v1, %v3638_v47 }
 0x28d   : > { %2123 = vst [vmem:[%s3721_s25 + $0x88] sm:$0xff] %v3860_v21 }
 0x28e   : > { %v1699_v57 = vpop.f32.mrf.mxu2 }
 0x28f   : > { %v1700_v50 = vadd.f32 %v1699_v57, %v1587_v32  ;;  %v1812_v40 = vpop.f32.mrf.mxu3  ;;  %v1931_v19 = vpop.f32.mrf.mxu0 }
 0x291   : > { %v1813_v33 = vadd.f32 %v1812_v40, %v1700_v50 }
 0x292   : > { %v1592_v56 = vpop.f32.mrf.mxu1 }
 0x293   : > { %v3865_v49 = vadd.f32 %v1925_v62, %v1813_v33  ;;  %v1593_v53 = vadd.f32 %v1592_v56, %v3644_v37  ;;  %v1967_v37 = vadd.f32 %v3731_v36, %v3723_v45 }
 0x295   : > { %2124 = vst [vmem:[%s3721_s25 + $0x90] sm:$0xff] %v3865_v49  ;;  %v1968_v9 = vadd.f32 %v1967_v37, %v3739_v26 }
 0x296   : > { %v1702_v11 = vpop.f32.mrf.mxu2 }
 0x297   : > { %v1703_v52 = vadd.f32 %v1702_v11, %v1590_v30  ;;  %v1815_v46 = vpop.f32.mrf.mxu3  ;;  %v1934_v15 = vpop.f32.mrf.mxu0 }
 0x299   : > { %v1816_v0 = vadd.f32 %v1815_v46, %v1703_v52 }
 0x29a   : > { %v1595_v54 = vpop.f32.mrf.mxu1 }
 0x29b   : > { %v3870_v42 = vadd.f32 %v1928_v2, %v1816_v0  ;;  %v1596_v10 = vadd.f32 %v1595_v54, %v3650_v13  ;;  %v1969_v2 = vadd.f32 %v1968_v9, %v3747_v6 }
 0x29d   : > { %2125 = vst [vmem:[%s3721_s25 + $0x98] sm:$0xff] %v3870_v42  ;;  %v1970_v57 = vadd.f32 %v1969_v2, %v3756_v41 }
 0x29e   : > { %v1705_v55 = vpop.f32.mrf.mxu2 }
 0x29f   : > { %v1706_v58 = vadd.f32 %v1705_v55, %v1593_v53  ;;  %v1818_v23 = vpop.f32.mrf.mxu3  ;;  %v1937_v63 = vpop.f32.mrf.mxu0  ;;  %v1971_v33 = vadd.f32 %v1970_v57, %v3765_v14 }
 0x2a1   : > { %v1819_v38 = vadd.f32 %v1818_v23, %v1706_v58  ;;  %v1972_v11 = vadd.f32 %v1971_v33, %v3774_v3 }
 0x2a2   : > { %v1598_v47 = vpop.f32.mrf.mxu1 }
 0x2a3   : > { %v3875_v48 = vadd.f32 %v1931_v19, %v1819_v38  ;;  %v1599_v13 = vadd.f32 %v1598_v47, %v3656_v12  ;;  %v1973_v46 = vadd.f32 %v1972_v11, %v3783_v24 }
 0x2a5   : > { %2126 = vst [vmem:[%s3721_s25 + $0xa0] sm:$0xff] %v3875_v48  ;;  %v1974_v54 = vadd.f32 %v1973_v46, %v3792_v44 }
 0x2a6   : > { %v1708_v17 = vpop.f32.mrf.mxu2 }
 0x2a7   : > { %v1709_v62 = vadd.f32 %v1708_v17, %v1596_v10  ;;  %v1821_v16 = vpop.f32.mrf.mxu3  ;;  %v1940_v34 = vpop.f32.mrf.mxu0  ;;  %v1975_v55 = vadd.f32 %v1974_v54, %v3801_v4 }
 0x2a9   : > { %v1822_v59 = vadd.f32 %v1821_v16, %v1709_v62  ;;  %v1976_v38 = vadd.f32 %v1975_v55, %v3813_v29 }
 0x2aa   : > { %v1601_v35 = vpop.f32.mrf.mxu1 }
 0x2ab   : > { %v3883_v1 = vadd.f32 %v1934_v15, %v1822_v59  ;;  %v1602_v12 = vadd.f32 %v1601_v35, %v3662_v51  ;;  %v1977_v10 = vadd.f32 %v1976_v38, %v3823_v22 }
 0x2ad   : > { %2127 = vst [vmem:[%s3721_s25 + $0xa8] sm:$0xff] %v3883_v1  ;;  %v1978_v62 = vadd.f32 %v1977_v10, %v3831_v5 }
 0x2ae   : > { %v1711_v32 = vpop.f32.mrf.mxu2 }
 0x2af   : > { %v1712_v50 = vadd.f32 %v1711_v32, %v1599_v13  ;;  %v1824_v40 = vpop.f32.mrf.mxu3  ;;  %v1943_v30 = vpop.f32.mrf.mxu0  ;;  %v1979_v59 = vadd.f32 %v1978_v62, %v3839_v8 }
 0x2b1   : > { %v1825_v56 = vadd.f32 %v1824_v40, %v1712_v50 }
 0x2b2   : > { %v1604_v19 = vpop.f32.mrf.mxu1 }
 0x2b3   : > { %v3892_v52 = vadd.f32 %v1937_v63, %v1825_v56  ;;  %v1605_v51 = vadd.f32 %v1604_v19, %v3668_v20 }
 0x2b5   : > { %2128 = vst [vmem:[%s3721_s25 + $0xb0] sm:$0xff] %v3892_v52 }
 0x2b6   : > { %v1714_v0 = vpop.f32.mrf.mxu2 }
 0x2b7   : > { %v1715_v15 = vadd.f32 %v1714_v0, %v1602_v12  ;;  %v1827_v53 = vpop.f32.mrf.mxu3  ;;  %v1946_v63 = vpop.f32.mrf.mxu0 }
 0x2b9   : > { %v1828_v58 = vadd.f32 %v1827_v53, %v1715_v15 }
 0x2ba   : > { %v1607_v23 = vpop.f32.mrf.mxu1 }
 0x2bb   : > { %v3901_v47 = vadd.f32 %v1940_v34, %v1828_v58  ;;  %v1980_v34 = vadd.f32 %v1979_v59, %v3845_v39  ;;  %v1608_v20 = vadd.f32 %v1607_v23, %v3674_v7 }
 0x2bd   : > { %2129 = vst [vmem:[%s3721_s25 + $0xb8] sm:$0xff] %v3901_v47  ;;  %v1981_v13 = vadd.f32 %v1980_v34, %v3850_v25 }
 0x2be   : > { %v1717_v17 = vpop.f32.mrf.mxu2 }
 0x2bf   : > { %v1718_v16 = vadd.f32 %v1717_v17, %v1605_v51  ;;  %v1830_v37 = vpop.f32.mrf.mxu3  ;;  %v1949_v57 = vpop.f32.mrf.mxu0  ;;  %v1982_v50 = vadd.f32 %v1981_v13, %v3855_v28 }
 0x2c1   : > { %v1831_v35 = vadd.f32 %v1830_v37, %v1718_v16  ;;  %v1983_v56 = vadd.f32 %v1982_v50, %v3860_v21 }
 0x2c2   : > { %v1610_v9 = vpop.f32.mrf.mxu1 }
 0x2c3   : > { %v3910_v2 = vadd.f32 %v1943_v30, %v1831_v35  ;;  %v1984_v30 = vadd.f32 %v1983_v56, %v3865_v49  ;;  %v1611_v7 = vadd.f32 %v1610_v9, %v3680_v31 }
 0x2c5   : > { %2130 = vst [vmem:[%s3721_s25 + $0xc0] sm:$0xff] %v3910_v2  ;;  %v1985_v12 = vadd.f32 %v1984_v30, %v3870_v42 }
 0x2c6   : > { %v1720_v32 = vpop.f32.mrf.mxu2 }
 0x2c7   : > { %v1721_v40 = vadd.f32 %v1720_v32, %v1608_v20  ;;  %v1833_v33 = vpop.f32.mrf.mxu3  ;;  %v1986_v54 = vadd.f32 %v1985_v12, %v3875_v48  ;;  %v1952_v55 = vpop.f32.mrf.mxu0 }
 0x2c9   : > { %v1834_v19 = vadd.f32 %v1833_v33, %v1721_v40  ;;  %v1987_v58 = vadd.f32 %v1986_v54, %v3883_v1 }
 0x2ca   : > { %v1613_v11 = vpop.f32.mrf.mxu1 }
 0x2cb   : > { %v3919_v46 = vadd.f32 %v1946_v63, %v1834_v19  ;;  %v1988_v38 = vadd.f32 %v1987_v58, %v3892_v52  ;;  %v1614_v31 = vadd.f32 %v1613_v11, %v3686_v43 }
 0x2cd   : > { %2131 = vst [vmem:[%s3721_s25 + $0xc8] sm:$0xff] %v3919_v46  ;;  %v1989_v51 = vadd.f32 %v1988_v38, %v3901_v47 }
 0x2ce   : > { %v1723_v0 = vpop.f32.mrf.mxu2 }
 0x2cf   : > { %v1724_v15 = vadd.f32 %v1723_v0, %v1611_v7  ;;  %v1836_v53 = vpop.f32.mrf.mxu3  ;;  %v1990_v62 = vadd.f32 %v1989_v51, %v3910_v2  ;;  %v1955_v9 = vpop.f32.mrf.mxu0 }
 0x2d1   : > { %v1837_v23 = vadd.f32 %v1836_v53, %v1724_v15  ;;  %v1991_v59 = vadd.f32 %v1990_v62, %v3919_v46 }
 0x2d2   : > { %v1616_v10 = vpop.f32.mrf.mxu1 }
 0x2d3   : > { %v3928_v63 = vadd.f32 %v1949_v57, %v1837_v23  ;;  %v1617_v20 = vadd.f32 %v1616_v10, %v3692_v18 }
 0x2d5   : > { %2132 = vst [vmem:[%s3721_s25 + $0xd0] sm:$0xff] %v3928_v63  ;;  %v1992_v34 = vadd.f32 %v1991_v59, %v3928_v63 }
 0x2d6   : > { %v1726_v17 = vpop.f32.mrf.mxu2 }
 0x2d7   : > { %v1727_v16 = vadd.f32 %v1726_v17, %v1614_v31  ;;  %v1839_v37 = vpop.f32.mrf.mxu3  ;;  %v1958_v19 = vpop.f32.mrf.mxu0 }
 0x2d9   : > { %v1840_v35 = vadd.f32 %v1839_v37, %v1727_v16 }
 0x2da   : > { %v1619_v57 = vpop.f32.mrf.mxu1 }
 0x2db   : > { %v3937_v13 = vadd.f32 %v1952_v55, %v1840_v35  ;;  %v1620_v11 = vadd.f32 %v1619_v57, %v3698_v61 }
 0x2dd   : > { %v1993_v43 = vadd.f32 %v1992_v34, %v3937_v13  ;;  %2133 = vst [vmem:[%s3721_s25 + $0xd8] sm:$0xff] %v3937_v13 }
 0x2de   : > { %v1729_v32 = vpop.f32.mrf.mxu2 }
 0x2df   : > { %v1730_v50 = vadd.f32 %v1729_v32, %v1617_v20  ;;  %v1842_v40 = vpop.f32.mrf.mxu3  ;;  %v1961_v61 = vpop.f32.mrf.mxu0 }
 0x2e1   : > { %v1843_v33 = vadd.f32 %v1842_v40, %v1730_v50 }
 0x2e2   : > { %v1622_v0 = vpop.f32.mrf.mxu1 }
 0x2e3   : > { %v3943_v56 = vadd.f32 %v1955_v9, %v1843_v33  ;;  %v1623_v53 = vadd.f32 %v1622_v0, %v3704_v27 }
 0x2e5   : > { %v1994_v30 = vadd.f32 %v1993_v43, %v3943_v56  ;;  %2134 = vst [vmem:[%s3721_s25 + $0xe0] sm:$0xff] %v3943_v56 }
 0x2e6   : > { %v1732_v18 = vpop.f32.mrf.mxu2 }
 0x2e7   : > { %v1733_v12 = vadd.f32 %v1732_v18, %v1620_v11  ;;  %v1845_v7 = vpop.f32.mrf.mxu3  ;;  %v1964_v59 = vpop.f32.mrf.mxu0 }
 0x2e9   : > { %v1846_v54 = vadd.f32 %v1845_v7, %v1733_v12 }
 0x2ea   : > { %v1625_v51 = vpop.f32.mrf.mxu1 }
 0x2eb   : > { %v3949_v15 = vadd.f32 %v1958_v19, %v1846_v54  ;;  %v1626_v17 = vadd.f32 %v1625_v51, %v3710_v60 }
 0x2ed   : > { %v1995_v55 = vadd.f32 %v1994_v30, %v3949_v15  ;;  %2135 = vst [vmem:[%s3721_s25 + $0xe8] sm:$0xff] %v3949_v15 }
 0x2ee   : > { %v1735_v58 = vpop.f32.mrf.mxu2 }
 0x2ef   : > { %v1736_v23 = vadd.f32 %v1735_v58, %v1623_v53  ;;  %v1848_v38 = vpop.f32.mrf.mxu3 }
 0x2f1   : > { %v1849_v10 = vadd.f32 %v1848_v38, %v1736_v23 }
 0x2f3   : > { %v3955_v31 = vadd.f32 %v1961_v61, %v1849_v10 }
 0x2f5   : > { %v1996_v62 = vadd.f32 %v1995_v55, %v3955_v31  ;;  %2136 = vst [vmem:[%s3721_s25 + $0xf0] sm:$0xff] %v3955_v31 }
 0x2f6   : > { %v1738_v27 = vpop.f32.mrf.mxu2 }
 0x2f7   : > { %v1739_v16 = vadd.f32 %v1738_v27, %v1626_v17  ;;  %v1851_v37 = vpop.f32.mrf.mxu3 }
 0x2f9   : > { %v1852_v35 = vadd.f32 %v1851_v37, %v1739_v16 }
 0x2fb   : > { %v3961_v9 = vadd.f32 %v1964_v59, %v1852_v35 }
 0x2fd   : > { %v1997_v34 = vadd.f32 %v1996_v62, %v3961_v9  ;;  %2137 = vst [vmem:[%s3721_s25 + $0xf8] sm:$0xff] %v3961_v9 }
 0x2ff   : > { %v1998_v20 = vrot.slane %v1997_v34, 4 }
 0x301   : > { %v1999_v43 = vadd.f32 %v1998_v20, %v1997_v34 }
 0x303   : > { %v2000_v32 = vrot.slane %v1999_v43, 2 }
 0x305   : > { %v2001_v57 = vadd.f32 %v2000_v32, %v1999_v43 }
 0x307   : > { %v2002_v60 = vrot.slane %v2001_v57, 1 }
 0x309   : > { %v3966_v50 = vadd.f32 %v2002_v60, %v2001_v57 }
 0x30b   : > { %v3969_v40 = vmul.f32 0.00390625, %v3966_v50 }
 0x30d   : > { %v2005_v33 = vsub.f32 %v3723_v45, %v3969_v40  ;;  %v2006_v19 = vsub.f32 %v3731_v36, %v3969_v40  ;;  %v2007_v11 = vsub.f32 %v3739_v26, %v3969_v40  ;;  %v2008_v12 = vsub.f32 %v3747_v6, %v3969_v40 }
 0x30e   : > { %v2009_v7 = vsub.f32 %v3756_v41, %v3969_v40  ;;  %v2010_v53 = vsub.f32 %v3765_v14, %v3969_v40  ;;  %v2011_v36 = vsub.f32 %v3774_v3, %v3969_v40  ;;  %v2012_v61 = vsub.f32 %v3783_v24, %v3969_v40 }
 0x30f   : > { %v2037_v30 = vmul.f32 %v2005_v33, %v2005_v33  ;;  %v2038_v18 = vmul.f32 %v2006_v19, %v2006_v19  ;;  %v2039_v0 = vmul.f32 %v2007_v11, %v2007_v11  ;;  %v2040_v45 = vmul.f32 %v2008_v12, %v2008_v12 }
 0x310   : > { %v2041_v58 = vmul.f32 %v2009_v7, %v2009_v7  ;;  %v2042_v23 = vmul.f32 %v2010_v53, %v2010_v53  ;;  %v2013_v41 = vsub.f32 %v3792_v44, %v3969_v40  ;;  %v2043_v38 = vmul.f32 %v2011_v36, %v2011_v36 }
 0x311   : > { %v2069_v54 = vadd.f32 %v2038_v18, %v2037_v30  ;;  %v2014_v14 = vsub.f32 %v3801_v4, %v3969_v40  ;;  %v2044_v51 = vmul.f32 %v2012_v61, %v2012_v61  ;;  %v2015_v3 = vsub.f32 %v3813_v29, %v3969_v40 }
 0x312   : > { %v2045_v62 = vmul.f32 %v2013_v41, %v2013_v41  ;;  %v2016_v24 = vsub.f32 %v3823_v22, %v3969_v40  ;;  %v2017_v44 = vsub.f32 %v3831_v5, %v3969_v40  ;;  %v2018_v4 = vsub.f32 %v3839_v8, %v3969_v40 }
 0x313   : > { %v2070_v55 = vadd.f32 %v2069_v54, %v2039_v0  ;;  %v2046_v16 = vmul.f32 %v2014_v14, %v2014_v14  ;;  %v2047_v59 = vmul.f32 %v2015_v3, %v2015_v3  ;;  %v2019_v29 = vsub.f32 %v3845_v39, %v3969_v40 }
 0x314   : > { %v2048_v34 = vmul.f32 %v2016_v24, %v2016_v24  ;;  %v2049_v43 = vmul.f32 %v2017_v44, %v2017_v44  ;;  %v2020_v22 = vsub.f32 %v3850_v25, %v3969_v40  ;;  %v2050_v57 = vmul.f32 %v2018_v4, %v2018_v4 }
 0x315   : > { %v2071_v26 = vadd.f32 %v2070_v55, %v2040_v45  ;;  %v2021_v5 = vsub.f32 %v3855_v28, %v3969_v40  ;;  %v2051_v33 = vmul.f32 %v2019_v29, %v2019_v29  ;;  %v2022_v8 = vsub.f32 %v3860_v21, %v3969_v40 }
 0x316   : > { %v2052_v11 = vmul.f32 %v2020_v22, %v2020_v22  ;;  %v2023_v39 = vsub.f32 %v3865_v49, %v3969_v40  ;;  %v2024_v25 = vsub.f32 %v3870_v42, %v3969_v40  ;;  %v2025_v28 = vsub.f32 %v3875_v48, %v3969_v40 }
 0x317   : > { %v2072_v6 = vadd.f32 %v2071_v26, %v2041_v58  ;;  %v2053_v18 = vmul.f32 %v2021_v5, %v2021_v5  ;;  %v2054_v7 = vmul.f32 %v2022_v8, %v2022_v8  ;;  %v2026_v21 = vsub.f32 %v3883_v1, %v3969_v40 }
 0x318   : > { %v2055_v54 = vmul.f32 %v2023_v39, %v2023_v39  ;;  %v2056_v45 = vmul.f32 %v2024_v25, %v2024_v25  ;;  %v2027_v49 = vsub.f32 %v3892_v52, %v3969_v40  ;;  %v2057_v36 = vmul.f32 %v2025_v28, %v2025_v28 }
 0x319   : > { %v2073_v10 = vadd.f32 %v2072_v6, %v2042_v23  ;;  %v2028_v42 = vsub.f32 %v3901_v47, %v3969_v40  ;;  %v2058_v26 = vmul.f32 %v2026_v21, %v2026_v21  ;;  %v2029_v48 = vsub.f32 %v3910_v2, %v3969_v40 }
 0x31a   : > { %v2059_v23 = vmul.f32 %v2027_v49, %v2027_v49  ;;  %v2030_v1 = vsub.f32 %v3919_v46, %v3969_v40  ;;  %v2031_v52 = vsub.f32 %v3928_v63, %v3969_v40  ;;  %v2032_v47 = vsub.f32 %v3937_v13, %v3969_v40 }
 0x31b   : > { %v2074_v17 = vadd.f32 %v2073_v10, %v2043_v38  ;;  %v2060_v41 = vmul.f32 %v2028_v42, %v2028_v42  ;;  %v2061_v10 = vmul.f32 %v2029_v48, %v2029_v48  ;;  %v2033_v2 = vsub.f32 %v3943_v56, %v3969_v40 }
 0x31c   : > { %v2063_v3 = vmul.f32 %v2031_v52, %v2031_v52  ;;  %v2034_v46 = vsub.f32 %v3949_v15, %v3969_v40  ;;  %v2035_v63 = vsub.f32 %v3955_v31, %v3969_v40  ;;  %v2036_v13 = vsub.f32 %v3961_v9, %v3969_v40 }
 0x31d   : > { %v2075_v27 = vadd.f32 %v2074_v17, %v2044_v51  ;;  %v2062_v51 = vmul.f32 %v2030_v1, %v2030_v1 }
 0x31e   : > { %v2066_v44 = vmul.f32 %v2034_v46, %v2034_v46  ;;  %v2068_v4 = vmul.f32 %v2036_v13, %v2036_v13 }
 0x31f   : > { %v2076_v37 = vadd.f32 %v2075_v27, %v2045_v62  ;;  %v2064_v27 = vmul.f32 %v2032_v47, %v2032_v47 }
 0x321   : > { %v2077_v35 = vadd.f32 %v2076_v37, %v2046_v16  ;;  %v2065_v16 = vmul.f32 %v2033_v2, %v2033_v2 }
 0x323   : > { %v2078_v20 = vadd.f32 %v2077_v35, %v2047_v59  ;;  %v2067_v35 = vmul.f32 %v2035_v63, %v2035_v63 }
 0x325   : > { %v2079_v32 = vadd.f32 %v2078_v20, %v2048_v34 }
 0x327   : > { %v2080_v60 = vadd.f32 %v2079_v32, %v2049_v43 }
 0x329   : > { %v2081_v19 = vadd.f32 %v2080_v60, %v2050_v57 }
 0x32b   : > { %v2082_v30 = vadd.f32 %v2081_v19, %v2051_v33 }
 0x32d   : > { %v2083_v12 = vadd.f32 %v2082_v30, %v2052_v11 }
 0x32f   : > { %v2084_v0 = vadd.f32 %v2083_v12, %v2053_v18 }
 0x331   : > { %v2085_v53 = vadd.f32 %v2084_v0, %v2054_v7 }
 0x333   : > { %v2086_v55 = vadd.f32 %v2085_v53, %v2055_v54 }
 0x335   : > { %v2087_v58 = vadd.f32 %v2086_v55, %v2056_v45 }
 0x337   : > { %v2088_v61 = vadd.f32 %v2087_v58, %v2057_v36 }
 0x339   : > { %v2089_v6 = vadd.f32 %v2088_v61, %v2058_v26 }
 0x33b   : > { %v2090_v38 = vadd.f32 %v2089_v6, %v2059_v23 }
 0x33d   : > { %v2091_v14 = vadd.f32 %v2090_v38, %v2060_v41 }
 0x33f   : > { %v2092_v17 = vadd.f32 %v2091_v14, %v2061_v10 }
 0x341   : > { %v2093_v62 = vadd.f32 %v2092_v17, %v2062_v51 }
 0x343   : > { %v2094_v24 = vadd.f32 %v2093_v62, %v2063_v3 }
 0x345   : > { %v2095_v37 = vadd.f32 %v2094_v24, %v2064_v27 }
 0x347   : > { %v2096_v59 = vadd.f32 %v2095_v37, %v2065_v16 }
 0x349   : > { %v2097_v56 = vadd.f32 %v2096_v59, %v2066_v44 }
 0x34b   : > { %v2098_v34 = vadd.f32 %v2097_v56, %v2067_v35 }
 0x34d   : > { %v2099_v20 = vadd.f32 %v2098_v34, %v2068_v4 }
 0x34f   : > { %v2100_v29 = vrot.slane %v2099_v20, 4 }
 0x351   : > { %v2101_v15 = vadd.f32 %v2100_v29, %v2099_v20 }
 0x353   : > { %v2102_v43 = vrot.slane %v2101_v15, 2 }
 0x355   : > { %v2103_v32 = vadd.f32 %v2102_v43, %v2101_v15 }
 0x357   : > { %v2104_v22 = vrot.slane %v2103_v32, 1 }
 0x359   : > { %v2105_v31 = vadd.f32 %v2104_v22, %v2103_v32 }
 0x35b   : > { %v2139_v9 = vsel %vm2138_vm2, %v3966_v50, %v2105_v31 }
 0x35c   : > { %2140 = vst [vmem:[%s235_s29] sm:$0x3] %v2139_v9 }
 0x35d PF: > { %s16_s18 = sadd.s32 1, %s2337_s18  }
 0x35e   : > { %p13_p4 = scmp.ge.s32.totalorder %s16_s18, 4  }
 0x360   :  { %15 = sbr.rel (!%p13_p4) target bundleno = 1 (0x1), region = 80 }

</bundles_post_ra>
